<compile_context>
chip_gen: v5e
topology: v5e:2x2
jax: 0.10.0
libtpu: 0.0.40
codegen_flags: <defaults>
</compile_context>

<pallas_src>
import jax
import jax.numpy as jnp
from jax.experimental import pallas as pl
from jax.experimental.pallas import tpu as pltpu

HIDDEN = 1024   # fixed by the module definition
LANE = 128      # TPU lane width


def _round_up(x, m):
    return (x + m - 1) // m * m


def _mlp_kernel(x_ref, w1_ref, b1_ref, w2_ref, b2_ref, w3_ref, b3_ref, o_ref):
    # Matmul operands in bf16 (native MXU dtype), accumulate in f32.
    x = x_ref[...].astype(jnp.bfloat16)
    # Layer 1: Linear(input_dim -> 1024) + ReLU
    h = jnp.dot(x, w1_ref[...], preferred_element_type=jnp.float32)
    h = jnp.maximum(h + b1_ref[...], 0.0)
    # Layer 2: Linear(1024 -> 1024) + ReLU
    h = jnp.dot(h.astype(jnp.bfloat16), w2_ref[...],
                preferred_element_type=jnp.float32)
    h = jnp.maximum(h + b2_ref[...], 0.0)
    # Dropout(0.3): identity in eval mode.
    # Layer 3: Linear(1024 -> bit) + Tanh
    h = jnp.dot(h.astype(jnp.bfloat16), w3_ref[...],
                preferred_element_type=jnp.float32)
    o_ref[...] = jnp.tanh(h + b3_ref[...]).astype(o_ref.dtype)


def _pick_block_b(B):
    """Batch tile: large enough to fill the MXU M dim for real batches, but do
    not over-pad tiny batches, and prefer >=2 grid steps (v7x has 2 TCs)."""
    b8 = _round_up(B, 8)
    if b8 >= 2 * 256:
        return 256
    if b8 >= 16:
        return _round_up(-(-b8 // 2), 8)   # ~half the batch, multiple of 8
    return b8


def text_subnet_forward(feat, params, *, block_b=None, training=False):
    """feat: (B, input_dim) float32.  Returns (B, bit) float32 (eval mode)."""
    if training:
        # TODO(synk): training-mode Dropout(0.3) (stochastic mask via
        # pltpu.prng_random_bits) not implemented; eval mode only.
        raise NotImplementedError("TextSubnet Pallas kernel supports eval mode only")

    w1, b1, w2, b2, w3, b3 = params
    B, input_dim = feat.shape
    hidden = w1.shape[1]
    bit = w3.shape[1]

    if block_b is None:
        block_b = _pick_block_b(B)

    # Lane-dense padding of the narrow dims; batch padded to the tile size.
    in_pad = _round_up(input_dim, LANE)
    out_pad = _round_up(bit, LANE)
    b_pad = _round_up(B, block_b)
    grid = (b_pad // block_b,)

    x = feat.astype(jnp.float32)
    if (b_pad, in_pad) != (B, input_dim):
        x = jnp.zeros((b_pad, in_pad), jnp.float32).at[:B, :input_dim].set(x)

    bf16 = jnp.bfloat16
    w1p = jnp.zeros((in_pad, hidden), bf16).at[:input_dim, :].set(w1.astype(bf16))
    w2p = w2.astype(bf16)
    w3p = jnp.zeros((hidden, out_pad), bf16).at[:, :bit].set(w3.astype(bf16))
    b1p = b1.astype(jnp.float32).reshape(1, hidden)
    b2p = b2.astype(jnp.float32).reshape(1, hidden)
    b3p = jnp.zeros((1, out_pad), jnp.float32).at[:, :bit].set(b3.reshape(1, bit))

    # Grid-invariant operands: whole array resident in VMEM on every step.
    full = lambda shape: pl.BlockSpec(shape, lambda i: (0,) * len(shape))

    # Tight VMEM budget: double-buffered x/out tiles + resident (double-
    # buffered) weights + f32 intermediates, with 2x headroom + 4 MiB slack.
    vmem_bytes = (
        2 * block_b * in_pad * 4                                         # x tile
        + 2 * block_b * out_pad * 4                                      # out tile
        + 2 * (in_pad * hidden + hidden * hidden + hidden * out_pad) * 2  # bf16 W
        + 2 * (2 * hidden + out_pad) * 4                                 # biases
        + 2 * block_b * hidden * 4                                       # h scratch
    )
    vmem_limit = min(2 * vmem_bytes + (4 << 20), 64 << 20)

    cost = pl.CostEstimate(
        flops=2 * b_pad * (in_pad * hidden + hidden * hidden + hidden * out_pad),
        transcendentals=b_pad * out_pad,   # tanh
        bytes_accessed=(x.size * 4
                        + (w1p.size + w2p.size + w3p.size) * 2
                        + (b1p.size + b2p.size + b3p.size) * 4
                        + b_pad * out_pad * 4),
    )

    out = pl.pallas_call(
        _mlp_kernel,
        out_shape=jax.ShapeDtypeStruct((b_pad, out_pad), jnp.float32),
        grid_spec=pltpu.PrefetchScalarGridSpec(
            num_scalar_prefetch=0,
            grid=grid,
            in_specs=[
                pl.BlockSpec((block_b, in_pad), lambda i: (i, 0)),   # x tile
                full((in_pad, hidden)),    # W1 (bf16)
                full((1, hidden)),         # b1 (f32)
                full((hidden, hidden)),    # W2 (bf16)
                full((1, hidden)),         # b2 (f32)
                full((hidden, out_pad)),   # W3 (bf16)
                full((1, out_pad)),        # b3 (f32)
            ],
            out_specs=pl.BlockSpec((block_b, out_pad), lambda i: (i, 0)),
        ),
        compiler_params=pltpu.CompilerParams(
            dimension_semantics=("parallel",),
            vmem_limit_bytes=vmem_limit,
        ),
        cost_estimate=cost,
    )(x, w1p, b1p, w2p, b2p, w3p, b3p)

    return out[:B, :bit]


def init_params(key, input_dim, bit):
    """Deterministic init mimicking nn.Linear defaults (uniform +-1/sqrt(fan_in)).
    Weights stored as (in, out) so the kernel computes x @ W + b."""
    k1, k2, k3, k4, k5, k6 = jax.random.split(key, 6)

    def lin(kw, kb, fan_in, fan_out):
        bound = 1.0 / jnp.sqrt(fan_in)
        w = jax.random.uniform(kw, (fan_in, fan_out), jnp.float32, -bound, bound)
        b = jax.random.uniform(kb, (1, fan_out), jnp.float32, -bound, bound)
        return w, b

    w1, b1 = lin(k1, k2, input_dim, HIDDEN)
    w2, b2 = lin(k3, k4, HIDDEN, HIDDEN)
    w3, b3 = lin(k5, k6, HIDDEN, bit)
    return w1, b1, w2, b2, w3, b3


def reference_forward_f32(feat, params):
    w1, b1, w2, b2, w3, b3 = params
    h = jnp.maximum(feat @ w1 + b1, 0.0)
    h = jnp.maximum(h @ w2 + b2, 0.0)
    return jnp.tanh(h @ w3 + b3)


def reference_forward_mixed(feat, params):
    """Same mixed precision as the kernel: bf16 operands, f32 accumulation."""
    w1, b1, w2, b2, w3, b3 = params
    bf = jnp.bfloat16
    dot = lambda a, b: jnp.dot(a.astype(bf), b.astype(bf),
                               preferred_element_type=jnp.float32)
    h = jnp.maximum(dot(feat, w1) + b1, 0.0)
    h = jnp.maximum(dot(h, w2) + b2, 0.0)
    return jnp.tanh(dot(h, w3) + b3)


if __name__ == "__main__":
    key = jax.random.PRNGKey(0)
    k_param, k_feat = jax.random.split(key)

    batch, input_dim, bit = 8, 32, 16
    params = init_params(k_param, input_dim, bit)
    feat = jax.random.normal(k_feat, (batch, input_dim), jnp.float32)

    out = jax.block_until_ready(text_subnet_forward(feat, params))
    assert out.shape == (batch, bit)

    ref_mixed = reference_forward_mixed(feat, params)
    ref_f32 = reference_forward_f32(feat, params)
    assert jnp.allclose(out, ref_mixed, atol=5e-3, rtol=5e-3), \
        "mismatch vs mixed-precision reference"
    assert float(jnp.max(jnp.abs(out - ref_f32))) < 5e-2, \
        "mismatch vs f32 reference"

    # Also exercise the batch-padding / multi-step-grid path (B=20 -> 2 tiles).
    feat2 = jax.random.normal(jax.random.PRNGKey(1), (20, input_dim), jnp.float32)
    out2 = jax.block_until_ready(text_subnet_forward(feat2, params))
    assert out2.shape == (20, bit)
    assert jnp.allclose(out2, reference_forward_mixed(feat2, params),
                        atol=5e-3, rtol=5e-3), "mismatch on padded-batch path"

    print("KERNEL_OK")
</pallas_src>

<mosaic_0001>
module attributes {stable_mosaic.version = 11 : i64} {
  func.func @_mlp_kernel(%arg0: i32, %arg1: memref<8x128xf32, #tpu.memory_space<vmem>>, %arg2: memref<128x1024xbf16, #tpu.memory_space<vmem>>, %arg3: memref<1x1024xf32, #tpu.memory_space<vmem>>, %arg4: memref<1024x1024xbf16, #tpu.memory_space<vmem>>, %arg5: memref<1x1024xf32, #tpu.memory_space<vmem>>, %arg6: memref<1024x128xbf16, #tpu.memory_space<vmem>>, %arg7: memref<1x128xf32, #tpu.memory_space<vmem>>, %arg8: memref<8x128xf32, #tpu.memory_space<vmem>>) attributes {dimension_semantics = [#tpu.dimension_semantics<parallel>], iteration_bounds = array<i64: 1>, scalar_prefetch = 0 : i64, scratch_operands = 0 : i64, tpu.core_type = #tpu.core_type<tc>, window_params = [{transform_indices = @transform_0, window_bounds = array<i64: 8, 128>}, {pipeline_mode = #tpu.pipeline_mode<synchronous>, transform_indices = @transform_1, window_bounds = array<i64: 128, 1024>}, {pipeline_mode = #tpu.pipeline_mode<synchronous>, transform_indices = @transform_2, window_bounds = array<i64: 1, 1024>}, {pipeline_mode = #tpu.pipeline_mode<synchronous>, transform_indices = @transform_3, window_bounds = array<i64: 1024, 1024>}, {pipeline_mode = #tpu.pipeline_mode<synchronous>, transform_indices = @transform_4, window_bounds = array<i64: 1, 1024>}, {pipeline_mode = #tpu.pipeline_mode<synchronous>, transform_indices = @transform_5, window_bounds = array<i64: 1024, 128>}, {pipeline_mode = #tpu.pipeline_mode<synchronous>, transform_indices = @transform_6, window_bounds = array<i64: 1, 128>}, {transform_indices = @transform_7, window_bounds = array<i64: 8, 128>}]} {
    %c0 = arith.constant 0 : index
    %c0_0 = arith.constant 0 : index
    %0 = vector.load %arg1[%c0, %c0_0] : memref<8x128xf32, #tpu.memory_space<vmem>>, vector<8x128xf32>
    %1 = arith.truncf %0 : vector<8x128xf32> to vector<8x128xbf16>
    %c0_1 = arith.constant 0 : index
    %c0_2 = arith.constant 0 : index
    %2 = vector.load %arg2[%c0_1, %c0_2] : memref<128x1024xbf16, #tpu.memory_space<vmem>>, vector<128x1024xbf16>
    %cst = arith.constant dense<0.000000e+00> : vector<8x1024xf32>
    %3 = tpu.matmul %1, %2, %cst {dimension_numbers = #tpu.dot_dimension_numbers<[1], [0], [0], [1], [0, 0, 1, 1], [], []>} : vector<8x128xbf16>, vector<128x1024xbf16>, vector<8x1024xf32> -> vector<8x1024xf32>
    %c0_3 = arith.constant 0 : index
    %c0_4 = arith.constant 0 : index
    %4 = vector.load %arg3[%c0_3, %c0_4] : memref<1x1024xf32, #tpu.memory_space<vmem>>, vector<1x1024xf32>
    %5 = vector.broadcast %4 : vector<1x1024xf32> to vector<8x1024xf32>
    %6 = arith.addf %3, %5 : vector<8x1024xf32>
    %cst_5 = arith.constant 0.000000e+00 : f32
    %7 = vector.broadcast %cst_5 : f32 to vector<8x1024xf32>
    %8 = arith.maximumf %6, %7 : vector<8x1024xf32>
    %9 = arith.truncf %8 : vector<8x1024xf32> to vector<8x1024xbf16>
    %c0_6 = arith.constant 0 : index
    %c0_7 = arith.constant 0 : index
    %10 = vector.load %arg4[%c0_6, %c0_7] : memref<1024x1024xbf16, #tpu.memory_space<vmem>>, vector<1024x1024xbf16>
    %cst_8 = arith.constant dense<0.000000e+00> : vector<8x1024xf32>
    %11 = tpu.matmul %9, %10, %cst_8 {dimension_numbers = #tpu.dot_dimension_numbers<[1], [0], [0], [1], [0, 0, 1, 1], [], []>} : vector<8x1024xbf16>, vector<1024x1024xbf16>, vector<8x1024xf32> -> vector<8x1024xf32>
    %c0_9 = arith.constant 0 : index
    %c0_10 = arith.constant 0 : index
    %12 = vector.load %arg5[%c0_9, %c0_10] : memref<1x1024xf32, #tpu.memory_space<vmem>>, vector<1x1024xf32>
    %13 = vector.broadcast %12 : vector<1x1024xf32> to vector<8x1024xf32>
    %14 = arith.addf %11, %13 : vector<8x1024xf32>
    %cst_11 = arith.constant 0.000000e+00 : f32
    %15 = vector.broadcast %cst_11 : f32 to vector<8x1024xf32>
    %16 = arith.maximumf %14, %15 : vector<8x1024xf32>
    %17 = arith.truncf %16 : vector<8x1024xf32> to vector<8x1024xbf16>
    %c0_12 = arith.constant 0 : index
    %c0_13 = arith.constant 0 : index
    %18 = vector.load %arg6[%c0_12, %c0_13] : memref<1024x128xbf16, #tpu.memory_space<vmem>>, vector<1024x128xbf16>
    %cst_14 = arith.constant dense<0.000000e+00> : vector<8x128xf32>
    %19 = tpu.matmul %17, %18, %cst_14 {dimension_numbers = #tpu.dot_dimension_numbers<[1], [0], [0], [1], [0, 0, 1, 1], [], []>} : vector<8x1024xbf16>, vector<1024x128xbf16>, vector<8x128xf32> -> vector<8x128xf32>
    %c0_15 = arith.constant 0 : index
    %c0_16 = arith.constant 0 : index
    %20 = vector.load %arg7[%c0_15, %c0_16] : memref<1x128xf32, #tpu.memory_space<vmem>>, vector<1x128xf32>
    %21 = vector.broadcast %20 : vector<1x128xf32> to vector<8x128xf32>
    %22 = arith.addf %19, %21 : vector<8x128xf32>
    %23 = math.tanh %22 : vector<8x128xf32>
    %c0_17 = arith.constant 0 : index
    %c0_18 = arith.constant 0 : index
    %24 = vector.load %arg8[%c0_17, %c0_18] : memref<8x128xf32, #tpu.memory_space<vmem>>, vector<8x128xf32>
    tpu.vector_store %arg8[%c0_17, %c0_18], %23 {strides = array<i32>} : memref<8x128xf32, #tpu.memory_space<vmem>>, vector<8x128xf32>,
    return
  }
  func.func @transform_0(%arg0: i32) -> (i32, i32) {
    %c0_i32 = arith.constant 0 : i32
    %c0_i32_0 = arith.constant 0 : i32
    return %arg0, %c0_i32 : i32, i32
  }
  func.func @transform_1(%arg0: i32) -> (i32, i32) {
    %c0_i32 = arith.constant 0 : i32
    %c0_i32_0 = arith.constant 0 : i32
    %c0_i32_1 = arith.constant 0 : i32
    return %c0_i32, %c0_i32_0 : i32, i32
  }
  func.func @transform_2(%arg0: i32) -> (i32, i32) {
    %c0_i32 = arith.constant 0 : i32
    %c0_i32_0 = arith.constant 0 : i32
    %c0_i32_1 = arith.constant 0 : i32
    return %c0_i32, %c0_i32_0 : i32, i32
  }
  func.func @transform_3(%arg0: i32) -> (i32, i32) {
    %c0_i32 = arith.constant 0 : i32
    %c0_i32_0 = arith.constant 0 : i32
    %c0_i32_1 = arith.constant 0 : i32
    return %c0_i32, %c0_i32_0 : i32, i32
  }
  func.func @transform_4(%arg0: i32) -> (i32, i32) {
    %c0_i32 = arith.constant 0 : i32
    %c0_i32_0 = arith.constant 0 : i32
    %c0_i32_1 = arith.constant 0 : i32
    return %c0_i32, %c0_i32_0 : i32, i32
  }
  func.func @transform_5(%arg0: i32) -> (i32, i32) {
    %c0_i32 = arith.constant 0 : i32
    %c0_i32_0 = arith.constant 0 : i32
    %c0_i32_1 = arith.constant 0 : i32
    return %c0_i32, %c0_i32_0 : i32, i32
  }
  func.func @transform_6(%arg0: i32) -> (i32, i32) {
    %c0_i32 = arith.constant 0 : i32
    %c0_i32_0 = arith.constant 0 : i32
    %c0_i32_1 = arith.constant 0 : i32
    return %c0_i32, %c0_i32_0 : i32, i32
  }
  func.func @transform_7(%arg0: i32) -> (i32, i32) {
    %c0_i32 = arith.constant 0 : i32
    %c0_i32_0 = arith.constant 0 : i32
    return %arg0, %c0_i32 : i32, i32
  }
}

</mosaic_0001>

<bundles_post_ra>
// kernel: tpu_custom_call.1
= control target key start
LH: loop header
LB: loop body
LE: loop exit
PB: predicated region body
PF: predicated region fallthrough
CT: control target
= control target key end

     0   :  { %12 = vsyncpa [#allocation3], 0  ;;  %s8892_s0 = inlined_call_operand.hbm [shape: f32[8,128], index: 0, kind: input, shape index: {}]   ;;  %s8893_s1 = inlined_call_operand.hbm [shape: bf16[128,1024], index: 1, kind: input, shape index: {}]   ;;  %s8894_s2 = inlined_call_operand.hbm [shape: f32[1,1024], index: 2, kind: input, shape index: {}]   ;;  %s8895_s3 = inlined_call_operand.hbm [shape: bf16[1024,1024], index: 3, kind: input, shape index: {}]   ;;  %s8896_s4 = inlined_call_operand.hbm [shape: f32[1,1024], index: 4, kind: input, shape index: {}]   ;;  %s8897_s5 = inlined_call_operand.hbm [shape: bf16[1024,128], index: 5, kind: input, shape index: {}]   ;;  %s8898_s6 = inlined_call_operand.hbm [shape: f32[1,128], index: 6, kind: input, shape index: {}]   ;;  %s8899_s7 = inlined_call_operand.hbm [shape: f32[8,128], index: 7, kind: output, shape index: {}]  }
   0x1   :  { %13 = vsyncpa [#allocation6], 0 }
   0x2   :  { %14 = vsyncpa [#allocation9], 0 }
   0x3   :  { %15 = vsyncpa [#allocation12], 0  ;;  %s32_s26 = sshll.u32 %s8893_s1, 4  ;;  %s33_s26 = int_to_ptr.hbm [resolvable:$true] %s32_s26 }
   0x4   :  { %16 = vsyncpa [#allocation4], 0  ;;  %s8651_s27 = smov [#allocation5]   ;;  %s56_s8 = sshll.u32 %s8895_s3, 4  ;;  %s57_s8 = int_to_ptr.hbm [resolvable:$true] %s56_s8 }
   0x5   :  { %s34_s28 = sshll.u32 %s8651_s27, 4  ;;  %s8652_s9 = smov 512   ;;  %s35_s28 = int_to_ptr.vmem [resolvable:$true] %s34_s28 }
   0x6   :  { %s8653_s10 = smov 32   ;;  %s8654_s11 = smov [#allocation8]  }
   0x7   :  { %40 = dma.hbm_to_vmem [thread:$0]  %s33_s26, 8192, %s35_s28, [#allocation6], %s8652_s9, %s8652_s9, %s8653_s10  }
   0x8   :  { %s58_s12 = sshll.u32 %s8654_s11, 4  ;;  %s80_s15 = sshll.u32 %s8897_s5, 4  ;;  %s59_s12 = int_to_ptr.vmem [resolvable:$true] %s58_s12  ;;  %s81_s15 = int_to_ptr.hbm [resolvable:$true] %s80_s15 }
   0x9   :  { %64 = dma.hbm_to_vmem [thread:$0]  %s57_s8, 65536, %s59_s12, [#allocation9], %s8652_s9, %s8652_s9, %s8653_s10  }
   0xa   :  { %s8655_s1 = smov [#allocation11]   ;;  %s22_s3 = sshll.u32 %s8892_s0, 4  ;;  %s23_s3 = int_to_ptr.hbm [resolvable:$true] %s22_s3 }
   0xb   :  { %s82_s16 = sshll.u32 %s8655_s1, 4  ;;  %s8656_s19 = smov 64   ;;  %s83_s16 = int_to_ptr.vmem [resolvable:$true] %s82_s16 }
   0xc   :  { %s8657_s20 = smov 4   ;;  %s8658_s21 = smov [#allocation2]  }
   0xd   :  { %88 = dma.hbm_to_vmem [thread:$0]  %s81_s15, 8192, %s83_s16, [#allocation12], %s8656_s19, %s8656_s19, %s8657_s20  }
   0xe   :  { %s24_s22 = sshll.u32 %s8658_s21, 4  ;;  %s46_s5 = sshll.u32 %s8894_s2, 4  ;;  %s25_s22 = int_to_ptr.vmem [resolvable:$true] %s24_s22  ;;  %s47_s5 = int_to_ptr.hbm [resolvable:$true] %s46_s5 }
   0xf   :  { %27 = dma.hbm_to_vmem [thread:$0]  %s23_s3, 128, %s25_s22, [#allocation3]  }
  0x10   :  { %s70_s27 = sshll.u32 %s8896_s4, 4  ;;  %s8659_s28 = smov [#allocation7]   ;;  %s71_s27 = int_to_ptr.hbm [resolvable:$true] %s70_s27 }
  0x11   :  { %s48_s29 = sshll.u32 %s8659_s28, 4  ;;  %s8660_s0 = smov [#allocation10]   ;;  %s49_s29 = int_to_ptr.vmem [resolvable:$true] %s48_s29 }
  0x12   :  { %51 = dma.hbm_to_vmem [thread:$0]  %s47_s5, 128, %s49_s29, [#allocation6]  }
  0x13   :  { %s72_s30 = sshll.u32 %s8660_s0, 4  ;;  %s94_s10 = sshll.u32 %s8898_s6, 4  ;;  %s73_s30 = int_to_ptr.vmem [resolvable:$true] %s72_s30  ;;  %s95_s10 = int_to_ptr.hbm [resolvable:$true] %s94_s10 }
  0x14   :  { %75 = dma.hbm_to_vmem [thread:$0]  %s71_s27, 128, %s73_s30, [#allocation9]  }
  0x15   :  { %s8661_s2 = smov [#allocation13]  }
  0x16   :  { %s96_s11 = sshll.u32 %s8661_s2, 4  ;;  %s97_s11 = int_to_ptr.vmem [resolvable:$true] %s96_s11 }
  0x17   :  { %99 = dma.hbm_to_vmem [thread:$0]  %s95_s10, 16, %s97_s11, [#allocation12]  }
  0x18   :  { %8641 = dma.done.wait [#allocation3], 128  }
  0x19   :  { %8642 = vsyncadd [#allocation3], 4294967168 }
  0x1a   :  { %8643 = dma.done.wait [#allocation6], 8320  }
  0x1b   :  { %8644 = vsyncadd [#allocation6], 4294958976 }
  0x1c   :  { %8645 = dma.done.wait [#allocation9], 65664  }
  0x1d   :  { %8646 = vsyncadd [#allocation9], 4294901632 }
  0x1e   :  { %8647 = dma.done.wait [#allocation12], 8208  }
  0x1f   :  { %8648 = vsyncadd [#allocation12], 4294959088  ;;  %v5458_v0 = vld [vmem:[#allocation5 + $0x1c0] sm:$0xf]  ;;  %v7848_v2 = vld [vmem:[#allocation5 + $0x1c4] sm:$0xf] }
  0x20   :  { %v7852_v1 = vld [vmem:[#allocation5 + $0x1dc] sm:$0xf0]  ;;  %v5460_v4 = vld [vmem:[#allocation5 + $0x1e0] sm:$0xf0]  ;;  %v5466_v5 = vld [vmem:[#allocation5 + $0x1c8] sm:$0xf] }
  0x21   :  { %v5459_v3 = vor.u32 %v7852_v1, %v5458_v0  ;;  %v7853_v6 = vld [vmem:[#allocation5 + $0x1e4] sm:$0xf0]  ;;  %v5463_v7 = vor.u32 %v7848_v2, %v5460_v4  ;;  %v7849_v9 = vld [vmem:[#allocation5 + $0x1cc] sm:$0xf]  ;;  %v5426_v11 = vld [vmem:[#allocation5 + $0x180] sm:$0xf] }
  0x22   :  { %v5467_v8 = vor.u32 %v7853_v6, %v5466_v5  ;;  %v5468_v10 = vld [vmem:[#allocation5 + $0x1e8] sm:$0xf0]  ;;  %v7844_v13 = vld [vmem:[#allocation5 + $0x19c] sm:$0xf0]  ;;  %v7840_v14 = vld [vmem:[#allocation5 + $0x184] sm:$0xf] }
  0x23   :  { %532 = vmatpush.bf16.msra.mxu0 %v5459_v3  ;;  %v5471_v12 = vor.u32 %v7849_v9, %v5468_v10  ;;  %v5428_v15 = vld [vmem:[#allocation5 + $0x1a0] sm:$0xf0]  ;;  %545 = vmatpush.bf16.msra.mxu1 %v5463_v7  ;;  %v5427_v16 = vor.u32 %v7844_v13, %v5426_v11  ;;  %v5434_v18 = vld [vmem:[#allocation5 + $0x188] sm:$0xf]  ;;  %v7841_v20 = vld [vmem:[#allocation5 + $0x18c] sm:$0xf] }
  0x24   :  { %558 = vmatpush.bf16.msra.mxu2 %v5467_v8  ;;  %v5431_v17 = vor.u32 %v7840_v14, %v5428_v15  ;;  %v7845_v19 = vld [vmem:[#allocation5 + $0x1a4] sm:$0xf0]  ;;  %v5436_v22 = vld [vmem:[#allocation5 + $0x1a8] sm:$0xf0]  ;;  %v5394_v23 = vld [vmem:[#allocation5 + $0x140] sm:$0xf] }
  0x25   :  { %571 = vmatpush.bf16.msra.mxu3 %v5471_v12  ;;  %v5435_v21 = vor.u32 %v7845_v19, %v5434_v18  ;;  %v7836_v24 = vld [vmem:[#allocation5 + $0x15c] sm:$0xf0]  ;;  %v5439_v25 = vor.u32 %v7841_v20, %v5436_v22  ;;  %v7832_v26 = vld [vmem:[#allocation5 + $0x144] sm:$0xf]  ;;  %v5402_v28 = vld [vmem:[#allocation5 + $0x148] sm:$0xf] }
  0x26   :  { %v5396_v27 = vld [vmem:[#allocation5 + $0x160] sm:$0xf0]  ;;  %v5395_v29 = vor.u32 %v7836_v24, %v5394_v23  ;;  %v7837_v30 = vld [vmem:[#allocation5 + $0x164] sm:$0xf0]  ;;  %v7833_v31 = vld [vmem:[#allocation5 + $0x14c] sm:$0xf] }
  0x27   :  { %533 = vmatpush.bf16.msra.mxu0 %v5427_v16  ;;  %v5404_v32 = vld [vmem:[#allocation5 + $0x168] sm:$0xf0]  ;;  %546 = vmatpush.bf16.msra.mxu1 %v5431_v17  ;;  %v5399_v33 = vor.u32 %v7832_v26, %v5396_v27  ;;  %v5403_v34 = vor.u32 %v7837_v30, %v5402_v28  ;;  %v5362_v35 = vld [vmem:[#allocation5 + $0x100] sm:$0xf]  ;;  %v7824_v37 = vld [vmem:[#allocation5 + $0x104] sm:$0xf] }
  0x28   :  { %559 = vmatpush.bf16.msra.mxu2 %v5435_v21  ;;  %v7828_v36 = vld [vmem:[#allocation5 + $0x11c] sm:$0xf0]  ;;  %v5407_v38 = vor.u32 %v7833_v31, %v5404_v32  ;;  %v5364_v39 = vld [vmem:[#allocation5 + $0x120] sm:$0xf0]  ;;  %v5370_v40 = vld [vmem:[#allocation5 + $0x108] sm:$0xf] }
  0x29   :  { %572 = vmatpush.bf16.msra.mxu3 %v5439_v25  ;;  %v7829_v41 = vld [vmem:[#allocation5 + $0x124] sm:$0xf0]  ;;  %v7825_v42 = vld [vmem:[#allocation5 + $0x10c] sm:$0xf]  ;;  %v5363_v44 = vor.u32 %v7828_v36, %v5362_v35  ;;  %v5367_v45 = vor.u32 %v7824_v37, %v5364_v39  ;;  %v5330_v47 = vld [vmem:[#allocation5 + $0xc0] sm:$0xf] }
  0x2a   :  { %v5372_v43 = vld [vmem:[#allocation5 + $0x128] sm:$0xf0]  ;;  %v5371_v46 = vor.u32 %v7829_v41, %v5370_v40  ;;  %v7820_v48 = vld [vmem:[#allocation5 + $0xdc] sm:$0xf0]  ;;  %v7816_v49 = vld [vmem:[#allocation5 + $0xc4] sm:$0xf] }
  0x2b   :  { %534 = vmatpush.bf16.msra.mxu0 %v5395_v29  ;;  %547 = vmatpush.bf16.msra.mxu1 %v5399_v33  ;;  %v5375_v50 = vor.u32 %v7825_v42, %v5372_v43  ;;  %v5332_v51 = vld [vmem:[#allocation5 + $0xe0] sm:$0xf0]  ;;  %v5338_v52 = vld [vmem:[#allocation5 + $0xc8] sm:$0xf]  ;;  %v7817_v54 = vld [vmem:[#allocation5 + $0xcc] sm:$0xf]  ;;  %v5331_v56 = vor.u32 %v7820_v48, %v5330_v47 }
  0x2c   :  { %560 = vmatpush.bf16.msra.mxu2 %v5403_v34  ;;  %v7821_v53 = vld [vmem:[#allocation5 + $0xe4] sm:$0xf0]  ;;  %v5340_v55 = vld [vmem:[#allocation5 + $0xe8] sm:$0xf0]  ;;  %v5335_v57 = vor.u32 %v7816_v49, %v5332_v51  ;;  %v5298_v59 = vld [vmem:[#allocation5 + $0x80] sm:$0xf] }
  0x2d   :  { %573 = vmatpush.bf16.msra.mxu3 %v5407_v38  ;;  %v5339_v58 = vor.u32 %v7821_v53, %v5338_v52  ;;  %v7812_v60 = vld [vmem:[#allocation5 + $0x9c] sm:$0xf0]  ;;  %v7808_v61 = vld [vmem:[#allocation5 + $0x84] sm:$0xf]  ;;  %v5343_v62 = vor.u32 %v7817_v54, %v5340_v55  ;;  %v5306_v0 = vld [vmem:[#allocation5 + $0x88] sm:$0xf] }
  0x2e   :  { %v5300_v63 = vld [vmem:[#allocation5 + $0xa0] sm:$0xf0]  ;;  %v7813_v1 = vld [vmem:[#allocation5 + $0xa4] sm:$0xf0]  ;;  %v7809_v2 = vld [vmem:[#allocation5 + $0x8c] sm:$0xf]  ;;  %v5299_v4 = vor.u32 %v7812_v60, %v5298_v59 }
  0x2f   :  { %535 = vmatpush.bf16.msra.mxu0 %v5363_v44  ;;  %548 = vmatpush.bf16.msra.mxu1 %v5367_v45  ;;  %v5308_v3 = vld [vmem:[#allocation5 + $0xa8] sm:$0xf0]  ;;  %v5303_v5 = vor.u32 %v7808_v61, %v5300_v63  ;;  %v5307_v6 = vor.u32 %v7813_v1, %v5306_v0  ;;  %v5266_v7 = vld [vmem:[#allocation5 + $0x40] sm:$0xf]  ;;  %v7800_v9 = vld [vmem:[#allocation5 + $0x44] sm:$0xf] }
  0x30   :  { %561 = vmatpush.bf16.msra.mxu2 %v5371_v46  ;;  %v7804_v8 = vld [vmem:[#allocation5 + $0x5c] sm:$0xf0]  ;;  %v5311_v10 = vor.u32 %v7809_v2, %v5308_v3  ;;  %v5268_v11 = vld [vmem:[#allocation5 + $0x60] sm:$0xf0]  ;;  %v5274_v12 = vld [vmem:[#allocation5 + $0x48] sm:$0xf] }
  0x31   :  { %574 = vmatpush.bf16.msra.mxu3 %v5375_v50  ;;  %v7805_v13 = vld [vmem:[#allocation5 + $0x64] sm:$0xf0]  ;;  %v7801_v14 = vld [vmem:[#allocation5 + $0x4c] sm:$0xf]  ;;  %v5267_v16 = vor.u32 %v7804_v8, %v5266_v7  ;;  %v5234_v17 = vld [vmem:[#allocation5] sm:$0xf]  ;;  %v5271_v19 = vor.u32 %v7800_v9, %v5268_v11 }
  0x32   :  { %v5276_v15 = vld [vmem:[#allocation5 + $0x68] sm:$0xf0]  ;;  %v7796_v18 = vld [vmem:[#allocation5 + $0x1c] sm:$0xf0]  ;;  %v5275_v20 = vor.u32 %v7805_v13, %v5274_v12  ;;  %v7792_v21 = vld [vmem:[#allocation5 + $0x4] sm:$0xf] }
  0x33   :  { %536 = vmatpush.bf16.msra.mxu0 %v5331_v56  ;;  %549 = vmatpush.bf16.msra.mxu1 %v5335_v57  ;;  %v5236_v22 = vld [vmem:[#allocation5 + $0x20] sm:$0xf0]  ;;  %v5242_v23 = vld [vmem:[#allocation5 + $0x8] sm:$0xf]  ;;  %v5279_v24 = vor.u32 %v7801_v14, %v5276_v15  ;;  %v7793_v26 = vld [vmem:[#allocation5 + $0xc] sm:$0xf]  ;;  %v5235_v31 = vor.u32 %v7796_v18, %v5234_v17 }
  0x34   :  { %562 = vmatpush.bf16.msra.mxu2 %v5339_v58  ;;  %v7797_v25 = vld [vmem:[#allocation5 + $0x24] sm:$0xf0]  ;;  %v5244_v27 = vld [vmem:[#allocation5 + $0x28] sm:$0xf0]  ;;  %v5474_v28 = vld [vmem:[#allocation5 + $0x1d0] sm:$0xf]  ;;  %v5239_v35 = vor.u32 %v7792_v21, %v5236_v22 }
  0x35   :  { %575 = vmatpush.bf16.msra.mxu3 %v5343_v62  ;;  %v7854_v29 = vld [vmem:[#allocation5 + $0x1ec] sm:$0xf0]  ;;  %v7850_v30 = vld [vmem:[#allocation5 + $0x1d4] sm:$0xf]  ;;  %v5482_v33 = vld [vmem:[#allocation5 + $0x1d8] sm:$0xf]  ;;  %v5243_v36 = vor.u32 %v7797_v25, %v5242_v23  ;;  %v5247_v40 = vor.u32 %v7793_v26, %v5244_v27 }
  0x36   :  { %v5476_v32 = vld [vmem:[#allocation5 + $0x1f0] sm:$0xf0]  ;;  %v7855_v34 = vld [vmem:[#allocation5 + $0x1f4] sm:$0xf0]  ;;  %v7851_v37 = vld [vmem:[#allocation5 + $0x1dc] sm:$0xf]  ;;  %v5475_v41 = vor.u32 %v7854_v29, %v5474_v28 }
  0x37   :  { %537 = vmatpush.bf16.msra.mxu0 %v5299_v4  ;;  %550 = vmatpush.bf16.msra.mxu1 %v5303_v5  ;;  %v5484_v38 = vld [vmem:[#allocation5 + $0x1f8] sm:$0xf0]  ;;  %v5479_v42 = vor.u32 %v7850_v30, %v5476_v32  ;;  %v5483_v43 = vor.u32 %v7855_v34, %v5482_v33  ;;  %v5442_v44 = vld [vmem:[#allocation5 + $0x190] sm:$0xf]  ;;  %v7842_v46 = vld [vmem:[#allocation5 + $0x194] sm:$0xf] }
  0x38   :  { %563 = vmatpush.bf16.msra.mxu2 %v5307_v6  ;;  %v128_v39 = vld [vmem:[#allocation2] sm:$0xff]  ;;  %v7846_v45 = vld [vmem:[#allocation5 + $0x1ac] sm:$0xf0]  ;;  %v5487_v47 = vor.u32 %v7851_v37, %v5484_v38  ;;  %v5444_v49 = vld [vmem:[#allocation5 + $0x1b0] sm:$0xf0]  ;;  %s8662_s4 = smov [#allocation14]  }
  0x39   :  { %576 = vmatpush.bf16.msra.mxu3 %v5311_v10  ;;  %v8724_v48 = vpack.c.bf16 %v128_v39, %v128_v39  ;;  %v5450_v50 = vld [vmem:[#allocation5 + $0x198] sm:$0xf]  ;;  %v7843_v52 = vld [vmem:[#allocation5 + $0x19c] sm:$0xf]  ;;  %v5443_v54 = vor.u32 %v7846_v45, %v5442_v44  ;;  %v5447_v55 = vor.u32 %v7842_v46, %v5444_v49  ;;  %v5410_v57 = vld [vmem:[#allocation5 + $0x150] sm:$0xf] }
  0x3a   :  { %v7847_v51 = vld [vmem:[#allocation5 + $0x1b4] sm:$0xf0]  ;;  %v5452_v53 = vld [vmem:[#allocation5 + $0x1b8] sm:$0xf0]  ;;  %v7838_v58 = vld [vmem:[#allocation5 + $0x16c] sm:$0xf0] }
  0x3b   :  { %538 = vmatpush.bf16.msra.mxu0 %v5267_v16  ;;  %551 = vmatpush.bf16.msra.mxu1 %v5271_v19  ;;  %v5451_v56 = vor.u32 %v7847_v51, %v5450_v50  ;;  %v7834_v59 = vld [vmem:[#allocation5 + $0x154] sm:$0xf]  ;;  %v5455_v60 = vor.u32 %v7843_v52, %v5452_v53  ;;  %v5418_v62 = vld [vmem:[#allocation5 + $0x158] sm:$0xf]  ;;  %v7835_v0 = vld [vmem:[#allocation5 + $0x15c] sm:$0xf]  ;;  %v5411_v2 = vor.u32 %v7838_v58, %v5410_v57 }
  0x3c   :  { %564 = vmatpush.bf16.msra.mxu2 %v5275_v20  ;;  %v5412_v61 = vld [vmem:[#allocation5 + $0x170] sm:$0xf0]  ;;  %v7839_v63 = vld [vmem:[#allocation5 + $0x174] sm:$0xf0]  ;;  %v5420_v1 = vld [vmem:[#allocation5 + $0x178] sm:$0xf0] }
  0x3d   :  { %577 = vmatpush.bf16.msra.mxu3 %v5279_v24  ;;  %v5415_v3 = vor.u32 %v7834_v59, %v5412_v61  ;;  %v5419_v4 = vor.u32 %v7839_v63, %v5418_v62  ;;  %v5378_v5 = vld [vmem:[#allocation5 + $0x110] sm:$0xf]  ;;  %v7826_v7 = vld [vmem:[#allocation5 + $0x114] sm:$0xf]  ;;  %v5423_v8 = vor.u32 %v7835_v0, %v5420_v1  ;;  %v5386_v10 = vld [vmem:[#allocation5 + $0x118] sm:$0xf] }
  0x3e   :  { %v7830_v6 = vld [vmem:[#allocation5 + $0x12c] sm:$0xf0]  ;;  %v5380_v9 = vld [vmem:[#allocation5 + $0x130] sm:$0xf0]  ;;  %v7831_v11 = vld [vmem:[#allocation5 + $0x134] sm:$0xf0] }
  0x3f   :  { %539 = vmatpush.bf16.msra.mxu0 %v5235_v31  ;;  %552 = vmatpush.bf16.msra.mxu1 %v5239_v35  ;;  %v7827_v12 = vld [vmem:[#allocation5 + $0x11c] sm:$0xf]  ;;  %v5379_v14 = vor.u32 %v7830_v6, %v5378_v5  ;;  %v5383_v15 = vor.u32 %v7826_v7, %v5380_v9  ;;  %v5387_v16 = vor.u32 %v7831_v11, %v5386_v10  ;;  %v5346_v17 = vld [vmem:[#allocation5 + $0xd0] sm:$0xf]  ;;  %v7818_v19 = vld [vmem:[#allocation5 + $0xd4] sm:$0xf] }
  0x40   :  { %565 = vmatpush.bf16.msra.mxu2 %v5243_v36  ;;  %v5388_v13 = vld [vmem:[#allocation5 + $0x138] sm:$0xf0]  ;;  %v7822_v18 = vld [vmem:[#allocation5 + $0xec] sm:$0xf0]  ;;  %v5348_v21 = vld [vmem:[#allocation5 + $0xf0] sm:$0xf0] }
  0x41   :  { %578 = vmatpush.bf16.msra.mxu3 %v5247_v40  ;;  %v5391_v20 = vor.u32 %v7827_v12, %v5388_v13  ;;  %v5354_v22 = vld [vmem:[#allocation5 + $0xd8] sm:$0xf]  ;;  %v7819_v24 = vld [vmem:[#allocation5 + $0xdc] sm:$0xf]  ;;  %v5347_v26 = vor.u32 %v7822_v18, %v5346_v17  ;;  %v5351_v27 = vor.u32 %v7818_v19, %v5348_v21  ;;  %v5314_v29 = vld [vmem:[#allocation5 + $0x90] sm:$0xf] }
  0x42   :  { %540 = vmatmul.bf16.vlgmr.msra.gmra.mxu0 %v8724_v48  ;;  %553 = vmatmul.bf16.vlgmr.msra.gmra.mxu1 %v8724_v48  ;;  %v7823_v23 = vld [vmem:[#allocation5 + $0xf4] sm:$0xf0]  ;;  %v5356_v25 = vld [vmem:[#allocation5 + $0xf8] sm:$0xf0]  ;;  %v7814_v30 = vld [vmem:[#allocation5 + $0xac] sm:$0xf0] }
  0x43   :  { %584 = vmatpush.bf16.msrb.mxu0 %v5475_v41  ;;  %597 = vmatpush.bf16.msrb.mxu1 %v5479_v42  ;;  %v5355_v28 = vor.u32 %v7823_v23, %v5354_v22  ;;  %v7810_v31 = vld [vmem:[#allocation5 + $0x94] sm:$0xf]  ;;  %v5359_v32 = vor.u32 %v7819_v24, %v5356_v25  ;;  %v5322_v34 = vld [vmem:[#allocation5 + $0x98] sm:$0xf]  ;;  %v7811_v36 = vld [vmem:[#allocation5 + $0x9c] sm:$0xf]  ;;  %v5315_v38 = vor.u32 %v7814_v30, %v5314_v29 }
  0x44   :  { %610 = vmatpush.bf16.msrb.mxu2 %v5483_v43  ;;  %579 = vmatmul.bf16.vlgmr.msra.gmra.mxu3 %v8724_v48  ;;  %v5316_v33 = vld [vmem:[#allocation5 + $0xb0] sm:$0xf0]  ;;  %v7815_v35 = vld [vmem:[#allocation5 + $0xb4] sm:$0xf0]  ;;  %v5324_v37 = vld [vmem:[#allocation5 + $0xb8] sm:$0xf0] }
  0x45   :  { %623 = vmatpush.bf16.msrb.mxu3 %v5487_v47  ;;  %566 = vmatmul.bf16.vlgmr.msra.gmra.mxu2 %v8724_v48  ;;  %v5319_v39 = vor.u32 %v7810_v31, %v5316_v33  ;;  %v5323_v40 = vor.u32 %v7815_v35, %v5322_v34  ;;  %v5282_v41 = vld [vmem:[#allocation5 + $0x50] sm:$0xf]  ;;  %v7802_v43 = vld [vmem:[#allocation5 + $0x54] sm:$0xf]  ;;  %v5327_v44 = vor.u32 %v7811_v36, %v5324_v37  ;;  %v5290_v46 = vld [vmem:[#allocation5 + $0x58] sm:$0xf] }
  0x46   :  { %v7806_v42 = vld [vmem:[#allocation5 + $0x6c] sm:$0xf0]  ;;  %v5284_v45 = vld [vmem:[#allocation5 + $0x70] sm:$0xf0]  ;;  %v7807_v47 = vld [vmem:[#allocation5 + $0x74] sm:$0xf0] }
  0x47   :  { %585 = vmatpush.bf16.msrb.mxu0 %v5443_v54  ;;  %598 = vmatpush.bf16.msrb.mxu1 %v5447_v55  ;;  %v7803_v49 = vld [vmem:[#allocation5 + $0x5c] sm:$0xf]  ;;  %v5283_v51 = vor.u32 %v7806_v42, %v5282_v41  ;;  %v5250_v52 = vld [vmem:[#allocation5 + $0x10] sm:$0xf]  ;;  %v5287_v53 = vor.u32 %v7802_v43, %v5284_v45  ;;  %v5291_v54 = vor.u32 %v7807_v47, %v5290_v46  ;;  %v5252_v57 = vld [vmem:[#allocation5 + $0x30] sm:$0xf0] }
  0x48   :  { %611 = vmatpush.bf16.msrb.mxu2 %v5451_v56  ;;  %v5292_v50 = vld [vmem:[#allocation5 + $0x78] sm:$0xf0]  ;;  %v7798_v55 = vld [vmem:[#allocation5 + $0x2c] sm:$0xf0]  ;;  %v7794_v56 = vld [vmem:[#allocation5 + $0x14] sm:$0xf] }
  0x49   :  { %624 = vmatpush.bf16.msrb.mxu3 %v5455_v60  ;;  %v5295_v58 = vor.u32 %v7803_v49, %v5292_v50  ;;  %v5258_v59 = vld [vmem:[#allocation5 + $0x18] sm:$0xf]  ;;  %v7795_v61 = vld [vmem:[#allocation5 + $0x1c] sm:$0xf]  ;;  %v5714_v63 = vld [vmem:[#allocation8 + $0x1c0] sm:$0xf]  ;;  %v5251_v1 = vor.u32 %v7798_v55, %v5250_v52 }
  0x4a   :  { %v7799_v60 = vld [vmem:[#allocation5 + $0x34] sm:$0xf0]  ;;  %v5260_v62 = vld [vmem:[#allocation5 + $0x38] sm:$0xf0]  ;;  %v7916_v0 = vld [vmem:[#allocation8 + $0x1dc] sm:$0xf0] }
  0x4b   :  { %586 = vmatpush.bf16.msrb.mxu0 %v5411_v2  ;;  %599 = vmatpush.bf16.msrb.mxu1 %v5415_v3  ;;  %v5970_v2 = vld [vmem:[#allocation8 + $0x3c0] sm:$0xf]  ;;  %v5259_v5 = vor.u32 %v7799_v60, %v5258_v59  ;;  %v5263_v6 = vor.u32 %v7795_v61, %v5260_v62  ;;  %v5715_v7 = vor.u32 %v7916_v0, %v5714_v63  ;;  %s5217_s6 = sshll.u32 %s8662_s4, 4  ;;  %s5219_s14 = sshll.u32 %s8899_s7, 4  ;;  %s5218_s6 = int_to_ptr.vmem [resolvable:$true] %s5217_s6  ;;  %s5220_s14 = int_to_ptr.hbm [resolvable:$true] %s5219_s14 }
  0x4c   :  { %612 = vmatpush.bf16.msrb.mxu2 %v5419_v4  ;;  %v7980_v3 = vld [vmem:[#allocation8 + $0x3dc] sm:$0xf0]  ;;  %v5255_v4 = vor.u32 %v7794_v56, %v5252_v57 }
  0x4d   :  { %625 = vmatpush.bf16.msrb.mxu3 %v5423_v8  ;;  %v5682_v8 = vld [vmem:[#allocation8 + $0x180] sm:$0xf]  ;;  %v5971_v11 = vor.u32 %v7980_v3, %v5970_v2 }
  0x4e   :  { %v6226_v9 = vld [vmem:[#allocation8 + $0x5c0] sm:$0xf] }
  0x4f   :  { %587 = vmatpush.bf16.msrb.mxu0 %v5379_v14  ;;  %600 = vmatpush.bf16.msrb.mxu1 %v5383_v15  ;;  %v8044_v10 = vld [vmem:[#allocation8 + $0x5dc] sm:$0xf0] }
  0x50   :  { %613 = vmatpush.bf16.msrb.mxu2 %v5387_v16  ;;  %v7908_v12 = vld [vmem:[#allocation8 + $0x19c] sm:$0xf0]  ;;  %v6227_v17 = vor.u32 %v8044_v10, %v6226_v9 }
  0x51   :  { %626 = vmatpush.bf16.msrb.mxu3 %v5391_v20  ;;  %v6482_v13 = vld [vmem:[#allocation8 + $0x7c0] sm:$0xf]  ;;  %v5683_v18 = vor.u32 %v7908_v12, %v5682_v8 }
  0x52   :  { %v8108_v14 = vld [vmem:[#allocation8 + $0x7dc] sm:$0xf0] }
  0x53   :  { %588 = vmatpush.bf16.msrb.mxu0 %v5347_v26  ;;  %601 = vmatpush.bf16.msrb.mxu1 %v5351_v27  ;;  %v5938_v15 = vld [vmem:[#allocation8 + $0x380] sm:$0xf]  ;;  %v6483_v19 = vor.u32 %v8108_v14, %v6482_v13 }
  0x54   :  { %614 = vmatpush.bf16.msrb.mxu2 %v5355_v28  ;;  %v7972_v16 = vld [vmem:[#allocation8 + $0x39c] sm:$0xf0] }
  0x55   :  { %627 = vmatpush.bf16.msrb.mxu3 %v5359_v32  ;;  %v5650_v20 = vld [vmem:[#allocation8 + $0x140] sm:$0xf]  ;;  %v5939_v23 = vor.u32 %v7972_v16, %v5938_v15 }
  0x56   :  { %v6194_v21 = vld [vmem:[#allocation8 + $0x580] sm:$0xf] }
  0x57   :  { %589 = vmatpush.bf16.msrb.mxu0 %v5315_v38  ;;  %602 = vmatpush.bf16.msrb.mxu1 %v5319_v39  ;;  %v8036_v22 = vld [vmem:[#allocation8 + $0x59c] sm:$0xf0] }
  0x58   :  { %615 = vmatpush.bf16.msrb.mxu2 %v5323_v40  ;;  %v7900_v24 = vld [vmem:[#allocation8 + $0x15c] sm:$0xf0]  ;;  %v6195_v29 = vor.u32 %v8036_v22, %v6194_v21 }
  0x59   :  { %628 = vmatpush.bf16.msrb.mxu3 %v5327_v44  ;;  %v6450_v25 = vld [vmem:[#allocation8 + $0x780] sm:$0xf]  ;;  %v5651_v30 = vor.u32 %v7900_v24, %v5650_v20 }
  0x5a   :  { %v8100_v26 = vld [vmem:[#allocation8 + $0x79c] sm:$0xf0] }
  0x5b   :  { %590 = vmatpush.bf16.msrb.mxu0 %v5283_v51  ;;  %603 = vmatpush.bf16.msrb.mxu1 %v5287_v53  ;;  %v5906_v27 = vld [vmem:[#allocation8 + $0x340] sm:$0xf]  ;;  %v6451_v31 = vor.u32 %v8100_v26, %v6450_v25 }
  0x5c   :  { %616 = vmatpush.bf16.msrb.mxu2 %v5291_v54  ;;  %v7964_v28 = vld [vmem:[#allocation8 + $0x35c] sm:$0xf0] }
  0x5d   :  { %629 = vmatpush.bf16.msrb.mxu3 %v5295_v58  ;;  %v5618_v32 = vld [vmem:[#allocation8 + $0x100] sm:$0xf]  ;;  %v5907_v35 = vor.u32 %v7964_v28, %v5906_v27 }
  0x5e   :  { %v6162_v33 = vld [vmem:[#allocation8 + $0x540] sm:$0xf] }
  0x5f   :  { %591 = vmatpush.bf16.msrb.mxu0 %v5251_v1  ;;  %604 = vmatpush.bf16.msrb.mxu1 %v5255_v4  ;;  %v8028_v34 = vld [vmem:[#allocation8 + $0x55c] sm:$0xf0] }
  0x60   :  { %617 = vmatpush.bf16.msrb.mxu2 %v5259_v5  ;;  %v7892_v36 = vld [vmem:[#allocation8 + $0x11c] sm:$0xf0]  ;;  %v6163_v41 = vor.u32 %v8028_v34, %v6162_v33 }
  0x61   :  { %630 = vmatpush.bf16.msrb.mxu3 %v5263_v6  ;;  %v6418_v37 = vld [vmem:[#allocation8 + $0x740] sm:$0xf] }
  0x62   :  { %592 = vmatmul.bf16.vlgmr.msrb.gmra.mxu0 %v8724_v48  ;;  %605 = vmatmul.bf16.vlgmr.msrb.gmra.mxu1 %v8724_v48  ;;  %v8092_v38 = vld [vmem:[#allocation8 + $0x75c] sm:$0xf0] }
  0x63   :  { %3742 = vmatpush.bf16.msra.mxu0 %v5715_v7  ;;  %3755 = vmatpush.bf16.msra.mxu1 %v5971_v11  ;;  %v5874_v39 = vld [vmem:[#allocation8 + $0x300] sm:$0xf]  ;;  %v6419_v43 = vor.u32 %v8092_v38, %v6418_v37 }
  0x64   :  { %618 = vmatmul.bf16.vlgmr.msrb.gmra.mxu2 %v8724_v48  ;;  %631 = vmatmul.bf16.vlgmr.msrb.gmra.mxu3 %v8724_v48  ;;  %v7956_v40 = vld [vmem:[#allocation8 + $0x31c] sm:$0xf0]  ;;  %v5619_v48 = vor.u32 %v7892_v36, %v5618_v32 }
  0x65   :  { %3768 = vmatpush.bf16.msra.mxu2 %v6227_v17  ;;  %3781 = vmatpush.bf16.msra.mxu3 %v6483_v19  ;;  %v5586_v42 = vld [vmem:[#allocation8 + $0xc0] sm:$0xf]  ;;  %v5875_v46 = vor.u32 %v7956_v40, %v5874_v39 }
  0x66   :  { %v6130_v44 = vld [vmem:[#allocation8 + $0x500] sm:$0xf] }
  0x67   :  { %3743 = vmatpush.bf16.msra.mxu0 %v5683_v18  ;;  %3756 = vmatpush.bf16.msra.mxu1 %v5939_v23  ;;  %v8020_v45 = vld [vmem:[#allocation8 + $0x51c] sm:$0xf0] }
  0x68   :  { %v7884_v47 = vld [vmem:[#allocation8 + $0xdc] sm:$0xf0]  ;;  %v6131_v53 = vor.u32 %v8020_v45, %v6130_v44 }
  0x69   :  { %3769 = vmatpush.bf16.msra.mxu2 %v6195_v29  ;;  %3782 = vmatpush.bf16.msra.mxu3 %v6451_v31  ;;  %v6386_v49 = vld [vmem:[#allocation8 + $0x700] sm:$0xf]  ;;  %v5587_v54 = vor.u32 %v7884_v47, %v5586_v42 }
  0x6a   :  { %v8084_v50 = vld [vmem:[#allocation8 + $0x71c] sm:$0xf0] }
  0x6b   :  { %3744 = vmatpush.bf16.msra.mxu0 %v5651_v30  ;;  %3757 = vmatpush.bf16.msra.mxu1 %v5907_v35  ;;  %v5842_v51 = vld [vmem:[#allocation8 + $0x2c0] sm:$0xf]  ;;  %v6387_v55 = vor.u32 %v8084_v50, %v6386_v49 }
  0x6c   :  { %v7948_v52 = vld [vmem:[#allocation8 + $0x2dc] sm:$0xf0] }
  0x6d   :  { %3770 = vmatpush.bf16.msra.mxu2 %v6163_v41  ;;  %3783 = vmatpush.bf16.msra.mxu3 %v6419_v43  ;;  %v5554_v56 = vld [vmem:[#allocation8 + $0x80] sm:$0xf]  ;;  %v5843_v59 = vor.u32 %v7948_v52, %v5842_v51 }
  0x6e   :  { %v6098_v57 = vld [vmem:[#allocation8 + $0x4c0] sm:$0xf] }
  0x6f   :  { %3745 = vmatpush.bf16.msra.mxu0 %v5619_v48  ;;  %v8012_v58 = vld [vmem:[#allocation8 + $0x4dc] sm:$0xf0]  ;;  %3758 = vmatpush.bf16.msra.mxu1 %v5875_v46 }
  0x70   :  { %v7876_v60 = vld [vmem:[#allocation8 + $0x9c] sm:$0xf0]  ;;  %v6099_v1 = vor.u32 %v8012_v58, %v6098_v57 }
  0x71   :  { %v6354_v61 = vld [vmem:[#allocation8 + $0x6c0] sm:$0xf]  ;;  %3771 = vmatpush.bf16.msra.mxu2 %v6131_v53  ;;  %3784 = vmatpush.bf16.msra.mxu3 %v6387_v55  ;;  %v5555_v2 = vor.u32 %v7876_v60, %v5554_v56 }
  0x72   :  { %v8076_v62 = vld [vmem:[#allocation8 + $0x6dc] sm:$0xf0] }
  0x73   :  { %v5810_v63 = vld [vmem:[#allocation8 + $0x280] sm:$0xf]  ;;  %3746 = vmatpush.bf16.msra.mxu0 %v5587_v54  ;;  %v6355_v3 = vor.u32 %v8076_v62, %v6354_v61  ;;  %3759 = vmatpush.bf16.msra.mxu1 %v5843_v59 }
  0x74   :  { %v7940_v0 = vld [vmem:[#allocation8 + $0x29c] sm:$0xf0] }
  0x75   :  { %v5522_v4 = vld [vmem:[#allocation8 + $0x40] sm:$0xf]  ;;  %v5811_v7 = vor.u32 %v7940_v0, %v5810_v63  ;;  %3772 = vmatpush.bf16.msra.mxu2 %v6099_v1  ;;  %3785 = vmatpush.bf16.msra.mxu3 %v6355_v3 }
  0x76   :  { %v6066_v5 = vld [vmem:[#allocation8 + $0x480] sm:$0xf] }
  0x77   :  { %v8004_v6 = vld [vmem:[#allocation8 + $0x49c] sm:$0xf0]  ;;  %3747 = vmatpush.bf16.msra.mxu0 %v5555_v2  ;;  %3760 = vmatpush.bf16.msra.mxu1 %v5811_v7 }
  0x78   :  { %v7868_v8 = vld [vmem:[#allocation8 + $0x5c] sm:$0xf0]  ;;  %v6067_v13 = vor.u32 %v8004_v6, %v6066_v5 }
  0x79   :  { %v6322_v9 = vld [vmem:[#allocation8 + $0x680] sm:$0xf]  ;;  %v5523_v15 = vor.u32 %v7868_v8, %v5522_v4 }
  0x7a   :  { %v8068_v10 = vld [vmem:[#allocation8 + $0x69c] sm:$0xf0]  ;;  %3773 = vmatpush.bf16.msra.mxu2 %v6067_v13 }
  0x7b   :  { %v5778_v11 = vld [vmem:[#allocation8 + $0x240] sm:$0xf]  ;;  %v6323_v16 = vor.u32 %v8068_v10, %v6322_v9  ;;  %3748 = vmatpush.bf16.msra.mxu0 %v5523_v15 }
  0x7c   :  { %v7932_v12 = vld [vmem:[#allocation8 + $0x25c] sm:$0xf0] }
  0x7d   :  { %v5490_v14 = vld [vmem:[#allocation8] sm:$0xf]  ;;  %v5779_v20 = vor.u32 %v7932_v12, %v5778_v11  ;;  %3786 = vmatpush.bf16.msra.mxu3 %v6323_v16 }
  0x7e   :  { %v7860_v17 = vld [vmem:[#allocation8 + $0x1c] sm:$0xf0] }
  0x7f   :  { %v6034_v18 = vld [vmem:[#allocation8 + $0x440] sm:$0xf]  ;;  %v5491_v30 = vor.u32 %v7860_v17, %v5490_v14  ;;  %3761 = vmatpush.bf16.msra.mxu1 %v5779_v20 }
  0x80   :  { %v7996_v19 = vld [vmem:[#allocation8 + $0x45c] sm:$0xf0] }
  0x81   :  { %v5746_v21 = vld [vmem:[#allocation8 + $0x200] sm:$0xf]  ;;  %v6035_v29 = vor.u32 %v7996_v19, %v6034_v18  ;;  %3749 = vmatpush.bf16.msra.mxu0 %v5491_v30 }
  0x82   :  { %v6290_v22 = vld [vmem:[#allocation8 + $0x640] sm:$0xf] }
  0x83   :  { %v8060_v23 = vld [vmem:[#allocation8 + $0x65c] sm:$0xf0]  ;;  %3774 = vmatpush.bf16.msra.mxu2 %v6035_v29 }
  0x84   :  { %v7924_v24 = vld [vmem:[#allocation8 + $0x21c] sm:$0xf0]  ;;  %v6291_v31 = vor.u32 %v8060_v23, %v6290_v22 }
  0x85   :  { %v6738_v25 = vld [vmem:[#allocation8 + $0x9c0] sm:$0xf]  ;;  %v5747_v36 = vor.u32 %v7924_v24, %v5746_v21 }
  0x86   :  { %v8172_v26 = vld [vmem:[#allocation8 + $0x9dc] sm:$0xf0]  ;;  %3787 = vmatpush.bf16.msra.mxu3 %v6291_v31 }
  0x87   :  { %v6994_v27 = vld [vmem:[#allocation8 + $0xbc0] sm:$0xf]  ;;  %v6739_v37 = vor.u32 %v8172_v26, %v6738_v25  ;;  %3762 = vmatpush.bf16.msra.mxu1 %v5747_v36 }
  0x88   :  { %v8236_v28 = vld [vmem:[#allocation8 + $0xbdc] sm:$0xf0] }
  0x89   :  { %v6706_v32 = vld [vmem:[#allocation8 + $0x980] sm:$0xf]  ;;  %v6995_v41 = vor.u32 %v8236_v28, %v6994_v27  ;;  %3794 = vmatpush.bf16.msrb.mxu0 %v6739_v37 }
  0x8a   :  { %v6002_v33 = vld [vmem:[#allocation8 + $0x400] sm:$0xf] }
  0x8b   :  { %v7988_v34 = vld [vmem:[#allocation8 + $0x41c] sm:$0xf0]  ;;  %3807 = vmatpush.bf16.msrb.mxu1 %v6995_v41 }
  0x8c   :  { %v6258_v35 = vld [vmem:[#allocation8 + $0x600] sm:$0xf]  ;;  %v6003_v46 = vor.u32 %v7988_v34, %v6002_v33 }
  0x8d   :  { %v8052_v38 = vld [vmem:[#allocation8 + $0x61c] sm:$0xf0] }
  0x8e   :  { %v7250_v39 = vld [vmem:[#allocation8 + $0xdc0] sm:$0xf]  ;;  %v6259_v47 = vor.u32 %v8052_v38, %v6258_v35  ;;  %3775 = vmatpush.bf16.msra.mxu2 %v6003_v46 }
  0x8f   :  { %v8300_v40 = vld [vmem:[#allocation8 + $0xddc] sm:$0xf0] }
  0x90   :  { %v8164_v42 = vld [vmem:[#allocation8 + $0x99c] sm:$0xf0]  ;;  %v7251_v49 = vor.u32 %v8300_v40, %v7250_v39  ;;  %3788 = vmatpush.bf16.msra.mxu3 %v6259_v47 }
  0x91   :  { %v7506_v48 = vld [vmem:[#allocation8 + $0xfc0] sm:$0xf]  ;;  %v6707_v50 = vor.u32 %v8164_v42, %v6706_v32 }
  0x92   :  { %v8364_v43 = vld [vmem:[#allocation8 + $0xfdc] sm:$0xf0]  ;;  %3820 = vmatpush.bf16.msrb.mxu2 %v7251_v49 }
  0x93   :  { %v6962_v44 = vld [vmem:[#allocation8 + $0xb80] sm:$0xf]  ;;  %v7507_v51 = vor.u32 %v8364_v43, %v7506_v48  ;;  %3795 = vmatpush.bf16.msrb.mxu0 %v6707_v50 }
  0x94   :  { %v8228_v45 = vld [vmem:[#allocation8 + $0xb9c] sm:$0xf0] }
  0x95   :  { %v6674_v52 = vld [vmem:[#allocation8 + $0x940] sm:$0xf]  ;;  %v6963_v55 = vor.u32 %v8228_v45, %v6962_v44  ;;  %3833 = vmatpush.bf16.msrb.mxu3 %v7507_v51 }
  0x96   :  { %v7218_v53 = vld [vmem:[#allocation8 + $0xd80] sm:$0xf] }
  0x97   :  { %v8292_v54 = vld [vmem:[#allocation8 + $0xd9c] sm:$0xf0]  ;;  %3808 = vmatpush.bf16.msrb.mxu1 %v6963_v55 }
  0x98   :  { %v8156_v56 = vld [vmem:[#allocation8 + $0x95c] sm:$0xf0]  ;;  %v7219_v61 = vor.u32 %v8292_v54, %v7218_v53 }
  0x99   :  { %v7474_v57 = vld [vmem:[#allocation8 + $0xf80] sm:$0xf]  ;;  %v6675_v62 = vor.u32 %v8156_v56, %v6674_v52 }
  0x9a   :  { %v8356_v58 = vld [vmem:[#allocation8 + $0xf9c] sm:$0xf0]  ;;  %3821 = vmatpush.bf16.msrb.mxu2 %v7219_v61 }
  0x9b   :  { %v6930_v59 = vld [vmem:[#allocation8 + $0xb40] sm:$0xf]  ;;  %v7475_v63 = vor.u32 %v8356_v58, %v7474_v57  ;;  %3796 = vmatpush.bf16.msrb.mxu0 %v6675_v62 }
  0x9c   :  { %v8220_v60 = vld [vmem:[#allocation8 + $0xb5c] sm:$0xf0] }
  0x9d   :  { %v6642_v0 = vld [vmem:[#allocation8 + $0x900] sm:$0xf]  ;;  %v6931_v3 = vor.u32 %v8220_v60, %v6930_v59  ;;  %3834 = vmatpush.bf16.msrb.mxu3 %v7475_v63 }
  0x9e   :  { %v7186_v1 = vld [vmem:[#allocation8 + $0xd40] sm:$0xf] }
  0x9f   :  { %v8284_v2 = vld [vmem:[#allocation8 + $0xd5c] sm:$0xf0]  ;;  %3809 = vmatpush.bf16.msrb.mxu1 %v6931_v3  ;;  %v8734_v3 = vld [vmem:[#allocation7] sm:$0xff] }
  0xa0   :  { %v8148_v4 = vld [vmem:[#allocation8 + $0x91c] sm:$0xf0]  ;;  %v7187_v9 = vor.u32 %v8284_v2, %v7186_v1 }
  0xa1   :  { %v7442_v5 = vld [vmem:[#allocation8 + $0xf40] sm:$0xf]  ;;  %v6643_v10 = vor.u32 %v8148_v4, %v6642_v0  ;;  %v196_v4 = vperm.slane %v8734_v3, 0 }
  0xa2   :  { %v8348_v6 = vld [vmem:[#allocation8 + $0xf5c] sm:$0xf0]  ;;  %3822 = vmatpush.bf16.msrb.mxu2 %v7187_v9  ;;  %v7912_v9 = vld [vmem:[#allocation8 + $0x1c4] sm:$0xf] }
  0xa3   :  { %v6898_v7 = vld [vmem:[#allocation8 + $0xb00] sm:$0xf]  ;;  %v7443_v11 = vor.u32 %v8348_v6, %v7442_v5  ;;  %3797 = vmatpush.bf16.msrb.mxu0 %v6643_v10  ;;  %v197_v5 = vperm.slane %v8734_v3, 1  ;;  %v5716_v10 = vld [vmem:[#allocation8 + $0x1e0] sm:$0xf0] }
  0xa4   :  { %v8212_v8 = vld [vmem:[#allocation8 + $0xb1c] sm:$0xf0] }
  0xa5   :  { %v6610_v12 = vld [vmem:[#allocation8 + $0x8c0] sm:$0xf]  ;;  %v6899_v15 = vor.u32 %v8212_v8, %v6898_v7  ;;  %3835 = vmatpush.bf16.msrb.mxu3 %v7443_v11 }
  0xa6   :  { %v7154_v13 = vld [vmem:[#allocation8 + $0xd00] sm:$0xf] }
  0xa7   :  { %v8276_v14 = vld [vmem:[#allocation8 + $0xd1c] sm:$0xf0]  ;;  %3810 = vmatpush.bf16.msrb.mxu1 %v6899_v15 }
  0xa8   :  { %v8140_v16 = vld [vmem:[#allocation8 + $0x8dc] sm:$0xf0]  ;;  %v7155_v21 = vor.u32 %v8276_v14, %v7154_v13  ;;  %v5972_v13 = vld [vmem:[#allocation8 + $0x3e0] sm:$0xf0] }
  0xa9   :  { %v7410_v17 = vld [vmem:[#allocation8 + $0xf00] sm:$0xf]  ;;  %v6611_v22 = vor.u32 %v8140_v16, %v6610_v12  ;;  %v7976_v12 = vld [vmem:[#allocation8 + $0x3c4] sm:$0xf]  ;;  %v198_v16 = vperm.slane %v8734_v3, 2 }
  0xaa   :  { %v8340_v18 = vld [vmem:[#allocation8 + $0xf1c] sm:$0xf0]  ;;  %3823 = vmatpush.bf16.msrb.mxu2 %v7155_v21  ;;  %v7904_v21 = vld [vmem:[#allocation8 + $0x184] sm:$0xf] }
  0xab   :  { %v6866_v19 = vld [vmem:[#allocation8 + $0xac0] sm:$0xf]  ;;  %v7411_v23 = vor.u32 %v8340_v18, %v7410_v17  ;;  %3798 = vmatpush.bf16.msrb.mxu0 %v6611_v22  ;;  %v5719_v17 = vor.u32 %v7912_v9, %v5716_v10  ;;  %v5684_v22 = vld [vmem:[#allocation8 + $0x1a0] sm:$0xf0] }
  0xac   :  { %v8204_v20 = vld [vmem:[#allocation8 + $0xadc] sm:$0xf0] }
  0xad   :  { %v6867_v24 = vor.u32 %v8204_v20, %v6866_v19  ;;  %v6578_v25 = vld [vmem:[#allocation8 + $0x880] sm:$0xf]  ;;  %3836 = vmatpush.bf16.msrb.mxu3 %v7411_v23  ;;  %v199_v19 = vperm.slane %v8734_v3, 3  ;;  %v5975_v20 = vor.u32 %v7976_v12, %v5972_v13  ;;  %v8016_v12 = vld [vmem:[#allocation8 + $0x504] sm:$0xf] }
  0xae   :  { %v8132_v26 = vld [vmem:[#allocation8 + $0x89c] sm:$0xf0]  ;;  %v6132_v13 = vld [vmem:[#allocation8 + $0x520] sm:$0xf0] }
  0xaf   :  { %v6834_v27 = vld [vmem:[#allocation8 + $0xa80] sm:$0xf]  ;;  %v6579_v29 = vor.u32 %v8132_v26, %v6578_v25  ;;  %3811 = vmatpush.bf16.msrb.mxu1 %v6867_v24  ;;  %v7968_v24 = vld [vmem:[#allocation8 + $0x384] sm:$0xf] }
  0xb0   :  { %v8196_v28 = vld [vmem:[#allocation8 + $0xa9c] sm:$0xf0]  ;;  %v5940_v25 = vld [vmem:[#allocation8 + $0x3a0] sm:$0xf0] }
  0xb1   :  { %v6835_v30 = vor.u32 %v8196_v28, %v6834_v27  ;;  %3799 = vmatpush.bf16.msrb.mxu0 %v6579_v29  ;;  %v7122_v31 = vld [vmem:[#allocation8 + $0xcc0] sm:$0xf] }
  0xb2   :  { %v8268_v32 = vld [vmem:[#allocation8 + $0xcdc] sm:$0xf0] }
  0xb3   :  { %3812 = vmatpush.bf16.msrb.mxu1 %v6835_v30  ;;  %v7378_v33 = vld [vmem:[#allocation8 + $0xec0] sm:$0xf]  ;;  %v7123_v34 = vor.u32 %v8268_v32, %v7122_v31  ;;  %v5687_v30 = vor.u32 %v7904_v21, %v5684_v22  ;;  %v8040_v31 = vld [vmem:[#allocation8 + $0x5c4] sm:$0xf]  ;;  %v6135_v22 = vor.u32 %v8016_v12, %v6132_v13 }
  0xb4   :  { %v8332_v35 = vld [vmem:[#allocation8 + $0xedc] sm:$0xf0]  ;;  %v6228_v32 = vld [vmem:[#allocation8 + $0x5e0] sm:$0xf0] }
  0xb5   :  { %v7379_v36 = vor.u32 %v8332_v35, %v7378_v33  ;;  %v6546_v37 = vld [vmem:[#allocation8 + $0x840] sm:$0xf]  ;;  %3824 = vmatpush.bf16.msrb.mxu2 %v7123_v34  ;;  %v8104_v33 = vld [vmem:[#allocation8 + $0x7c4] sm:$0xf] }
  0xb6   :  { %v8124_v38 = vld [vmem:[#allocation8 + $0x85c] sm:$0xf0]  ;;  %v5812_v21 = vld [vmem:[#allocation8 + $0x2a0] sm:$0xf0] }
  0xb7   :  { %v6547_v39 = vor.u32 %v8124_v38, %v6546_v37  ;;  %v6802_v40 = vld [vmem:[#allocation8 + $0xa40] sm:$0xf]  ;;  %3837 = vmatpush.bf16.msrb.mxu3 %v7379_v36  ;;  %v5943_v36 = vor.u32 %v7968_v24, %v5940_v25  ;;  %v6484_v37 = vld [vmem:[#allocation8 + $0x7e0] sm:$0xf0] }
  0xb8   :  { %v8188_v41 = vld [vmem:[#allocation8 + $0xa5c] sm:$0xf0]  ;;  %v7896_v38 = vld [vmem:[#allocation8 + $0x144] sm:$0xf] }
  0xb9   :  { %v6803_v42 = vor.u32 %v8188_v41, %v6802_v40  ;;  %v7090_v48 = vld [vmem:[#allocation8 + $0xc80] sm:$0xf]  ;;  %3800 = vmatpush.bf16.msrb.mxu0 %v6547_v39  ;;  %v5652_v39 = vld [vmem:[#allocation8 + $0x160] sm:$0xf0] }
  0xba   :  { %v8260_v43 = vld [vmem:[#allocation8 + $0xc9c] sm:$0xf0]  ;;  %v7960_v41 = vld [vmem:[#allocation8 + $0x344] sm:$0xf] }
  0xbb   :  { %v7346_v44 = vld [vmem:[#allocation8 + $0xe80] sm:$0xf]  ;;  %v7091_v45 = vor.u32 %v8260_v43, %v7090_v48  ;;  %3813 = vmatpush.bf16.msrb.mxu1 %v6803_v42  ;;  %v5908_v42 = vld [vmem:[#allocation8 + $0x360] sm:$0xf0]  ;;  %v6231_v43 = vor.u32 %v8040_v31, %v6228_v32 }
  0xbc   :  { %v8324_v46 = vld [vmem:[#allocation8 + $0xe9c] sm:$0xf0]  ;;  %v7864_v31 = vld [vmem:[#allocation8 + $0x44] sm:$0xf] }
  0xbd   :  { %v7347_v47 = vor.u32 %v8324_v46, %v7346_v44  ;;  %v6514_v49 = vld [vmem:[#allocation8 + $0x800] sm:$0xf]  ;;  %3825 = vmatpush.bf16.msrb.mxu2 %v7091_v45  ;;  %v6487_v45 = vor.u32 %v8104_v33, %v6484_v37  ;;  %v5655_v46 = vor.u32 %v7896_v38, %v5652_v39  ;;  %v5524_v32 = vld [vmem:[#allocation8 + $0x60] sm:$0xf0]  ;;  %v200_v33 = vperm.slane %v8734_v3, 4 }
  0xbe   :  { %v8116_v50 = vld [vmem:[#allocation8 + $0x81c] sm:$0xf0]  ;;  %v5527_v39 = vor.u32 %v7864_v31, %v5524_v32  ;;  %v8160_v13 = vld [vmem:[#allocation8 + $0x984] sm:$0xf] }
  0xbf   :  { %v6770_v51 = vld [vmem:[#allocation8 + $0xa00] sm:$0xf]  ;;  %v6515_v52 = vor.u32 %v8116_v50, %v6514_v49  ;;  %3838 = vmatpush.bf16.msrb.mxu3 %v7347_v47  ;;  %v541_v6 = vpop.f32.mrf.mxu0  ;;  %v554_v8 = vpop.f32.mrf.mxu1  ;;  %v8032_v47 = vld [vmem:[#allocation8 + $0x584] sm:$0xf] }
  0xc0   :  { %v8180_v53 = vld [vmem:[#allocation8 + $0xa1c] sm:$0xf0]  ;;  %v542_v7 = vadd.f32 %v541_v6, %v196_v4  ;;  %v555_v11 = vadd.f32 %v554_v8, %v197_v5  ;;  %v6196_v49 = vld [vmem:[#allocation8 + $0x5a0] sm:$0xf0] }
  0xc1   :  { %v6771_v54 = vor.u32 %v8180_v53, %v6770_v51  ;;  %3801 = vmatpush.bf16.msrb.mxu0 %v6515_v52  ;;  %v7058_v55 = vld [vmem:[#allocation8 + $0xc40] sm:$0xf]  ;;  %v8096_v50 = vld [vmem:[#allocation8 + $0x784] sm:$0xf]  ;;  %v5911_v52 = vor.u32 %v7960_v41, %v5908_v42 }
  0xc2   :  { %v8252_v56 = vld [vmem:[#allocation8 + $0xc5c] sm:$0xf0]  ;;  %v636_v14 = vmax.f32 %v542_v7, 0.0  ;;  %v637_v15 = vmax.f32 %v555_v11, 0.0  ;;  %v6452_v53 = vld [vmem:[#allocation8 + $0x7a0] sm:$0xf0] }
  0xc3   :  { %3814 = vmatpush.bf16.msrb.mxu1 %v6771_v54  ;;  %v7059_v57 = vor.u32 %v8252_v56, %v7058_v55  ;;  %v7314_v58 = vld [vmem:[#allocation8 + $0xe40] sm:$0xf]  ;;  %v7888_v54 = vld [vmem:[#allocation8 + $0x104] sm:$0xf] }
  0xc4   :  { %v8316_v59 = vld [vmem:[#allocation8 + $0xe5c] sm:$0xf0]  ;;  %v8739_v18 = vpack.c.bf16 %v636_v14, %v636_v14  ;;  %v8742_v23 = vpack.c.bf16 %v637_v15, %v637_v15  ;;  %v5620_v55 = vld [vmem:[#allocation8 + $0x120] sm:$0xf0] }
  0xc5   :  { %v7315_v60 = vor.u32 %v8316_v59, %v7314_v58  ;;  %3826 = vmatpush.bf16.msrb.mxu2 %v7059_v57  ;;  %v7026_v61 = vld [vmem:[#allocation8 + $0xc00] sm:$0xf]  ;;  %v7952_v56 = vld [vmem:[#allocation8 + $0x304] sm:$0xf]  ;;  %v6199_v59 = vor.u32 %v8032_v47, %v6196_v49 }
  0xc6   :  { %v8244_v62 = vld [vmem:[#allocation8 + $0xc1c] sm:$0xf0]  ;;  %3750 = vmatmul.bf16.vlgmr.msra.gmra.mxu0 %v8739_v18  ;;  %3763 = vmatmul.bf16.vlgmr.msra.gmra.mxu1 %v8742_v23  ;;  %v5876_v57 = vld [vmem:[#allocation8 + $0x320] sm:$0xf0] }
  0xc7   :  { %3839 = vmatpush.bf16.msrb.mxu3 %v7315_v60  ;;  %v7027_v63 = vor.u32 %v8244_v62, %v7026_v61  ;;  %v7282_v0 = vld [vmem:[#allocation8 + $0xe00] sm:$0xf]  ;;  %v580_v28 = vpop.f32.mrf.mxu3  ;;  %3846 = vmatpush.bf16.msra.mxu0 %v5719_v17  ;;  %v543_v29 = vpop.f32.mrf.mxu0  ;;  %v6455_v61 = vor.u32 %v8096_v50, %v6452_v53  ;;  %v5623_v62 = vor.u32 %v7888_v54, %v5620_v55  ;;  %v6420_v4 = vld [vmem:[#allocation8 + $0x760] sm:$0xf0] }
  0xc8   :  { %v8308_v1 = vld [vmem:[#allocation8 + $0xe1c] sm:$0xf0]  ;;  %v567_v26 = vpop.f32.mrf.mxu2  ;;  %v581_v34 = vadd.f32 %v580_v28, %v199_v19  ;;  %3859 = vmatpush.bf16.msra.mxu1 %v5975_v20  ;;  %v556_v35 = vpop.f32.mrf.mxu1  ;;  %v7880_v5 = vld [vmem:[#allocation8 + $0xc4] sm:$0xf] }
  0xc9   :  { %v7283_v2 = vor.u32 %v8308_v1, %v7282_v0  ;;  %3827 = vmatpush.bf16.msrb.mxu2 %v7027_v63  ;;  %v568_v27 = vadd.f32 %v567_v26, %v198_v16  ;;  %v8024_v63 = vld [vmem:[#allocation8 + $0x544] sm:$0xf] }
  0xca   :  { %v639_v48 = vmax.f32 %v581_v34, 0.0  ;;  %v6164_v0 = vld [vmem:[#allocation8 + $0x560] sm:$0xf0] }
  0xcb   :  { %3840 = vmatpush.bf16.msrb.mxu3 %v7283_v2  ;;  %v638_v40 = vmax.f32 %v568_v27, 0.0  ;;  %3847 = vmatpush.bf16.msra.mxu0 %v5687_v30  ;;  %v8088_v1 = vld [vmem:[#allocation8 + $0x744] sm:$0xf]  ;;  %v5879_v2 = vor.u32 %v7952_v56, %v5876_v57  ;;  %v6167_v9 = vor.u32 %v8024_v63, %v6164_v0 }
  0xcc   :  { %v8748_v51 = vpack.c.bf16 %v639_v48, %v639_v48  ;;  %3860 = vmatpush.bf16.msra.mxu1 %v5943_v36  ;;  %v5588_v6 = vld [vmem:[#allocation8 + $0xe0] sm:$0xf0]  ;;  %v6423_v10 = vor.u32 %v8088_v1, %v6420_v4  ;;  %v201_v36 = vperm.slane %v8734_v3, 5 }
  0xcd   :  { %v8746_v44 = vpack.c.bf16 %v638_v40, %v638_v40  ;;  %v7944_v7 = vld [vmem:[#allocation8 + $0x2c4] sm:$0xf]  ;;  %v5591_v11 = vor.u32 %v7880_v5, %v5588_v6 }
  0xce   :  { %3789 = vmatmul.bf16.vlgmr.msra.gmra.mxu3 %v8748_v51  ;;  %v5844_v8 = vld [vmem:[#allocation8 + $0x2e0] sm:$0xf0] }
  0xcf   :  { %3776 = vmatmul.bf16.vlgmr.msra.gmra.mxu2 %v8746_v44  ;;  %3885 = vmatpush.bf16.msra.mxu3 %v6487_v45  ;;  %v582_v60 = vpop.f32.mrf.mxu3  ;;  %v8080_v14 = vld [vmem:[#allocation8 + $0x704] sm:$0xf]  ;;  %v5847_v15 = vor.u32 %v7944_v7, %v5844_v8  ;;  %v203_v8 = vperm.slane %v8734_v3, 7 }
  0xd0   :  { %3872 = vmatpush.bf16.msra.mxu2 %v6231_v43  ;;  %v569_v58 = vpop.f32.mrf.mxu2  ;;  %3848 = vmatpush.bf16.msra.mxu0 %v5655_v46  ;;  %v6388_v16 = vld [vmem:[#allocation8 + $0x720] sm:$0xf0] }
  0xd1   :  { %3861 = vmatpush.bf16.msra.mxu1 %v5911_v52  ;;  %v7872_v17 = vld [vmem:[#allocation8 + $0x84] sm:$0xf]  ;;  %v6391_v24 = vor.u32 %v8080_v14, %v6388_v16 }
  0xd2   :  { %v5556_v19 = vld [vmem:[#allocation8 + $0xa0] sm:$0xf0] }
  0xd3   :  { %3886 = vmatpush.bf16.msra.mxu3 %v6455_v61  ;;  %v7936_v20 = vld [vmem:[#allocation8 + $0x284] sm:$0xf]  ;;  %v5559_v25 = vor.u32 %v7872_v17, %v5556_v19 }
  0xd4   :  { %3873 = vmatpush.bf16.msra.mxu2 %v6199_v59  ;;  %3849 = vmatpush.bf16.msra.mxu0 %v5623_v62  ;;  %v8008_v26 = vld [vmem:[#allocation8 + $0x4c4] sm:$0xf]  ;;  %v5815_v29 = vor.u32 %v7936_v20, %v5812_v21 }
  0xd5   :  { %3862 = vmatpush.bf16.msra.mxu1 %v5879_v2  ;;  %v6100_v27 = vld [vmem:[#allocation8 + $0x4e0] sm:$0xf0]  ;;  %v202_v2 = vperm.slane %v8734_v3, 6 }
  0xd6   :  { %v8072_v28 = vld [vmem:[#allocation8 + $0x6c4] sm:$0xf]  ;;  %v6103_v37 = vor.u32 %v8008_v26, %v6100_v27 }
  0xd7   :  { %3887 = vmatpush.bf16.msra.mxu3 %v6423_v10  ;;  %v6356_v30 = vld [vmem:[#allocation8 + $0x6e0] sm:$0xf0] }
  0xd8   :  { %3874 = vmatpush.bf16.msra.mxu2 %v6167_v9  ;;  %3850 = vmatpush.bf16.msra.mxu0 %v5591_v11  ;;  %v7928_v34 = vld [vmem:[#allocation8 + $0x244] sm:$0xf]  ;;  %v6359_v38 = vor.u32 %v8072_v28, %v6356_v30 }
  0xd9   :  { %3863 = vmatpush.bf16.msra.mxu1 %v5847_v15  ;;  %v5780_v35 = vld [vmem:[#allocation8 + $0x260] sm:$0xf0] }
  0xda   :  { %v8000_v40 = vld [vmem:[#allocation8 + $0x484] sm:$0xf]  ;;  %v5783_v43 = vor.u32 %v7928_v34, %v5780_v35 }
  0xdb   :  { %3888 = vmatpush.bf16.msra.mxu3 %v6391_v24  ;;  %v6068_v41 = vld [vmem:[#allocation8 + $0x4a0] sm:$0xf0] }
  0xdc   :  { %3875 = vmatpush.bf16.msra.mxu2 %v6135_v22  ;;  %3851 = vmatpush.bf16.msra.mxu0 %v5559_v25  ;;  %v8064_v42 = vld [vmem:[#allocation8 + $0x684] sm:$0xf]  ;;  %v6071_v56 = vor.u32 %v8000_v40, %v6068_v41 }
  0xdd   :  { %3864 = vmatpush.bf16.msra.mxu1 %v5815_v29  ;;  %v6324_v45 = vld [vmem:[#allocation8 + $0x6a0] sm:$0xf0] }
  0xde   :  { %v7856_v46 = vld [vmem:[#allocation8 + $0x4] sm:$0xf]  ;;  %v6327_v61 = vor.u32 %v8064_v42, %v6324_v45 }
  0xdf   :  { %v593_v48 = vpop.f32.mrf.mxu0  ;;  %v5492_v47 = vld [vmem:[#allocation8 + $0x20] sm:$0xf0]  ;;  %v606_v50 = vpop.f32.mrf.mxu1  ;;  %3889 = vmatpush.bf16.msra.mxu3 %v6359_v38 }
  0xe0   :  { %v594_v49 = vadd.f32 %v593_v48, %v200_v33  ;;  %v7920_v52 = vld [vmem:[#allocation8 + $0x204] sm:$0xf]  ;;  %v607_v55 = vadd.f32 %v606_v50, %v201_v36  ;;  %3876 = vmatpush.bf16.msra.mxu2 %v6103_v37  ;;  %3852 = vmatpush.bf16.msra.mxu0 %v5527_v39  ;;  %v5495_v62 = vor.u32 %v7856_v46, %v5492_v47 }
  0xe1   :  { %v5748_v53 = vld [vmem:[#allocation8 + $0x220] sm:$0xf0]  ;;  %3865 = vmatpush.bf16.msra.mxu1 %v5783_v43 }
  0xe2   :  { %v8168_v54 = vld [vmem:[#allocation8 + $0x9c4] sm:$0xf]  ;;  %v640_v60 = vmax.f32 %v594_v49, 0.0  ;;  %v641_v1 = vmax.f32 %v607_v55, 0.0  ;;  %v5751_v4 = vor.u32 %v7920_v52, %v5748_v53 }
  0xe3   :  { %v6740_v57 = vld [vmem:[#allocation8 + $0x9e0] sm:$0xf0]  ;;  %3890 = vmatpush.bf16.msra.mxu3 %v6327_v61 }
  0xe4   :  { %v8232_v58 = vld [vmem:[#allocation8 + $0xbc4] sm:$0xf]  ;;  %v8755_v7 = vpack.c.bf16 %v640_v60, %v640_v60  ;;  %v6743_v9 = vor.u32 %v8168_v54, %v6740_v57  ;;  %v8758_v10 = vpack.c.bf16 %v641_v1, %v641_v1  ;;  %3877 = vmatpush.bf16.msra.mxu2 %v6071_v56  ;;  %3853 = vmatpush.bf16.msra.mxu0 %v5495_v62 }
  0xe5   :  { %v6996_v59 = vld [vmem:[#allocation8 + $0xbe0] sm:$0xf0]  ;;  %3866 = vmatpush.bf16.msra.mxu1 %v5751_v4 }
  0xe6   :  { %v7992_v63 = vld [vmem:[#allocation8 + $0x444] sm:$0xf]  ;;  %v6999_v11 = vor.u32 %v8232_v58, %v6996_v59  ;;  %3802 = vmatmul.bf16.vlgmr.msrb.gmra.mxu0 %v8755_v7  ;;  %3815 = vmatmul.bf16.vlgmr.msrb.gmra.mxu1 %v8758_v10 }
  0xe7   :  { %v6036_v0 = vld [vmem:[#allocation8 + $0x460] sm:$0xf0]  ;;  %v619_v16 = vpop.f32.mrf.mxu2  ;;  %v632_v24 = vpop.f32.mrf.mxu3 }
  0xe8   :  { %v8056_v5 = vld [vmem:[#allocation8 + $0x644] sm:$0xf]  ;;  %v6039_v12 = vor.u32 %v7992_v63, %v6036_v0  ;;  %v620_v22 = vadd.f32 %v619_v16, %v202_v2  ;;  %v595_v3 = vpop.f32.mrf.mxu0  ;;  %v633_v28 = vadd.f32 %v632_v24, %v203_v8  ;;  %3898 = vmatpush.bf16.msrb.mxu0 %v6743_v9  ;;  %v608_v29 = vpop.f32.mrf.mxu1 }
  0xe9   :  { %v6292_v6 = vld [vmem:[#allocation8 + $0x660] sm:$0xf0]  ;;  %3911 = vmatpush.bf16.msrb.mxu1 %v6999_v11 }
  0xea   :  { %v6708_v14 = vld [vmem:[#allocation8 + $0x9a0] sm:$0xf0]  ;;  %v6295_v17 = vor.u32 %v8056_v5, %v6292_v6  ;;  %v642_v34 = vmax.f32 %v620_v22, 0.0  ;;  %3878 = vmatpush.bf16.msra.mxu2 %v6039_v12  ;;  %v643_v39 = vmax.f32 %v633_v28, 0.0 }
  0xeb   :  { %v8224_v15 = vld [vmem:[#allocation8 + $0xb84] sm:$0xf]  ;;  %v6711_v30 = vor.u32 %v8160_v13, %v6708_v14 }
  0xec   :  { %v6964_v19 = vld [vmem:[#allocation8 + $0xba0] sm:$0xf0]  ;;  %3891 = vmatpush.bf16.msra.mxu3 %v6295_v17  ;;  %v8762_v48 = vpack.c.bf16 %v642_v34, %v642_v34  ;;  %v8764_v45 = vpack.c.bf16 %v643_v39, %v643_v39 }
  0xed   :  { %v7984_v20 = vld [vmem:[#allocation8 + $0x404] sm:$0xf]  ;;  %v6967_v35 = vor.u32 %v8224_v15, %v6964_v19  ;;  %3899 = vmatpush.bf16.msrb.mxu0 %v6711_v30 }
  0xee   :  { %v6004_v21 = vld [vmem:[#allocation8 + $0x420] sm:$0xf0]  ;;  %3828 = vmatmul.bf16.vlgmr.msrb.gmra.mxu2 %v8762_v48  ;;  %3841 = vmatmul.bf16.vlgmr.msrb.gmra.mxu3 %v8764_v45 }
  0xef   :  { %v8048_v25 = vld [vmem:[#allocation8 + $0x604] sm:$0xf]  ;;  %v6007_v36 = vor.u32 %v7984_v20, %v6004_v21  ;;  %3912 = vmatpush.bf16.msrb.mxu1 %v6967_v35  ;;  %v621_v57 = vpop.f32.mrf.mxu2  ;;  %v634_v60 = vpop.f32.mrf.mxu3 }
  0xf0   :  { %v6260_v26 = vld [vmem:[#allocation8 + $0x620] sm:$0xf0]  ;;  %v7981_v57 = vld [vmem:[#allocation8 + $0x3e4] sm:$0xf0] }
  0xf1   :  { %v8296_v27 = vld [vmem:[#allocation8 + $0xdc4] sm:$0xf]  ;;  %v6263_v40 = vor.u32 %v8048_v25, %v6260_v26  ;;  %3879 = vmatpush.bf16.msra.mxu2 %v6007_v36 }
  0xf2   :  { %v7252_v31 = vld [vmem:[#allocation8 + $0xde0] sm:$0xf0] }
  0xf3   :  { %v8360_v32 = vld [vmem:[#allocation8 + $0xfc4] sm:$0xf]  ;;  %v7255_v43 = vor.u32 %v8296_v27, %v7252_v31  ;;  %3892 = vmatpush.bf16.msra.mxu3 %v6263_v40 }
  0xf4   :  { %v7508_v33 = vld [vmem:[#allocation8 + $0xfe0] sm:$0xf0] }
  0xf5   :  { %v8152_v37 = vld [vmem:[#allocation8 + $0x944] sm:$0xf]  ;;  %v7511_v46 = vor.u32 %v8360_v32, %v7508_v33  ;;  %3924 = vmatpush.bf16.msrb.mxu2 %v7255_v43 }
  0xf6   :  { %v6676_v38 = vld [vmem:[#allocation8 + $0x960] sm:$0xf0]  ;;  %3854 = vmatmul.bf16.vlgmr.msra.gmra.mxu0 %v8739_v18  ;;  %3867 = vmatmul.bf16.vlgmr.msra.gmra.mxu1 %v8742_v23 }
  0xf7   :  { %v8216_v41 = vld [vmem:[#allocation8 + $0xb44] sm:$0xf]  ;;  %v6679_v47 = vor.u32 %v8152_v37, %v6676_v38  ;;  %3937 = vmatpush.bf16.msrb.mxu3 %v7511_v46 }
  0xf8   :  { %v6932_v42 = vld [vmem:[#allocation8 + $0xb60] sm:$0xf0] }
  0xf9   :  { %v8288_v49 = vld [vmem:[#allocation8 + $0xd84] sm:$0xf]  ;;  %v6935_v53 = vor.u32 %v8216_v41, %v6932_v42  ;;  %3900 = vmatpush.bf16.msrb.mxu0 %v6679_v47 }
  0xfa   :  { %v7220_v50 = vld [vmem:[#allocation8 + $0xda0] sm:$0xf0] }
  0xfb   :  { %v8352_v52 = vld [vmem:[#allocation8 + $0xf84] sm:$0xf]  ;;  %v7223_v61 = vor.u32 %v8288_v49, %v7220_v50  ;;  %3913 = vmatpush.bf16.msrb.mxu1 %v6935_v53  ;;  %v5722_v53 = vld [vmem:[#allocation8 + $0x1c8] sm:$0xf] }
  0xfc   :  { %v7476_v54 = vld [vmem:[#allocation8 + $0xfa0] sm:$0xf0] }
  0xfd   :  { %v8144_v55 = vld [vmem:[#allocation8 + $0x904] sm:$0xf]  ;;  %v7479_v62 = vor.u32 %v8352_v52, %v7476_v54  ;;  %3925 = vmatpush.bf16.msrb.mxu2 %v7223_v61 }
  0xfe   :  { %v6644_v56 = vld [vmem:[#allocation8 + $0x920] sm:$0xf0]  ;;  %3880 = vmatmul.bf16.vlgmr.msra.gmra.mxu2 %v8746_v44  ;;  %3893 = vmatmul.bf16.vlgmr.msra.gmra.mxu3 %v8748_v51 }
  0xff   :  { %v8208_v58 = vld [vmem:[#allocation8 + $0xb04] sm:$0xf]  ;;  %v6647_v63 = vor.u32 %v8144_v55, %v6644_v56  ;;  %3938 = vmatpush.bf16.msrb.mxu3 %v7479_v62  ;;  %v7917_v55 = vld [vmem:[#allocation8 + $0x1e4] sm:$0xf0] }
 0x100   :  { %v6900_v59 = vld [vmem:[#allocation8 + $0xb20] sm:$0xf0]  ;;  %v5978_v56 = vld [vmem:[#allocation8 + $0x3c8] sm:$0xf] }
 0x101   :  { %v8280_v0 = vld [vmem:[#allocation8 + $0xd44] sm:$0xf]  ;;  %v6903_v2 = vor.u32 %v8208_v58, %v6900_v59  ;;  %3901 = vmatpush.bf16.msrb.mxu0 %v6647_v63 }
 0x102   :  { %v7188_v1 = vld [vmem:[#allocation8 + $0xd60] sm:$0xf0] }
 0x103   :  { %v8344_v4 = vld [vmem:[#allocation8 + $0xf44] sm:$0xf]  ;;  %v7191_v12 = vor.u32 %v8280_v0, %v7188_v1  ;;  %3914 = vmatpush.bf16.msrb.mxu1 %v6903_v2  ;;  %v5723_v1 = vor.u32 %v7917_v55, %v5722_v53  ;;  %v5979_v2 = vor.u32 %v7981_v57, %v5978_v56  ;;  %v5594_v53 = vld [vmem:[#allocation8 + $0xc8] sm:$0xf] }
 0x104   :  { %v7444_v5 = vld [vmem:[#allocation8 + $0xf60] sm:$0xf0]  ;;  %v5850_v55 = vld [vmem:[#allocation8 + $0x2c8] sm:$0xf] }
 0x105   :  { %v8136_v6 = vld [vmem:[#allocation8 + $0x8c4] sm:$0xf]  ;;  %v7447_v13 = vor.u32 %v8344_v4, %v7444_v5  ;;  %3926 = vmatpush.bf16.msrb.mxu2 %v7191_v12  ;;  %v5690_v4 = vld [vmem:[#allocation8 + $0x188] sm:$0xf] }
 0x106   :  { %v6612_v8 = vld [vmem:[#allocation8 + $0x8e0] sm:$0xf0]  ;;  %v7949_v56 = vld [vmem:[#allocation8 + $0x2e4] sm:$0xf0] }
 0x107   :  { %v8200_v9 = vld [vmem:[#allocation8 + $0xac4] sm:$0xf]  ;;  %v6615_v16 = vor.u32 %v8136_v6, %v6612_v8  ;;  %3939 = vmatpush.bf16.msrb.mxu3 %v7447_v13  ;;  %v7909_v6 = vld [vmem:[#allocation8 + $0x1a4] sm:$0xf0] }
 0x108   :  { %v6868_v11 = vld [vmem:[#allocation8 + $0xae0] sm:$0xf0]  ;;  %v5946_v8 = vld [vmem:[#allocation8 + $0x388] sm:$0xf] }
 0x109   :  { %v8272_v14 = vld [vmem:[#allocation8 + $0xd04] sm:$0xf]  ;;  %v6871_v17 = vor.u32 %v8200_v9, %v6868_v11  ;;  %3902 = vmatpush.bf16.msrb.mxu0 %v6615_v16  ;;  %v7973_v9 = vld [vmem:[#allocation8 + $0x3a4] sm:$0xf0] }
 0x10a   :  { %v7156_v15 = vld [vmem:[#allocation8 + $0xd20] sm:$0xf0]  ;;  %v6234_v16 = vld [vmem:[#allocation8 + $0x5c8] sm:$0xf] }
 0x10b   :  { %v8336_v19 = vld [vmem:[#allocation8 + $0xf04] sm:$0xf]  ;;  %v7159_v25 = vor.u32 %v8272_v14, %v7156_v15  ;;  %3915 = vmatpush.bf16.msrb.mxu1 %v6871_v17  ;;  %v8045_v17 = vld [vmem:[#allocation8 + $0x5e4] sm:$0xf0] }
 0x10c   :  { %v7412_v20 = vld [vmem:[#allocation8 + $0xf20] sm:$0xf0] }
 0x10d   :  { %v8128_v21 = vld [vmem:[#allocation8 + $0x884] sm:$0xf]  ;;  %v7415_v26 = vor.u32 %v8336_v19, %v7412_v20  ;;  %3927 = vmatpush.bf16.msrb.mxu2 %v7159_v25  ;;  %v5691_v19 = vor.u32 %v7909_v6, %v5690_v4  ;;  %v5947_v20 = vor.u32 %v7973_v9, %v5946_v8  ;;  %v7901_v25 = vld [vmem:[#allocation8 + $0x164] sm:$0xf0] }
 0x10e   :  { %v6580_v22 = vld [vmem:[#allocation8 + $0x8a0] sm:$0xf0]  ;;  %v5818_v4 = vld [vmem:[#allocation8 + $0x288] sm:$0xf] }
 0x10f   :  { %v8192_v24 = vld [vmem:[#allocation8 + $0xa84] sm:$0xf]  ;;  %v6583_v29 = vor.u32 %v8128_v21, %v6580_v22  ;;  %3940 = vmatpush.bf16.msrb.mxu3 %v7415_v26  ;;  %v6490_v21 = vld [vmem:[#allocation8 + $0x7c8] sm:$0xf] }
 0x110   :  { %v6836_v3 = vld [vmem:[#allocation8 + $0xaa0] sm:$0xf0]  ;;  %v8109_v22 = vld [vmem:[#allocation8 + $0x7e4] sm:$0xf0] }
 0x111   :  { %v8264_v27 = vld [vmem:[#allocation8 + $0xcc4] sm:$0xf]  ;;  %v6839_v30 = vor.u32 %v8192_v24, %v6836_v3  ;;  %3903 = vmatpush.bf16.msrb.mxu0 %v6583_v29  ;;  %v5658_v24 = vld [vmem:[#allocation8 + $0x148] sm:$0xf]  ;;  %v6235_v29 = vor.u32 %v8045_v17, %v6234_v16 }
 0x112   :  { %v7124_v28 = vld [vmem:[#allocation8 + $0xce0] sm:$0xf0]  ;;  %v5914_v26 = vld [vmem:[#allocation8 + $0x348] sm:$0xf] }
 0x113   :  { %v8328_v31 = vld [vmem:[#allocation8 + $0xec4] sm:$0xf]  ;;  %v7127_v37 = vor.u32 %v8264_v27, %v7124_v28  ;;  %3916 = vmatpush.bf16.msrb.mxu1 %v6839_v30  ;;  %v7965_v27 = vld [vmem:[#allocation8 + $0x364] sm:$0xf0]  ;;  %v6491_v30 = vor.u32 %v8109_v22, %v6490_v21 }
 0x114   :  { %v7380_v32 = vld [vmem:[#allocation8 + $0xee0] sm:$0xf0]  ;;  %v6106_v9 = vld [vmem:[#allocation8 + $0x4c8] sm:$0xf] }
 0x115   :  { %v8120_v33 = vld [vmem:[#allocation8 + $0x844] sm:$0xf]  ;;  %v7383_v38 = vor.u32 %v8328_v31, %v7380_v32  ;;  %3928 = vmatpush.bf16.msrb.mxu2 %v7127_v37  ;;  %v6202_v31 = vld [vmem:[#allocation8 + $0x588] sm:$0xf] }
 0x116   :  { %v6548_v34 = vld [vmem:[#allocation8 + $0x860] sm:$0xf0]  ;;  %v8037_v32 = vld [vmem:[#allocation8 + $0x5a4] sm:$0xf0] }
 0x117   :  { %v8184_v35 = vld [vmem:[#allocation8 + $0xa44] sm:$0xf]  ;;  %v6551_v42 = vor.u32 %v8120_v33, %v6548_v34  ;;  %3941 = vmatpush.bf16.msrb.mxu3 %v7383_v38  ;;  %v5659_v33 = vor.u32 %v7901_v25, %v5658_v24  ;;  %v5915_v34 = vor.u32 %v7965_v27, %v5914_v26  ;;  %v5626_v37 = vld [vmem:[#allocation8 + $0x108] sm:$0xf] }
 0x118   :  { %v6804_v36 = vld [vmem:[#allocation8 + $0xa60] sm:$0xf0]  ;;  %v7893_v38 = vld [vmem:[#allocation8 + $0x124] sm:$0xf0] }
 0x119   :  { %v8256_v39 = vld [vmem:[#allocation8 + $0xc84] sm:$0xf]  ;;  %v6807_v43 = vor.u32 %v8184_v35, %v6804_v36  ;;  %3904 = vmatpush.bf16.msrb.mxu0 %v6551_v42  ;;  %v6458_v35 = vld [vmem:[#allocation8 + $0x788] sm:$0xf] }
 0x11a   :  { %v7092_v40 = vld [vmem:[#allocation8 + $0xca0] sm:$0xf0]  ;;  %v8101_v36 = vld [vmem:[#allocation8 + $0x7a4] sm:$0xf0] }
 0x11b   :  { %v8320_v41 = vld [vmem:[#allocation8 + $0xe84] sm:$0xf]  ;;  %v7095_v54 = vor.u32 %v8256_v39, %v7092_v40  ;;  %3917 = vmatpush.bf16.msrb.mxu1 %v6807_v43  ;;  %v5882_v39 = vld [vmem:[#allocation8 + $0x308] sm:$0xf]  ;;  %v6459_v42 = vor.u32 %v8101_v36, %v6458_v35 }
 0x11c   :  { %v7348_v46 = vld [vmem:[#allocation8 + $0xea0] sm:$0xf0]  ;;  %v7957_v40 = vld [vmem:[#allocation8 + $0x324] sm:$0xf0] }
 0x11d   :  { %v8112_v47 = vld [vmem:[#allocation8 + $0x804] sm:$0xf]  ;;  %v7351_v58 = vor.u32 %v8320_v41, %v7348_v46  ;;  %3929 = vmatpush.bf16.msrb.mxu2 %v7095_v54  ;;  %v6203_v41 = vor.u32 %v8037_v32, %v6202_v31  ;;  %v6170_v43 = vld [vmem:[#allocation8 + $0x548] sm:$0xf] }
 0x11e   :  { %v6516_v49 = vld [vmem:[#allocation8 + $0x820] sm:$0xf0]  ;;  %v8029_v46 = vld [vmem:[#allocation8 + $0x564] sm:$0xf0] }
 0x11f   :  { %v8176_v50 = vld [vmem:[#allocation8 + $0xa04] sm:$0xf]  ;;  %v6519_v61 = vor.u32 %v8112_v47, %v6516_v49  ;;  %3942 = vmatpush.bf16.msrb.mxu3 %v7351_v58  ;;  %v5627_v47 = vor.u32 %v7893_v38, %v5626_v37  ;;  %v5883_v49 = vor.u32 %v7957_v40, %v5882_v39  ;;  %v7885_v54 = vld [vmem:[#allocation8 + $0xe4] sm:$0xf0]  ;;  %v6171_v57 = vor.u32 %v8029_v46, %v6170_v43 }
 0x120   :  { %v6772_v52 = vld [vmem:[#allocation8 + $0xa20] sm:$0xf0]  ;;  %v5530_v16 = vld [vmem:[#allocation8 + $0x48] sm:$0xf] }
 0x121   :  { %v8248_v59 = vld [vmem:[#allocation8 + $0xc44] sm:$0xf]  ;;  %v6775_v62 = vor.u32 %v8176_v50, %v6772_v52  ;;  %3905 = vmatpush.bf16.msrb.mxu0 %v6519_v61  ;;  %v6426_v50 = vld [vmem:[#allocation8 + $0x748] sm:$0xf]  ;;  %v5595_v61 = vor.u32 %v7885_v54, %v5594_v53 }
 0x122   :  { %v7060_v60 = vld [vmem:[#allocation8 + $0xc60] sm:$0xf0]  ;;  %v8093_v52 = vld [vmem:[#allocation8 + $0x764] sm:$0xf0] }
 0x123   :  { %v8312_v63 = vld [vmem:[#allocation8 + $0xe44] sm:$0xf]  ;;  %v7063_v5 = vor.u32 %v8248_v59, %v7060_v60  ;;  %3918 = vmatpush.bf16.msrb.mxu1 %v6775_v62  ;;  %v6427_v58 = vor.u32 %v8093_v52, %v6426_v50  ;;  %v6138_v59 = vld [vmem:[#allocation8 + $0x508] sm:$0xf]  ;;  %v5851_v62 = vor.u32 %v7949_v56, %v5850_v55 }
 0x124   :  { %v7316_v0 = vld [vmem:[#allocation8 + $0xe60] sm:$0xf0]  ;;  %3906 = vmatmul.bf16.vlgmr.msrb.gmra.mxu0 %v8755_v7  ;;  %v8021_v60 = vld [vmem:[#allocation8 + $0x524] sm:$0xf0] }
 0x125   :  { %v7319_v11 = vor.u32 %v8312_v63, %v7316_v0  ;;  %v8240_v12 = vld [vmem:[#allocation8 + $0xc04] sm:$0xf]  ;;  %3950 = vmatpush.bf16.msra.mxu0 %v5723_v1  ;;  %3930 = vmatpush.bf16.msrb.mxu2 %v7063_v5  ;;  %v6394_v63 = vld [vmem:[#allocation8 + $0x708] sm:$0xf]  ;;  %v6139_v6 = vor.u32 %v8021_v60, %v6138_v59 }
 0x126   :  { %v7028_v13 = vld [vmem:[#allocation8 + $0xc20] sm:$0xf0]  ;;  %3919 = vmatmul.bf16.vlgmr.msrb.gmra.mxu1 %v8758_v10  ;;  %v8085_v0 = vld [vmem:[#allocation8 + $0x724] sm:$0xf0] }
 0x127   :  { %v8304_v14 = vld [vmem:[#allocation8 + $0xe04] sm:$0xf]  ;;  %3963 = vmatpush.bf16.msra.mxu1 %v5979_v2  ;;  %v7031_v3 = vor.u32 %v8240_v12, %v7028_v13  ;;  %3943 = vmatpush.bf16.msrb.mxu3 %v7319_v11  ;;  %v5562_v1 = vld [vmem:[#allocation8 + $0x88] sm:$0xf]  ;;  %v6395_v8 = vor.u32 %v8085_v0, %v6394_v63 }
 0x128   :  { %v7284_v15 = vld [vmem:[#allocation8 + $0xe20] sm:$0xf0]  ;;  %v7877_v2 = vld [vmem:[#allocation8 + $0xa4] sm:$0xf0] }
 0x129   :  { %v7287_v28 = vor.u32 %v8304_v14, %v7284_v15  ;;  %3951 = vmatpush.bf16.msra.mxu0 %v5691_v19  ;;  %3931 = vmatpush.bf16.msrb.mxu2 %v7031_v3  ;;  %v7941_v5 = vld [vmem:[#allocation8 + $0x2a4] sm:$0xf0]  ;;  %v5563_v12 = vor.u32 %v7877_v2, %v5562_v1 }
 0x12a   :  { %v8013_v11 = vld [vmem:[#allocation8 + $0x4e4] sm:$0xf0]  ;;  %v5819_v13 = vor.u32 %v7941_v5, %v5818_v4 }
 0x12b   :  { %3964 = vmatpush.bf16.msra.mxu1 %v5947_v20  ;;  %3944 = vmatpush.bf16.msrb.mxu3 %v7287_v28  ;;  %v6362_v14 = vld [vmem:[#allocation8 + $0x6c8] sm:$0xf]  ;;  %v6107_v21 = vor.u32 %v8013_v11, %v6106_v9 }
 0x12c   :  { %3932 = vmatmul.bf16.vlgmr.msrb.gmra.mxu2 %v8762_v48  ;;  %v8077_v15 = vld [vmem:[#allocation8 + $0x6e4] sm:$0xf0] }
 0x12d   :  { %3976 = vmatpush.bf16.msra.mxu2 %v6235_v29  ;;  %3952 = vmatpush.bf16.msra.mxu0 %v5659_v33  ;;  %v7869_v17 = vld [vmem:[#allocation8 + $0x64] sm:$0xf0]  ;;  %v6363_v22 = vor.u32 %v8077_v15, %v6362_v14 }
 0x12e   :  { %3945 = vmatmul.bf16.vlgmr.msrb.gmra.mxu3 %v8764_v45  ;;  %v5786_v19 = vld [vmem:[#allocation8 + $0x248] sm:$0xf]  ;;  %v5531_v26 = vor.u32 %v7869_v17, %v5530_v16 }
 0x12f   :  { %3989 = vmatpush.bf16.msra.mxu3 %v6491_v30  ;;  %3965 = vmatpush.bf16.msra.mxu1 %v5915_v34  ;;  %v7933_v20 = vld [vmem:[#allocation8 + $0x264] sm:$0xf0] }
 0x130   :  { %v6074_v24 = vld [vmem:[#allocation8 + $0x488] sm:$0xf]  ;;  %v5787_v27 = vor.u32 %v7933_v20, %v5786_v19 }
 0x131   :  { %3977 = vmatpush.bf16.msra.mxu2 %v6203_v41  ;;  %3953 = vmatpush.bf16.msra.mxu0 %v5627_v47  ;;  %v8005_v3 = vld [vmem:[#allocation8 + $0x4a4] sm:$0xf0] }
 0x132   :  { %v6330_v25 = vld [vmem:[#allocation8 + $0x688] sm:$0xf]  ;;  %v6075_v34 = vor.u32 %v8005_v3, %v6074_v24 }
 0x133   :  { %3990 = vmatpush.bf16.msra.mxu3 %v6459_v42  ;;  %3966 = vmatpush.bf16.msra.mxu1 %v5883_v49  ;;  %v8069_v28 = vld [vmem:[#allocation8 + $0x6a4] sm:$0xf0] }
 0x134   :  { %v5498_v29 = vld [vmem:[#allocation8 + $0x8] sm:$0xf]  ;;  %v6331_v38 = vor.u32 %v8069_v28, %v6330_v25 }
 0x135   :  { %3978 = vmatpush.bf16.msra.mxu2 %v6171_v57  ;;  %3954 = vmatpush.bf16.msra.mxu0 %v5595_v61  ;;  %v7861_v30 = vld [vmem:[#allocation8 + $0x24] sm:$0xf0] }
 0x136   :  { %v5754_v31 = vld [vmem:[#allocation8 + $0x208] sm:$0xf]  ;;  %v5499_v41 = vor.u32 %v7861_v30, %v5498_v29 }
 0x137   :  { %3991 = vmatpush.bf16.msra.mxu3 %v6427_v58  ;;  %3967 = vmatpush.bf16.msra.mxu1 %v5851_v62  ;;  %v7925_v32 = vld [vmem:[#allocation8 + $0x224] sm:$0xf0] }
 0x138   :  { %v6746_v33 = vld [vmem:[#allocation8 + $0x9c8] sm:$0xf]  ;;  %v5755_v42 = vor.u32 %v7925_v32, %v5754_v31 }
 0x139   :  { %3979 = vmatpush.bf16.msra.mxu2 %v6139_v6  ;;  %3955 = vmatpush.bf16.msra.mxu0 %v5563_v12  ;;  %v8173_v35 = vld [vmem:[#allocation8 + $0x9e4] sm:$0xf0] }
 0x13a   :  { %v7002_v36 = vld [vmem:[#allocation8 + $0xbc8] sm:$0xf]  ;;  %v6747_v47 = vor.u32 %v8173_v35, %v6746_v33 }
 0x13b   :  { %3992 = vmatpush.bf16.msra.mxu3 %v6395_v8  ;;  %3968 = vmatpush.bf16.msra.mxu1 %v5819_v13  ;;  %v8237_v37 = vld [vmem:[#allocation8 + $0xbe4] sm:$0xf0] }
 0x13c   :  { %v6042_v39 = vld [vmem:[#allocation8 + $0x448] sm:$0xf]  ;;  %v7003_v49 = vor.u32 %v8237_v37, %v7002_v36 }
 0x13d   :  { %3980 = vmatpush.bf16.msra.mxu2 %v6107_v21  ;;  %v7997_v40 = vld [vmem:[#allocation8 + $0x464] sm:$0xf0]  ;;  %3956 = vmatpush.bf16.msra.mxu0 %v5531_v26 }
 0x13e   :  { %v6298_v43 = vld [vmem:[#allocation8 + $0x648] sm:$0xf]  ;;  %v6043_v52 = vor.u32 %v7997_v40, %v6042_v39 }
 0x13f   :  { %3993 = vmatpush.bf16.msra.mxu3 %v6363_v22  ;;  %3969 = vmatpush.bf16.msra.mxu1 %v5787_v27  ;;  %v8061_v46 = vld [vmem:[#allocation8 + $0x664] sm:$0xf0] }
 0x140   :  { %v6714_v50 = vld [vmem:[#allocation8 + $0x988] sm:$0xf]  ;;  %v6299_v56 = vor.u32 %v8061_v46, %v6298_v43 }
 0x141   :  { %3981 = vmatpush.bf16.msra.mxu2 %v6075_v34  ;;  %v8165_v53 = vld [vmem:[#allocation8 + $0x9a4] sm:$0xf0]  ;;  %3957 = vmatpush.bf16.msra.mxu0 %v5499_v41 }
 0x142   :  { %v6970_v54 = vld [vmem:[#allocation8 + $0xb88] sm:$0xf]  ;;  %v6715_v63 = vor.u32 %v8165_v53, %v6714_v50 }
 0x143   :  { %v8229_v55 = vld [vmem:[#allocation8 + $0xba4] sm:$0xf0]  ;;  %3994 = vmatpush.bf16.msra.mxu3 %v6331_v38  ;;  %3970 = vmatpush.bf16.msra.mxu1 %v5755_v42 }
 0x144   :  { %v6010_v57 = vld [vmem:[#allocation8 + $0x408] sm:$0xf]  ;;  %v6971_v0 = vor.u32 %v8229_v55, %v6970_v54  ;;  %3958 = vmatmul.bf16.vlgmr.msra.gmra.mxu0 %v8739_v18 }
 0x145   :  { %v7989_v58 = vld [vmem:[#allocation8 + $0x424] sm:$0xf0]  ;;  %4002 = vmatpush.bf16.msrb.mxu0 %v6747_v47  ;;  %3982 = vmatpush.bf16.msra.mxu2 %v6043_v52 }
 0x146   :  { %v6266_v59 = vld [vmem:[#allocation8 + $0x608] sm:$0xf]  ;;  %v6011_v4 = vor.u32 %v7989_v58, %v6010_v57  ;;  %3971 = vmatmul.bf16.vlgmr.msra.gmra.mxu1 %v8742_v23 }
 0x147   :  { %v8053_v60 = vld [vmem:[#allocation8 + $0x624] sm:$0xf0]  ;;  %4015 = vmatpush.bf16.msrb.mxu1 %v7003_v49  ;;  %3995 = vmatpush.bf16.msra.mxu3 %v6299_v56 }
 0x148   :  { %v7258_v61 = vld [vmem:[#allocation8 + $0xdc8] sm:$0xf]  ;;  %v6267_v8 = vor.u32 %v8053_v60, %v6266_v59 }
 0x149   :  { %v8301_v62 = vld [vmem:[#allocation8 + $0xde4] sm:$0xf0]  ;;  %4003 = vmatpush.bf16.msrb.mxu0 %v6715_v63  ;;  %3983 = vmatpush.bf16.msra.mxu2 %v6011_v4 }
 0x14a   :  { %v7514_v1 = vld [vmem:[#allocation8 + $0xfc8] sm:$0xf]  ;;  %v7259_v9 = vor.u32 %v8301_v62, %v7258_v61 }
 0x14b   :  { %v8365_v2 = vld [vmem:[#allocation8 + $0xfe4] sm:$0xf0]  ;;  %4016 = vmatpush.bf16.msrb.mxu1 %v6971_v0  ;;  %3996 = vmatpush.bf16.msra.mxu3 %v6267_v8 }
 0x14c   :  { %v6682_v5 = vld [vmem:[#allocation8 + $0x948] sm:$0xf]  ;;  %v7515_v13 = vor.u32 %v8365_v2, %v7514_v1  ;;  %3984 = vmatmul.bf16.vlgmr.msra.gmra.mxu2 %v8746_v44 }
 0x14d   :  { %v8157_v6 = vld [vmem:[#allocation8 + $0x964] sm:$0xf0]  ;;  %4028 = vmatpush.bf16.msrb.mxu2 %v7259_v9 }
 0x14e   :  { %v6938_v11 = vld [vmem:[#allocation8 + $0xb48] sm:$0xf]  ;;  %v6683_v16 = vor.u32 %v8157_v6, %v6682_v5  ;;  %3997 = vmatmul.bf16.vlgmr.msra.gmra.mxu3 %v8748_v51 }
 0x14f   :  { %v8221_v12 = vld [vmem:[#allocation8 + $0xb64] sm:$0xf0]  ;;  %4041 = vmatpush.bf16.msrb.mxu3 %v7515_v13 }
 0x150   :  { %v7226_v14 = vld [vmem:[#allocation8 + $0xd88] sm:$0xf]  ;;  %v6939_v20 = vor.u32 %v8221_v12, %v6938_v11  ;;  %4004 = vmatpush.bf16.msrb.mxu0 %v6683_v16 }
 0x151   :  { %v8293_v15 = vld [vmem:[#allocation8 + $0xda4] sm:$0xf0] }
 0x152   :  { %v7482_v17 = vld [vmem:[#allocation8 + $0xf88] sm:$0xf]  ;;  %v7227_v24 = vor.u32 %v8293_v15, %v7226_v14  ;;  %4017 = vmatpush.bf16.msrb.mxu1 %v6939_v20  ;;  %v7977_v20 = vld [vmem:[#allocation8 + $0x3cc] sm:$0xf] }
 0x153   :  { %v8357_v19 = vld [vmem:[#allocation8 + $0xfa4] sm:$0xf0] }
 0x154   :  { %v6650_v21 = vld [vmem:[#allocation8 + $0x908] sm:$0xf]  ;;  %v7483_v26 = vor.u32 %v8357_v19, %v7482_v17  ;;  %4029 = vmatpush.bf16.msrb.mxu2 %v7227_v24  ;;  %v7913_v17 = vld [vmem:[#allocation8 + $0x1cc] sm:$0xf] }
 0x155   :  { %v8149_v22 = vld [vmem:[#allocation8 + $0x924] sm:$0xf0]  ;;  %v5724_v19 = vld [vmem:[#allocation8 + $0x1e8] sm:$0xf0] }
 0x156   :  { %v6906_v3 = vld [vmem:[#allocation8 + $0xb08] sm:$0xf]  ;;  %v6651_v29 = vor.u32 %v8149_v22, %v6650_v21  ;;  %4042 = vmatpush.bf16.msrb.mxu3 %v7483_v26  ;;  %v5980_v22 = vld [vmem:[#allocation8 + $0x3e8] sm:$0xf0] }
 0x157   :  { %v8213_v25 = vld [vmem:[#allocation8 + $0xb24] sm:$0xf0] }
 0x158   :  { %v7194_v27 = vld [vmem:[#allocation8 + $0xd48] sm:$0xf]  ;;  %v6907_v32 = vor.u32 %v8213_v25, %v6906_v3  ;;  %4005 = vmatpush.bf16.msrb.mxu0 %v6651_v29  ;;  %v5727_v29 = vor.u32 %v7913_v17, %v5724_v19  ;;  %v8089_v19 = vld [vmem:[#allocation8 + $0x74c] sm:$0xf] }
 0x159   :  { %v8285_v28 = vld [vmem:[#allocation8 + $0xd64] sm:$0xf0] }
 0x15a   :  { %v7450_v30 = vld [vmem:[#allocation8 + $0xf48] sm:$0xf]  ;;  %v7195_v35 = vor.u32 %v8285_v28, %v7194_v27  ;;  %4018 = vmatpush.bf16.msrb.mxu1 %v6907_v32 }
 0x15b   :  { %v8349_v31 = vld [vmem:[#allocation8 + $0xf64] sm:$0xf0] }
 0x15c   :  { %v6618_v33 = vld [vmem:[#allocation8 + $0x8c8] sm:$0xf]  ;;  %v7451_v38 = vor.u32 %v8349_v31, %v7450_v30  ;;  %4030 = vmatpush.bf16.msrb.mxu2 %v7195_v35  ;;  %v7905_v30 = vld [vmem:[#allocation8 + $0x18c] sm:$0xf]  ;;  %v5983_v31 = vor.u32 %v7977_v20, %v5980_v22 }
 0x15d   :  { %v8141_v34 = vld [vmem:[#allocation8 + $0x8e4] sm:$0xf0]  ;;  %v5948_v35 = vld [vmem:[#allocation8 + $0x3a8] sm:$0xf0] }
 0x15e   :  { %v6874_v36 = vld [vmem:[#allocation8 + $0xac8] sm:$0xf]  ;;  %v6619_v41 = vor.u32 %v8141_v34, %v6618_v33  ;;  %4043 = vmatpush.bf16.msrb.mxu3 %v7451_v38  ;;  %v5692_v33 = vld [vmem:[#allocation8 + $0x1a8] sm:$0xf0] }
 0x15f   :  { %v8205_v37 = vld [vmem:[#allocation8 + $0xae4] sm:$0xf0]  ;;  %v7969_v34 = vld [vmem:[#allocation8 + $0x38c] sm:$0xf] }
 0x160   :  { %v7162_v39 = vld [vmem:[#allocation8 + $0xd08] sm:$0xf]  ;;  %v6875_v46 = vor.u32 %v8205_v37, %v6874_v36  ;;  %4006 = vmatpush.bf16.msrb.mxu0 %v6619_v41  ;;  %v8041_v41 = vld [vmem:[#allocation8 + $0x5cc] sm:$0xf] }
 0x161   :  { %v8277_v40 = vld [vmem:[#allocation8 + $0xd24] sm:$0xf0]  ;;  %v6428_v20 = vld [vmem:[#allocation8 + $0x768] sm:$0xf0] }
 0x162   :  { %v7418_v42 = vld [vmem:[#allocation8 + $0xf08] sm:$0xf]  ;;  %v7163_v50 = vor.u32 %v8277_v40, %v7162_v39  ;;  %4019 = vmatpush.bf16.msrb.mxu1 %v6875_v46  ;;  %v8105_v46 = vld [vmem:[#allocation8 + $0x7cc] sm:$0xf] }
 0x163   :  { %v8341_v43 = vld [vmem:[#allocation8 + $0xf24] sm:$0xf0] }
 0x164   :  { %v6586_v47 = vld [vmem:[#allocation8 + $0x888] sm:$0xf]  ;;  %v7419_v54 = vor.u32 %v8341_v43, %v7418_v42  ;;  %4031 = vmatpush.bf16.msrb.mxu2 %v7163_v50  ;;  %v6236_v42 = vld [vmem:[#allocation8 + $0x5e8] sm:$0xf0]  ;;  %v5695_v43 = vor.u32 %v7905_v30, %v5692_v33  ;;  %v5951_v50 = vor.u32 %v7969_v34, %v5948_v35 }
 0x165   :  { %v8133_v49 = vld [vmem:[#allocation8 + $0x8a4] sm:$0xf0]  ;;  %v6140_v30 = vld [vmem:[#allocation8 + $0x528] sm:$0xf0] }
 0x166   :  { %v6842_v52 = vld [vmem:[#allocation8 + $0xa88] sm:$0xf]  ;;  %v6587_v57 = vor.u32 %v8133_v49, %v6586_v47  ;;  %4044 = vmatpush.bf16.msrb.mxu3 %v7419_v54  ;;  %v6492_v47 = vld [vmem:[#allocation8 + $0x7e8] sm:$0xf0]  ;;  %v8780_v49 = vld [vmem:[#allocation10] sm:$0xff] }
 0x167   :  { %v8197_v53 = vld [vmem:[#allocation8 + $0xaa4] sm:$0xf0]  ;;  %v5660_v54 = vld [vmem:[#allocation8 + $0x168] sm:$0xf0] }
 0x168   :  { %v7130_v55 = vld [vmem:[#allocation8 + $0xcc8] sm:$0xf]  ;;  %v6843_v60 = vor.u32 %v8197_v53, %v6842_v52  ;;  %4007 = vmatpush.bf16.msrb.mxu0 %v6587_v57  ;;  %v7897_v53 = vld [vmem:[#allocation8 + $0x14c] sm:$0xf] }
 0x169   :  { %v8269_v56 = vld [vmem:[#allocation8 + $0xce4] sm:$0xf0]  ;;  %v7961_v57 = vld [vmem:[#allocation8 + $0x34c] sm:$0xf] }
 0x16a   :  { %v7386_v58 = vld [vmem:[#allocation8 + $0xec8] sm:$0xf]  ;;  %v7131_v63 = vor.u32 %v8269_v56, %v7130_v55  ;;  %4020 = vmatpush.bf16.msrb.mxu1 %v6843_v60  ;;  %v6239_v56 = vor.u32 %v8041_v41, %v6236_v42  ;;  %v1166_v60 = vperm.slane %v8780_v49, 0  ;;  %v6396_v33 = vld [vmem:[#allocation8 + $0x728] sm:$0xf0] }
 0x16b   :  { %v8333_v59 = vld [vmem:[#allocation8 + $0xee4] sm:$0xf0]  ;;  %v7873_v35 = vld [vmem:[#allocation8 + $0x8c] sm:$0xf] }
 0x16c   :  { %v6554_v61 = vld [vmem:[#allocation8 + $0x848] sm:$0xf]  ;;  %v7387_v2 = vor.u32 %v8333_v59, %v7386_v58  ;;  %4032 = vmatpush.bf16.msrb.mxu2 %v7131_v63  ;;  %v5916_v58 = vld [vmem:[#allocation8 + $0x368] sm:$0xf0]  ;;  %v6495_v59 = vor.u32 %v8105_v46, %v6492_v47  ;;  %v5663_v63 = vor.u32 %v7897_v53, %v5660_v54 }
 0x16d   :  { %v8125_v62 = vld [vmem:[#allocation8 + $0x864] sm:$0xf0]  ;;  %v6108_v46 = vld [vmem:[#allocation8 + $0x4e8] sm:$0xf0] }
 0x16e   :  { %v6810_v0 = vld [vmem:[#allocation8 + $0xa48] sm:$0xf]  ;;  %v6555_v6 = vor.u32 %v8125_v62, %v6554_v61  ;;  %4045 = vmatpush.bf16.msrb.mxu3 %v7387_v2  ;;  %v8033_v61 = vld [vmem:[#allocation8 + $0x58c] sm:$0xf]  ;;  %v5919_v2 = vor.u32 %v7961_v57, %v5916_v58 }
 0x16f   :  { %v8189_v1 = vld [vmem:[#allocation8 + $0xa64] sm:$0xf0]  ;;  %v6204_v62 = vld [vmem:[#allocation8 + $0x5a8] sm:$0xf0] }
 0x170   :  { %v7098_v4 = vld [vmem:[#allocation8 + $0xc88] sm:$0xf]  ;;  %v6811_v12 = vor.u32 %v8189_v1, %v6810_v0  ;;  %4008 = vmatpush.bf16.msrb.mxu0 %v6555_v6  ;;  %v8097_v0 = vld [vmem:[#allocation8 + $0x78c] sm:$0xf]  ;;  %v3751_v6 = vpop.f32.mrf.mxu0 }
 0x171   :  { %v8261_v5 = vld [vmem:[#allocation8 + $0xca4] sm:$0xf0]  ;;  %v6460_v1 = vld [vmem:[#allocation8 + $0x7a8] sm:$0xf0] }
 0x172   :  { %v7354_v8 = vld [vmem:[#allocation8 + $0xe88] sm:$0xf]  ;;  %v7099_v16 = vor.u32 %v8261_v5, %v7098_v4  ;;  %4021 = vmatpush.bf16.msrb.mxu1 %v6811_v12  ;;  %v7889_v4 = vld [vmem:[#allocation8 + $0x10c] sm:$0xf]  ;;  %v3752_v12 = vadd.f32 %v3751_v6, %v1166_v60 }
 0x173   :  { %v8325_v9 = vld [vmem:[#allocation8 + $0xea4] sm:$0xf0]  ;;  %v5628_v5 = vld [vmem:[#allocation8 + $0x128] sm:$0xf0] }
 0x174   :  { %v6522_v11 = vld [vmem:[#allocation8 + $0x808] sm:$0xf]  ;;  %v7355_v21 = vor.u32 %v8325_v9, %v7354_v8  ;;  %4033 = vmatpush.bf16.msrb.mxu2 %v7099_v16  ;;  %v6207_v8 = vor.u32 %v8033_v61, %v6204_v62  ;;  %v7953_v9 = vld [vmem:[#allocation8 + $0x30c] sm:$0xf]  ;;  %v5631_v17 = vor.u32 %v7889_v4, %v5628_v5 }
 0x175   :  { %v8117_v13 = vld [vmem:[#allocation8 + $0x824] sm:$0xf0]  ;;  %v6172_v16 = vld [vmem:[#allocation8 + $0x568] sm:$0xf0] }
 0x176   :  { %v6778_v14 = vld [vmem:[#allocation8 + $0xa08] sm:$0xf]  ;;  %v6523_v25 = vor.u32 %v8117_v13, %v6522_v11  ;;  %4046 = vmatpush.bf16.msrb.mxu3 %v7355_v21  ;;  %v5884_v11 = vld [vmem:[#allocation8 + $0x328] sm:$0xf0]  ;;  %v6463_v13 = vor.u32 %v8097_v0, %v6460_v1  ;;  %v3790_v0 = vpop.f32.mrf.mxu3 }
 0x177   :  { %v8181_v15 = vld [vmem:[#allocation8 + $0xa24] sm:$0xf0]  ;;  %v5887_v22 = vor.u32 %v7953_v9, %v5884_v11  ;;  %v7865_v54 = vld [vmem:[#allocation8 + $0x4c] sm:$0xf] }
 0x178   :  { %v7066_v24 = vld [vmem:[#allocation8 + $0xc48] sm:$0xf]  ;;  %v6779_v28 = vor.u32 %v8181_v15, %v6778_v14  ;;  %4009 = vmatpush.bf16.msrb.mxu0 %v6523_v25  ;;  %v3764_v14 = vpop.f32.mrf.mxu1  ;;  %v8025_v15 = vld [vmem:[#allocation8 + $0x54c] sm:$0xf] }
 0x179   :  { %v8253_v3 = vld [vmem:[#allocation8 + $0xc64] sm:$0xf0]  ;;  %v3765_v21 = vadd.f32 %v3764_v14, %v3752_v12  ;;  %v6175_v25 = vor.u32 %v8025_v15, %v6172_v16  ;;  %v7929_v57 = vld [vmem:[#allocation8 + $0x24c] sm:$0xf] }
 0x17a   :  { %v7322_v26 = vld [vmem:[#allocation8 + $0xe48] sm:$0xf]  ;;  %v7067_v32 = vor.u32 %v8253_v3, %v7066_v24  ;;  %4022 = vmatpush.bf16.msrb.mxu1 %v6779_v28  ;;  %v7881_v24 = vld [vmem:[#allocation8 + $0xcc] sm:$0xf]  ;;  %v6431_v28 = vor.u32 %v8089_v19, %v6428_v20 }
 0x17b   :  { %v8317_v27 = vld [vmem:[#allocation8 + $0xe64] sm:$0xf0]  ;;  %4010 = vmatmul.bf16.vlgmr.msrb.gmra.mxu0 %v8755_v7  ;;  %v5596_v3 = vld [vmem:[#allocation8 + $0xe8] sm:$0xf0] }
 0x17c   :  { %v7323_v36 = vor.u32 %v8317_v27, %v7322_v26  ;;  %v7034_v37 = vld [vmem:[#allocation8 + $0xc08] sm:$0xf]  ;;  %4054 = vmatpush.bf16.msra.mxu0 %v5727_v29  ;;  %4034 = vmatpush.bf16.msrb.mxu2 %v7067_v32  ;;  %v7945_v26 = vld [vmem:[#allocation8 + $0x2cc] sm:$0xf] }
 0x17d   :  { %v8245_v38 = vld [vmem:[#allocation8 + $0xc24] sm:$0xf0]  ;;  %4023 = vmatmul.bf16.vlgmr.msrb.gmra.mxu1 %v8758_v10  ;;  %v5852_v27 = vld [vmem:[#allocation8 + $0x2e8] sm:$0xf0] }
 0x17e   :  { %v7290_v39 = vld [vmem:[#allocation8 + $0xe08] sm:$0xf]  ;;  %4067 = vmatpush.bf16.msra.mxu1 %v5983_v31  ;;  %v7035_v52 = vor.u32 %v8245_v38, %v7034_v37  ;;  %4047 = vmatpush.bf16.msrb.mxu3 %v7323_v36  ;;  %v8017_v29 = vld [vmem:[#allocation8 + $0x50c] sm:$0xf]  ;;  %v5599_v31 = vor.u32 %v7881_v24, %v5596_v3  ;;  %v5855_v34 = vor.u32 %v7945_v26, %v5852_v27  ;;  %v3753_v37 = vpop.f32.mrf.mxu0 }
 0x17f   :  { %v8309_v40 = vld [vmem:[#allocation8 + $0xe24] sm:$0xf0]  ;;  %v8081_v32 = vld [vmem:[#allocation8 + $0x70c] sm:$0xf]  ;;  %v6143_v38 = vor.u32 %v8017_v29, %v6140_v30 }
 0x180   :  { %v7291_v55 = vor.u32 %v8309_v40, %v7290_v39  ;;  %4055 = vmatpush.bf16.msra.mxu0 %v5695_v43  ;;  %4035 = vmatpush.bf16.msrb.mxu2 %v7035_v52  ;;  %v5564_v36 = vld [vmem:[#allocation8 + $0xa8] sm:$0xf0]  ;;  %v6399_v41 = vor.u32 %v8081_v32, %v6396_v33  ;;  %v3766_v42 = vpop.f32.mrf.mxu1 }
 0x181   :  { %v7937_v39 = vld [vmem:[#allocation8 + $0x28c] sm:$0xf]  ;;  %v5567_v47 = vor.u32 %v7873_v35, %v5564_v36 }
 0x182   :  { %4068 = vmatpush.bf16.msra.mxu1 %v5951_v50  ;;  %4048 = vmatpush.bf16.msrb.mxu3 %v7291_v55  ;;  %v5820_v40 = vld [vmem:[#allocation8 + $0x2a8] sm:$0xf0] }
 0x183   :  { %4036 = vmatmul.bf16.vlgmr.msrb.gmra.mxu2 %v8762_v48  ;;  %v8009_v43 = vld [vmem:[#allocation8 + $0x4cc] sm:$0xf]  ;;  %v5823_v53 = vor.u32 %v7937_v39, %v5820_v40 }
 0x184   :  { %4080 = vmatpush.bf16.msra.mxu2 %v6239_v56  ;;  %4056 = vmatpush.bf16.msra.mxu0 %v5663_v63  ;;  %v8073_v50 = vld [vmem:[#allocation8 + $0x6cc] sm:$0xf]  ;;  %v6111_v56 = vor.u32 %v8009_v43, %v6108_v46 }
 0x185   :  { %4049 = vmatmul.bf16.vlgmr.msrb.gmra.mxu3 %v8764_v45  ;;  %v6364_v52 = vld [vmem:[#allocation8 + $0x6e8] sm:$0xf0] }
 0x186   :  { %4093 = vmatpush.bf16.msra.mxu3 %v6495_v59  ;;  %4069 = vmatpush.bf16.msra.mxu1 %v5919_v2  ;;  %v5532_v55 = vld [vmem:[#allocation8 + $0x68] sm:$0xf0]  ;;  %v3777_v59 = vpop.f32.mrf.mxu2  ;;  %v6367_v60 = vor.u32 %v8073_v50, %v6364_v52 }
 0x187   :  { %v5788_v58 = vld [vmem:[#allocation8 + $0x268] sm:$0xf0]  ;;  %v3778_v63 = vadd.f32 %v3777_v59, %v3765_v21  ;;  %v5535_v1 = vor.u32 %v7865_v54, %v5532_v55 }
 0x188   :  { %4081 = vmatpush.bf16.msra.mxu2 %v6207_v8  ;;  %4057 = vmatpush.bf16.msra.mxu0 %v5631_v17  ;;  %v8001_v61 = vld [vmem:[#allocation8 + $0x48c] sm:$0xf]  ;;  %v5791_v6 = vor.u32 %v7929_v57, %v5788_v58 }
 0x189   :  { %v6076_v62 = vld [vmem:[#allocation8 + $0x4a8] sm:$0xf0]  ;;  %v8787_v12 = vadd.f32 %v3790_v0, %v3778_v63 }
 0x18a   :  { %4094 = vmatpush.bf16.msra.mxu3 %v6463_v13  ;;  %4070 = vmatpush.bf16.msra.mxu1 %v5887_v22  ;;  %v8065_v2 = vld [vmem:[#allocation8 + $0x68c] sm:$0xf]  ;;  %v6079_v13 = vor.u32 %v8001_v61, %v6076_v62 }
 0x18b   :  { %v6332_v4 = vld [vmem:[#allocation8 + $0x6a8] sm:$0xf0] }
 0x18c   :  { %4082 = vmatpush.bf16.msra.mxu2 %v6175_v25  ;;  %4058 = vmatpush.bf16.msra.mxu0 %v5599_v31  ;;  %v7857_v5 = vld [vmem:[#allocation8 + $0xc] sm:$0xf]  ;;  %v6335_v17 = vor.u32 %v8065_v2, %v6332_v4 }
 0x18d   :  { %v5500_v8 = vld [vmem:[#allocation8 + $0x28] sm:$0xf0] }
 0x18e   :  { %4095 = vmatpush.bf16.msra.mxu3 %v6431_v28  ;;  %4071 = vmatpush.bf16.msra.mxu1 %v5855_v34  ;;  %v7921_v9 = vld [vmem:[#allocation8 + $0x20c] sm:$0xf]  ;;  %v5503_v22 = vor.u32 %v7857_v5, %v5500_v8  ;;  %v3779_v33 = vpop.f32.mrf.mxu2  ;;  %v3803_v8 = vpop.f32.mrf.mxu0 }
 0x18f   :  { %v5756_v11 = vld [vmem:[#allocation8 + $0x228] sm:$0xf0] }
 0x190   :  { %4083 = vmatpush.bf16.msra.mxu2 %v6143_v38  ;;  %4059 = vmatpush.bf16.msra.mxu0 %v5567_v47  ;;  %v8169_v14 = vld [vmem:[#allocation8 + $0x9cc] sm:$0xf]  ;;  %v5759_v25 = vor.u32 %v7921_v9, %v5756_v11  ;;  %v3792_v38 = vpop.f32.mrf.mxu3 }
 0x191   :  { %v6748_v15 = vld [vmem:[#allocation8 + $0x9e8] sm:$0xf0] }
 0x192   :  { %4096 = vmatpush.bf16.msra.mxu3 %v6399_v41  ;;  %4072 = vmatpush.bf16.msra.mxu1 %v5823_v53  ;;  %v8233_v16 = vld [vmem:[#allocation8 + $0xbcc] sm:$0xf]  ;;  %v6751_v26 = vor.u32 %v8169_v14, %v6748_v15  ;;  %v3804_v14 = vadd.f32 %v3803_v8, %v8787_v12  ;;  %v3816_v15 = vpop.f32.mrf.mxu1 }
 0x193   :  { %v7004_v19 = vld [vmem:[#allocation8 + $0xbe8] sm:$0xf0] }
 0x194   :  { %4084 = vmatpush.bf16.msra.mxu2 %v6111_v56  ;;  %v7993_v20 = vld [vmem:[#allocation8 + $0x44c] sm:$0xf]  ;;  %4060 = vmatpush.bf16.msra.mxu0 %v5535_v1  ;;  %v7007_v28 = vor.u32 %v8233_v16, %v7004_v19 }
 0x195   :  { %v6044_v21 = vld [vmem:[#allocation8 + $0x468] sm:$0xf0] }
 0x196   :  { %4097 = vmatpush.bf16.msra.mxu3 %v6367_v60  ;;  %v8057_v24 = vld [vmem:[#allocation8 + $0x64c] sm:$0xf]  ;;  %4073 = vmatpush.bf16.msra.mxu1 %v5791_v6  ;;  %v6047_v29 = vor.u32 %v7993_v20, %v6044_v21  ;;  %v3805_v38 = vpop.f32.mrf.mxu0 }
 0x197   :  { %v6300_v3 = vld [vmem:[#allocation8 + $0x668] sm:$0xf0] }
 0x198   :  { %v8161_v27 = vld [vmem:[#allocation8 + $0x98c] sm:$0xf]  ;;  %4085 = vmatpush.bf16.msra.mxu2 %v6079_v13  ;;  %v6303_v34 = vor.u32 %v8057_v24, %v6300_v3  ;;  %4061 = vmatpush.bf16.msra.mxu0 %v5503_v22  ;;  %v3817_v24 = vadd.f32 %v3816_v15, %v3804_v14  ;;  %v7918_v14 = vld [vmem:[#allocation8 + $0x1ec] sm:$0xf0] }
 0x199   :  { %v6716_v30 = vld [vmem:[#allocation8 + $0x9a8] sm:$0xf0]  ;;  %v5986_v15 = vld [vmem:[#allocation8 + $0x3d0] sm:$0xf] }
 0x19a   :  { %v8225_v31 = vld [vmem:[#allocation8 + $0xb8c] sm:$0xf]  ;;  %4098 = vmatpush.bf16.msra.mxu3 %v6335_v17  ;;  %4074 = vmatpush.bf16.msra.mxu1 %v5759_v25  ;;  %v6719_v42 = vor.u32 %v8161_v27, %v6716_v30 }
 0x19b   :  { %v6972_v32 = vld [vmem:[#allocation8 + $0xba8] sm:$0xf0]  ;;  %4062 = vmatmul.bf16.vlgmr.msra.gmra.mxu0 %v8739_v18 }
 0x19c   :  { %v7985_v35 = vld [vmem:[#allocation8 + $0x40c] sm:$0xf]  ;;  %4106 = vmatpush.bf16.msrb.mxu0 %v6751_v26  ;;  %4086 = vmatpush.bf16.msra.mxu2 %v6047_v29  ;;  %v6975_v47 = vor.u32 %v8225_v31, %v6972_v32 }
 0x19d   :  { %v6012_v36 = vld [vmem:[#allocation8 + $0x428] sm:$0xf0]  ;;  %4075 = vmatmul.bf16.vlgmr.msra.gmra.mxu1 %v8742_v23 }
 0x19e   :  { %v8049_v37 = vld [vmem:[#allocation8 + $0x60c] sm:$0xf]  ;;  %4119 = vmatpush.bf16.msrb.mxu1 %v7007_v28  ;;  %v6015_v50 = vor.u32 %v7985_v35, %v6012_v36  ;;  %4099 = vmatpush.bf16.msra.mxu3 %v6303_v34 }
 0x19f   :  { %v6268_v39 = vld [vmem:[#allocation8 + $0x628] sm:$0xf0] }
 0x1a0   :  { %v8297_v40 = vld [vmem:[#allocation8 + $0xdcc] sm:$0xf]  ;;  %v6271_v54 = vor.u32 %v8049_v37, %v6268_v39  ;;  %4107 = vmatpush.bf16.msrb.mxu0 %v6719_v42  ;;  %4087 = vmatpush.bf16.msra.mxu2 %v6015_v50  ;;  %v3818_v42 = vpop.f32.mrf.mxu1 }
 0x1a1   :  { %v7260_v41 = vld [vmem:[#allocation8 + $0xde8] sm:$0xf0]  ;;  %v6242_v42 = vld [vmem:[#allocation8 + $0x5d0] sm:$0xf] }
 0x1a2   :  { %v8361_v43 = vld [vmem:[#allocation8 + $0xfcc] sm:$0xf]  ;;  %v7263_v55 = vor.u32 %v8297_v40, %v7260_v41  ;;  %4120 = vmatpush.bf16.msrb.mxu1 %v6975_v47  ;;  %4100 = vmatpush.bf16.msra.mxu3 %v6271_v54 }
 0x1a3   :  { %v7516_v46 = vld [vmem:[#allocation8 + $0xfe8] sm:$0xf0]  ;;  %4088 = vmatmul.bf16.vlgmr.msra.gmra.mxu2 %v8746_v44 }
 0x1a4   :  { %v8153_v52 = vld [vmem:[#allocation8 + $0x94c] sm:$0xf]  ;;  %v7519_v58 = vor.u32 %v8361_v43, %v7516_v46  ;;  %4132 = vmatpush.bf16.msrb.mxu2 %v7263_v55 }
 0x1a5   :  { %v6684_v53 = vld [vmem:[#allocation8 + $0x968] sm:$0xf0]  ;;  %4101 = vmatmul.bf16.vlgmr.msra.gmra.mxu3 %v8748_v51 }
 0x1a6   :  { %v8217_v56 = vld [vmem:[#allocation8 + $0xb4c] sm:$0xf]  ;;  %v6687_v61 = vor.u32 %v8153_v52, %v6684_v53  ;;  %4145 = vmatpush.bf16.msrb.mxu3 %v7519_v58 }
 0x1a7   :  { %v6940_v57 = vld [vmem:[#allocation8 + $0xb68] sm:$0xf0] }
 0x1a8   :  { %v8289_v59 = vld [vmem:[#allocation8 + $0xd8c] sm:$0xf]  ;;  %v6943_v0 = vor.u32 %v8217_v56, %v6940_v57  ;;  %4108 = vmatpush.bf16.msrb.mxu0 %v6687_v61  ;;  %v3829_v61 = vpop.f32.mrf.mxu2 }
 0x1a9   :  { %v7228_v60 = vld [vmem:[#allocation8 + $0xda8] sm:$0xf0] }
 0x1aa   :  { %v8353_v62 = vld [vmem:[#allocation8 + $0xf8c] sm:$0xf]  ;;  %v7231_v4 = vor.u32 %v8289_v59, %v7228_v60  ;;  %4121 = vmatpush.bf16.msrb.mxu1 %v6943_v0 }
 0x1ab   :  { %v7484_v63 = vld [vmem:[#allocation8 + $0xfa8] sm:$0xf0] }
 0x1ac   :  { %v8145_v1 = vld [vmem:[#allocation8 + $0x90c] sm:$0xf]  ;;  %v7487_v9 = vor.u32 %v8353_v62, %v7484_v63  ;;  %4133 = vmatpush.bf16.msrb.mxu2 %v7231_v4  ;;  %v1167_v63 = vperm.slane %v8780_v49, 1  ;;  %v3842_v4 = vpop.f32.mrf.mxu3 }
 0x1ad   :  { %v6652_v2 = vld [vmem:[#allocation8 + $0x928] sm:$0xf0] }
 0x1ae   :  { %v8209_v5 = vld [vmem:[#allocation8 + $0xb0c] sm:$0xf]  ;;  %v6655_v16 = vor.u32 %v8145_v1, %v6652_v2  ;;  %4146 = vmatpush.bf16.msrb.mxu3 %v7487_v9  ;;  %v3830_v2 = vadd.f32 %v3829_v61, %v3817_v24  ;;  %v7966_v61 = vld [vmem:[#allocation8 + $0x36c] sm:$0xf0] }
 0x1af   :  { %v6908_v6 = vld [vmem:[#allocation8 + $0xb28] sm:$0xf0] }
 0x1b0   :  { %v8281_v11 = vld [vmem:[#allocation8 + $0xd4c] sm:$0xf]  ;;  %v6911_v20 = vor.u32 %v8209_v5, %v6908_v6  ;;  %4109 = vmatpush.bf16.msrb.mxu0 %v6655_v16  ;;  %v8795_v16 = vadd.f32 %v3842_v4, %v3830_v2  ;;  %v6466_v4 = vld [vmem:[#allocation8 + $0x790] sm:$0xf] }
 0x1b1   :  { %v7196_v13 = vld [vmem:[#allocation8 + $0xd68] sm:$0xf0] }
 0x1b2   :  { %v8345_v17 = vld [vmem:[#allocation8 + $0xf4c] sm:$0xf]  ;;  %v7199_v3 = vor.u32 %v8281_v11, %v7196_v13  ;;  %4122 = vmatpush.bf16.msrb.mxu1 %v6911_v20  ;;  %v5730_v13 = vld [vmem:[#allocation8 + $0x1d0] sm:$0xf] }
 0x1b3   :  { %v7452_v19 = vld [vmem:[#allocation8 + $0xf68] sm:$0xf0]  ;;  %v7982_v20 = vld [vmem:[#allocation8 + $0x3ec] sm:$0xf0] }
 0x1b4   :  { %v8137_v21 = vld [vmem:[#allocation8 + $0x8cc] sm:$0xf]  ;;  %v7455_v27 = vor.u32 %v8345_v17, %v7452_v19  ;;  %4134 = vmatpush.bf16.msrb.mxu2 %v7199_v3  ;;  %v3855_v17 = vpop.f32.mrf.mxu0  ;;  %v3868_v3 = vpop.f32.mrf.mxu1 }
 0x1b5   :  { %v6620_v22 = vld [vmem:[#allocation8 + $0x8e8] sm:$0xf0]  ;;  %v3856_v24 = vadd.f32 %v3855_v17, %v1167_v63 }
 0x1b6   :  { %v8201_v25 = vld [vmem:[#allocation8 + $0xacc] sm:$0xf]  ;;  %v6623_v12 = vor.u32 %v8137_v21, %v6620_v22  ;;  %4147 = vmatpush.bf16.msrb.mxu3 %v7455_v27 }
 0x1b7   :  { %v6876_v26 = vld [vmem:[#allocation8 + $0xae8] sm:$0xf0] }
 0x1b8   :  { %v8273_v28 = vld [vmem:[#allocation8 + $0xd0c] sm:$0xf]  ;;  %v6879_v32 = vor.u32 %v8201_v25, %v6876_v26  ;;  %4110 = vmatpush.bf16.msrb.mxu0 %v6623_v12  ;;  %v5698_v12 = vld [vmem:[#allocation8 + $0x190] sm:$0xf] }
 0x1b9   :  { %v7164_v29 = vld [vmem:[#allocation8 + $0xd28] sm:$0xf0] }
 0x1ba   :  { %v8337_v30 = vld [vmem:[#allocation8 + $0xf0c] sm:$0xf]  ;;  %v7167_v35 = vor.u32 %v8273_v28, %v7164_v29  ;;  %4123 = vmatpush.bf16.msrb.mxu1 %v6879_v32  ;;  %v5731_v29 = vor.u32 %v7918_v14, %v5730_v13  ;;  %v5890_v13 = vld [vmem:[#allocation8 + $0x310] sm:$0xf] }
 0x1bb   :  { %v7420_v31 = vld [vmem:[#allocation8 + $0xf28] sm:$0xf0]  ;;  %v7958_v14 = vld [vmem:[#allocation8 + $0x32c] sm:$0xf0] }
 0x1bc   :  { %v8129_v33 = vld [vmem:[#allocation8 + $0x88c] sm:$0xf]  ;;  %v7423_v39 = vor.u32 %v8337_v30, %v7420_v31  ;;  %4135 = vmatpush.bf16.msrb.mxu2 %v7167_v35  ;;  %v3869_v30 = vadd.f32 %v3868_v3, %v3856_v24  ;;  %v5987_v31 = vor.u32 %v7982_v20, %v5986_v15  ;;  %v7974_v35 = vld [vmem:[#allocation8 + $0x3ac] sm:$0xf0] }
 0x1bd   :  { %v6588_v34 = vld [vmem:[#allocation8 + $0x8a8] sm:$0xf0]  ;;  %v8030_v20 = vld [vmem:[#allocation8 + $0x56c] sm:$0xf0] }
 0x1be   :  { %v8193_v36 = vld [vmem:[#allocation8 + $0xa8c] sm:$0xf]  ;;  %v6591_v43 = vor.u32 %v8129_v33, %v6588_v34  ;;  %4148 = vmatpush.bf16.msrb.mxu3 %v7423_v39  ;;  %v7910_v33 = vld [vmem:[#allocation8 + $0x1ac] sm:$0xf0] }
 0x1bf   :  { %v6844_v37 = vld [vmem:[#allocation8 + $0xaa8] sm:$0xf0]  ;;  %v5954_v34 = vld [vmem:[#allocation8 + $0x390] sm:$0xf] }
 0x1c0   :  { %v8265_v40 = vld [vmem:[#allocation8 + $0xccc] sm:$0xf]  ;;  %v6847_v50 = vor.u32 %v8193_v36, %v6844_v37  ;;  %4111 = vmatpush.bf16.msrb.mxu0 %v6591_v43  ;;  %v8046_v43 = vld [vmem:[#allocation8 + $0x5ec] sm:$0xf0] }
 0x1c1   :  { %v7132_v41 = vld [vmem:[#allocation8 + $0xce8] sm:$0xf0]  ;;  %v6434_v3 = vld [vmem:[#allocation8 + $0x750] sm:$0xf] }
 0x1c2   :  { %v8329_v46 = vld [vmem:[#allocation8 + $0xecc] sm:$0xf]  ;;  %v7135_v54 = vor.u32 %v8265_v40, %v7132_v41  ;;  %4124 = vmatpush.bf16.msrb.mxu1 %v6847_v50  ;;  %v3831_v40 = vpop.f32.mrf.mxu2  ;;  %v6498_v50 = vld [vmem:[#allocation8 + $0x7d0] sm:$0xf] }
 0x1c3   :  { %v7388_v47 = vld [vmem:[#allocation8 + $0xee8] sm:$0xf0]  ;;  %v8086_v40 = vld [vmem:[#allocation8 + $0x72c] sm:$0xf0] }
 0x1c4   :  { %v8121_v52 = vld [vmem:[#allocation8 + $0x84c] sm:$0xf]  ;;  %v7391_v57 = vor.u32 %v8329_v46, %v7388_v47  ;;  %4136 = vmatpush.bf16.msrb.mxu2 %v7135_v54  ;;  %v3844_v46 = vpop.f32.mrf.mxu3  ;;  %v5699_v47 = vor.u32 %v7910_v33, %v5698_v12 }
 0x1c5   :  { %v6556_v53 = vld [vmem:[#allocation8 + $0x868] sm:$0xf0] }
 0x1c6   :  { %v8185_v55 = vld [vmem:[#allocation8 + $0xa4c] sm:$0xf]  ;;  %v6559_v62 = vor.u32 %v8121_v52, %v6556_v53  ;;  %4149 = vmatpush.bf16.msrb.mxu3 %v7391_v57  ;;  %v8110_v52 = vld [vmem:[#allocation8 + $0x7ec] sm:$0xf0]  ;;  %v5955_v53 = vor.u32 %v7974_v35, %v5954_v34  ;;  %v3857_v57 = vpop.f32.mrf.mxu0 }
 0x1c7   :  { %v6812_v56 = vld [vmem:[#allocation8 + $0xa68] sm:$0xf0]  ;;  %v6499_v63 = vor.u32 %v8110_v52, %v6498_v50  ;;  %v6146_v34 = vld [vmem:[#allocation8 + $0x510] sm:$0xf] }
 0x1c8   :  { %v8257_v58 = vld [vmem:[#allocation8 + $0xc8c] sm:$0xf]  ;;  %v6815_v5 = vor.u32 %v8185_v55, %v6812_v56  ;;  %4112 = vmatpush.bf16.msrb.mxu0 %v6559_v62  ;;  %v5666_v55 = vld [vmem:[#allocation8 + $0x150] sm:$0xf]  ;;  %v3870_v62 = vpop.f32.mrf.mxu1 }
 0x1c9   :  { %v7100_v59 = vld [vmem:[#allocation8 + $0xca8] sm:$0xf0]  ;;  %v7902_v56 = vld [vmem:[#allocation8 + $0x16c] sm:$0xf0] }
 0x1ca   :  { %v8321_v60 = vld [vmem:[#allocation8 + $0xe8c] sm:$0xf]  ;;  %v7103_v11 = vor.u32 %v8257_v58, %v7100_v59  ;;  %4125 = vmatpush.bf16.msrb.mxu1 %v6815_v5  ;;  %v6243_v59 = vor.u32 %v8046_v43, %v6242_v42  ;;  %v5667_v2 = vor.u32 %v7902_v56, %v5666_v55  ;;  %v8102_v5 = vld [vmem:[#allocation8 + $0x7ac] sm:$0xf0]  ;;  %v3881_v15 = vpop.f32.mrf.mxu2 }
 0x1cb   :  { %v7356_v0 = vld [vmem:[#allocation8 + $0xea8] sm:$0xf0]  ;;  %v6467_v17 = vor.u32 %v8102_v5, %v6466_v4  ;;  %v8022_v35 = vld [vmem:[#allocation8 + $0x52c] sm:$0xf0] }
 0x1cc   :  { %v8113_v1 = vld [vmem:[#allocation8 + $0x80c] sm:$0xf]  ;;  %v7359_v19 = vor.u32 %v8321_v60, %v7356_v0  ;;  %4137 = vmatpush.bf16.msrb.mxu2 %v7103_v11  ;;  %v5922_v60 = vld [vmem:[#allocation8 + $0x350] sm:$0xf] }
 0x1cd   :  { %v6524_v6 = vld [vmem:[#allocation8 + $0x828] sm:$0xf0]  ;;  %v6210_v0 = vld [vmem:[#allocation8 + $0x590] sm:$0xf] }
 0x1ce   :  { %v8177_v8 = vld [vmem:[#allocation8 + $0xa0c] sm:$0xf]  ;;  %v6527_v25 = vor.u32 %v8113_v1, %v6524_v6  ;;  %4150 = vmatpush.bf16.msrb.mxu3 %v7359_v19  ;;  %v8038_v1 = vld [vmem:[#allocation8 + $0x5ac] sm:$0xf0]  ;;  %v5923_v6 = vor.u32 %v7966_v61, %v5922_v60 }
 0x1cf   :  { %v6780_v9 = vld [vmem:[#allocation8 + $0xa28] sm:$0xf0]  ;;  %v6211_v11 = vor.u32 %v8038_v1, %v6210_v0  ;;  %v6178_v19 = vld [vmem:[#allocation8 + $0x550] sm:$0xf] }
 0x1d0   :  { %v8249_v21 = vld [vmem:[#allocation8 + $0xc4c] sm:$0xf]  ;;  %v6783_v28 = vor.u32 %v8177_v8, %v6780_v9  ;;  %4113 = vmatpush.bf16.msrb.mxu0 %v6527_v25  ;;  %v5634_v8 = vld [vmem:[#allocation8 + $0x110] sm:$0xf]  ;;  %v6179_v12 = vor.u32 %v8030_v20, %v6178_v19 }
 0x1d1   :  { %v7068_v22 = vld [vmem:[#allocation8 + $0xc68] sm:$0xf0]  ;;  %v7894_v9 = vld [vmem:[#allocation8 + $0x12c] sm:$0xf0] }
 0x1d2   :  { %v8313_v26 = vld [vmem:[#allocation8 + $0xe4c] sm:$0xf]  ;;  %v7071_v32 = vor.u32 %v8249_v21, %v7068_v22  ;;  %4126 = vmatpush.bf16.msrb.mxu1 %v6783_v28  ;;  %v3882_v21 = vadd.f32 %v3881_v15, %v3869_v30  ;;  %v3894_v22 = vpop.f32.mrf.mxu3  ;;  %v5635_v24 = vor.u32 %v7894_v9, %v5634_v8  ;;  %v8094_v25 = vld [vmem:[#allocation8 + $0x76c] sm:$0xf0]  ;;  %v3907_v30 = vpop.f32.mrf.mxu0 }
 0x1d3   :  { %v7324_v27 = vld [vmem:[#allocation8 + $0xe68] sm:$0xf0]  ;;  %4114 = vmatmul.bf16.vlgmr.msrb.gmra.mxu0 %v8755_v7  ;;  %v7886_v28 = vld [vmem:[#allocation8 + $0xec] sm:$0xf0]  ;;  %v6435_v33 = vor.u32 %v8094_v25, %v6434_v3 }
 0x1d4   :  { %v7327_v36 = vor.u32 %v8313_v26, %v7324_v27  ;;  %v8241_v37 = vld [vmem:[#allocation8 + $0xc0c] sm:$0xf]  ;;  %4158 = vmatpush.bf16.msra.mxu0 %v5731_v29  ;;  %4138 = vmatpush.bf16.msrb.mxu2 %v7071_v32  ;;  %v5891_v26 = vor.u32 %v7958_v14, %v5890_v13  ;;  %v5602_v27 = vld [vmem:[#allocation8 + $0xd0] sm:$0xf]  ;;  %v3895_v29 = vadd.f32 %v3894_v22, %v3882_v21 }
 0x1d5   :  { %v7036_v38 = vld [vmem:[#allocation8 + $0xc28] sm:$0xf0]  ;;  %4127 = vmatmul.bf16.vlgmr.msrb.gmra.mxu1 %v8758_v10  ;;  %v7950_v32 = vld [vmem:[#allocation8 + $0x2ec] sm:$0xf0] }
 0x1d6   :  { %v8305_v39 = vld [vmem:[#allocation8 + $0xe0c] sm:$0xf]  ;;  %4171 = vmatpush.bf16.msra.mxu1 %v5987_v31  ;;  %v7039_v54 = vor.u32 %v8241_v37, %v7036_v38  ;;  %4151 = vmatpush.bf16.msrb.mxu3 %v7327_v36  ;;  %v5858_v31 = vld [vmem:[#allocation8 + $0x2d0] sm:$0xf]  ;;  %v3908_v36 = vadd.f32 %v3907_v30, %v3895_v29  ;;  %v3920_v37 = vpop.f32.mrf.mxu1  ;;  %v5603_v38 = vor.u32 %v7886_v28, %v5602_v27 }
 0x1d7   :  { %v7292_v41 = vld [vmem:[#allocation8 + $0xe28] sm:$0xf0]  ;;  %v5570_v42 = vld [vmem:[#allocation8 + $0x90] sm:$0xf] }
 0x1d8   :  { %v7295_v58 = vor.u32 %v8305_v39, %v7292_v41  ;;  %4159 = vmatpush.bf16.msra.mxu0 %v5699_v47  ;;  %4139 = vmatpush.bf16.msrb.mxu2 %v7039_v54  ;;  %v6402_v39 = vld [vmem:[#allocation8 + $0x710] sm:$0xf]  ;;  %v5859_v41 = vor.u32 %v7950_v32, %v5858_v31  ;;  %v3921_v46 = vadd.f32 %v3920_v37, %v3908_v36 }
 0x1d9   :  { %v7878_v43 = vld [vmem:[#allocation8 + $0xac] sm:$0xf0]  ;;  %v6147_v47 = vor.u32 %v8022_v35, %v6146_v34  ;;  %v6403_v54 = vor.u32 %v8086_v40, %v6402_v39 }
 0x1da   :  { %4172 = vmatpush.bf16.msra.mxu1 %v5955_v53  ;;  %4152 = vmatpush.bf16.msrb.mxu3 %v7295_v58  ;;  %v5826_v50 = vld [vmem:[#allocation8 + $0x290] sm:$0xf]  ;;  %v3883_v53 = vpop.f32.mrf.mxu2  ;;  %v3896_v57 = vpop.f32.mrf.mxu3  ;;  %v5571_v58 = vor.u32 %v7878_v43, %v5570_v42 }
 0x1db   :  { %4140 = vmatmul.bf16.vlgmr.msrb.gmra.mxu2 %v8762_v48  ;;  %v7942_v52 = vld [vmem:[#allocation8 + $0x2ac] sm:$0xf0]  ;;  %v3909_v4 = vpop.f32.mrf.mxu0 }
 0x1dc   :  { %4184 = vmatpush.bf16.msra.mxu2 %v6243_v59  ;;  %4160 = vmatpush.bf16.msra.mxu0 %v5667_v2  ;;  %v6114_v55 = vld [vmem:[#allocation8 + $0x4d0] sm:$0xf]  ;;  %v5827_v61 = vor.u32 %v7942_v52, %v5826_v50 }
 0x1dd   :  { %4153 = vmatmul.bf16.vlgmr.msrb.gmra.mxu3 %v8764_v45  ;;  %v8014_v56 = vld [vmem:[#allocation8 + $0x4ec] sm:$0xf0] }
 0x1de   :  { %4197 = vmatpush.bf16.msra.mxu3 %v6499_v63  ;;  %4173 = vmatpush.bf16.msra.mxu1 %v5923_v6  ;;  %v6370_v59 = vld [vmem:[#allocation8 + $0x6d0] sm:$0xf]  ;;  %v6115_v0 = vor.u32 %v8014_v56, %v6114_v55  ;;  %v3922_v9 = vpop.f32.mrf.mxu1 }
 0x1df   :  { %v8078_v60 = vld [vmem:[#allocation8 + $0x6ec] sm:$0xf0] }
 0x1e0   :  { %4185 = vmatpush.bf16.msra.mxu2 %v6211_v11  ;;  %4161 = vmatpush.bf16.msra.mxu0 %v5635_v24  ;;  %v5538_v62 = vld [vmem:[#allocation8 + $0x50] sm:$0xf]  ;;  %v6371_v5 = vor.u32 %v8078_v60, %v6370_v59 }
 0x1e1   :  { %v7870_v63 = vld [vmem:[#allocation8 + $0x6c] sm:$0xf0] }
 0x1e2   :  { %4198 = vmatpush.bf16.msra.mxu3 %v6467_v17  ;;  %4174 = vmatpush.bf16.msra.mxu1 %v5891_v26  ;;  %v5794_v1 = vld [vmem:[#allocation8 + $0x250] sm:$0xf]  ;;  %v5539_v11 = vor.u32 %v7870_v63, %v5538_v62  ;;  %v3946_v31 = vpop.f32.mrf.mxu3 }
 0x1e3   :  { %v7934_v2 = vld [vmem:[#allocation8 + $0x26c] sm:$0xf0] }
 0x1e4   :  { %4186 = vmatpush.bf16.msra.mxu2 %v6179_v12  ;;  %4162 = vmatpush.bf16.msra.mxu0 %v5603_v38  ;;  %v6082_v6 = vld [vmem:[#allocation8 + $0x490] sm:$0xf]  ;;  %v5795_v17 = vor.u32 %v7934_v2, %v5794_v1  ;;  %v3933_v12 = vpop.f32.mrf.mxu2 }
 0x1e5   :  { %v8006_v8 = vld [vmem:[#allocation8 + $0x4ac] sm:$0xf0]  ;;  %v3934_v34 = vadd.f32 %v3933_v12, %v3921_v46 }
 0x1e6   :  { %4199 = vmatpush.bf16.msra.mxu3 %v6435_v33  ;;  %4175 = vmatpush.bf16.msra.mxu1 %v5859_v41  ;;  %v6338_v13 = vld [vmem:[#allocation8 + $0x690] sm:$0xf]  ;;  %v6083_v22 = vor.u32 %v8006_v8, %v6082_v6 }
 0x1e7   :  { %v8070_v14 = vld [vmem:[#allocation8 + $0x6ac] sm:$0xf0]  ;;  %v8801_v43 = vadd.f32 %v3946_v31, %v3934_v34 }
 0x1e8   :  { %4187 = vmatpush.bf16.msra.mxu2 %v6147_v47  ;;  %4163 = vmatpush.bf16.msra.mxu0 %v5571_v58  ;;  %v5506_v15 = vld [vmem:[#allocation8 + $0x10] sm:$0xf]  ;;  %v6339_v26 = vor.u32 %v8070_v14, %v6338_v13 }
 0x1e9   :  { %v7862_v19 = vld [vmem:[#allocation8 + $0x2c] sm:$0xf0] }
 0x1ea   :  { %4200 = vmatpush.bf16.msra.mxu3 %v6403_v54  ;;  %4176 = vmatpush.bf16.msra.mxu1 %v5827_v61  ;;  %v5762_v20 = vld [vmem:[#allocation8 + $0x210] sm:$0xf]  ;;  %v5507_v32 = vor.u32 %v7862_v19, %v5506_v15 }
 0x1eb   :  { %v7926_v21 = vld [vmem:[#allocation8 + $0x22c] sm:$0xf0] }
 0x1ec   :  { %4188 = vmatpush.bf16.msra.mxu2 %v6115_v0  ;;  %v6754_v24 = vld [vmem:[#allocation8 + $0x9d0] sm:$0xf]  ;;  %4164 = vmatpush.bf16.msra.mxu0 %v5539_v11  ;;  %v5763_v35 = vor.u32 %v7926_v21, %v5762_v20  ;;  %v3935_v4 = vpop.f32.mrf.mxu2 }
 0x1ed   :  { %v8174_v3 = vld [vmem:[#allocation8 + $0x9ec] sm:$0xf0] }
 0x1ee   :  { %v7010_v25 = vld [vmem:[#allocation8 + $0xbd0] sm:$0xf]  ;;  %4201 = vmatpush.bf16.msra.mxu3 %v6371_v5  ;;  %4177 = vmatpush.bf16.msra.mxu1 %v5795_v17  ;;  %v6755_v36 = vor.u32 %v8174_v3, %v6754_v24  ;;  %v3948_v5 = vpop.f32.mrf.mxu3 }
 0x1ef   :  { %v8238_v27 = vld [vmem:[#allocation8 + $0xbec] sm:$0xf0] }
 0x1f0   :  { %v6050_v28 = vld [vmem:[#allocation8 + $0x450] sm:$0xf]  ;;  %4189 = vmatpush.bf16.msra.mxu2 %v6083_v22  ;;  %v7011_v38 = vor.u32 %v8238_v27, %v7010_v25  ;;  %4165 = vmatpush.bf16.msra.mxu0 %v5507_v32 }
 0x1f1   :  { %v7998_v29 = vld [vmem:[#allocation8 + $0x46c] sm:$0xf0] }
 0x1f2   :  { %v6306_v30 = vld [vmem:[#allocation8 + $0x650] sm:$0xf]  ;;  %v6051_v39 = vor.u32 %v7998_v29, %v6050_v28  ;;  %4202 = vmatpush.bf16.msra.mxu3 %v6339_v26  ;;  %4178 = vmatpush.bf16.msra.mxu1 %v5763_v35  ;;  %v1168_v26 = vperm.slane %v8780_v49, 2  ;;  %v3959_v35 = vpop.f32.mrf.mxu0  ;;  %v3972_v49 = vpop.f32.mrf.mxu1 }
 0x1f3   :  { %v8062_v33 = vld [vmem:[#allocation8 + $0x66c] sm:$0xf0]  ;;  %4166 = vmatmul.bf16.vlgmr.msra.gmra.mxu0 %v8739_v18 }
 0x1f4   :  { %v6722_v37 = vld [vmem:[#allocation8 + $0x990] sm:$0xf]  ;;  %v6307_v47 = vor.u32 %v8062_v33, %v6306_v30  ;;  %4210 = vmatpush.bf16.msrb.mxu0 %v6755_v36  ;;  %4190 = vmatpush.bf16.msra.mxu2 %v6051_v39  ;;  %v3960_v39 = vadd.f32 %v3959_v35, %v1168_v26  ;;  %v7978_v26 = vld [vmem:[#allocation8 + $0x3d4] sm:$0xf] }
 0x1f5   :  { %v8166_v40 = vld [vmem:[#allocation8 + $0x9ac] sm:$0xf0]  ;;  %4179 = vmatmul.bf16.vlgmr.msra.gmra.mxu1 %v8742_v23 }
 0x1f6   :  { %v6978_v41 = vld [vmem:[#allocation8 + $0xb90] sm:$0xf]  ;;  %v6723_v56 = vor.u32 %v8166_v40, %v6722_v37  ;;  %4223 = vmatpush.bf16.msrb.mxu1 %v7011_v38  ;;  %4203 = vmatpush.bf16.msra.mxu3 %v6307_v47 }
 0x1f7   :  { %v8230_v42 = vld [vmem:[#allocation8 + $0xbac] sm:$0xf0] }
 0x1f8   :  { %v6018_v50 = vld [vmem:[#allocation8 + $0x410] sm:$0xf]  ;;  %v6979_v59 = vor.u32 %v8230_v42, %v6978_v41  ;;  %4211 = vmatpush.bf16.msrb.mxu0 %v6723_v56 }
 0x1f9   :  { %v7990_v52 = vld [vmem:[#allocation8 + $0x42c] sm:$0xf0] }
 0x1fa   :  { %v6274_v53 = vld [vmem:[#allocation8 + $0x610] sm:$0xf]  ;;  %v6019_v60 = vor.u32 %v7990_v52, %v6018_v50  ;;  %4224 = vmatpush.bf16.msrb.mxu1 %v6979_v59  ;;  %v3961_v5 = vpop.f32.mrf.mxu0 }
 0x1fb   :  { %v8054_v54 = vld [vmem:[#allocation8 + $0x62c] sm:$0xf0]  ;;  %v5924_v5 = vld [vmem:[#allocation8 + $0x370] sm:$0xf0] }
 0x1fc   :  { %v7266_v46 = vld [vmem:[#allocation8 + $0xdd0] sm:$0xf]  ;;  %v6275_v63 = vor.u32 %v8054_v54, %v6274_v53  ;;  %4191 = vmatpush.bf16.msra.mxu2 %v6019_v60  ;;  %v3973_v53 = vadd.f32 %v3972_v49, %v3960_v39 }
 0x1fd   :  { %v8302_v55 = vld [vmem:[#allocation8 + $0xdec] sm:$0xf0] }
 0x1fe   :  { %v7522_v57 = vld [vmem:[#allocation8 + $0xfd0] sm:$0xf]  ;;  %v7267_v0 = vor.u32 %v8302_v55, %v7266_v46  ;;  %4204 = vmatpush.bf16.msra.mxu3 %v6275_v63 }
 0x1ff   :  { %v8366_v58 = vld [vmem:[#allocation8 + $0xfec] sm:$0xf0]  ;;  %4192 = vmatmul.bf16.vlgmr.msra.gmra.mxu2 %v8746_v44 }
 0x200   :  { %v6690_v61 = vld [vmem:[#allocation8 + $0x950] sm:$0xf]  ;;  %v7523_v6 = vor.u32 %v8366_v58, %v7522_v57  ;;  %4236 = vmatpush.bf16.msrb.mxu2 %v7267_v0 }
 0x201   :  { %v8158_v62 = vld [vmem:[#allocation8 + $0x96c] sm:$0xf0]  ;;  %4205 = vmatmul.bf16.vlgmr.msra.gmra.mxu3 %v8748_v51 }
 0x202   :  { %v6946_v1 = vld [vmem:[#allocation8 + $0xb50] sm:$0xf]  ;;  %v6691_v11 = vor.u32 %v8158_v62, %v6690_v61  ;;  %4249 = vmatpush.bf16.msrb.mxu3 %v7523_v6 }
 0x203   :  { %v8222_v2 = vld [vmem:[#allocation8 + $0xb6c] sm:$0xf0] }
 0x204   :  { %v7234_v8 = vld [vmem:[#allocation8 + $0xd90] sm:$0xf]  ;;  %v6947_v15 = vor.u32 %v8222_v2, %v6946_v1  ;;  %4212 = vmatpush.bf16.msrb.mxu0 %v6691_v11  ;;  %v3974_v11 = vpop.f32.mrf.mxu1 }
 0x205   :  { %v8294_v9 = vld [vmem:[#allocation8 + $0xdac] sm:$0xf0]  ;;  %v6212_v11 = vld [vmem:[#allocation8 + $0x5b0] sm:$0xf0] }
 0x206   :  { %v7490_v13 = vld [vmem:[#allocation8 + $0xf90] sm:$0xf]  ;;  %v7235_v20 = vor.u32 %v8294_v9, %v7234_v8  ;;  %4225 = vmatpush.bf16.msrb.mxu1 %v6947_v15 }
 0x207   :  { %v8358_v14 = vld [vmem:[#allocation8 + $0xfac] sm:$0xf0] }
 0x208   :  { %v6658_v17 = vld [vmem:[#allocation8 + $0x910] sm:$0xf]  ;;  %v7491_v24 = vor.u32 %v8358_v14, %v7490_v13  ;;  %4237 = vmatpush.bf16.msrb.mxu2 %v7235_v20 }
 0x209   :  { %v8150_v19 = vld [vmem:[#allocation8 + $0x92c] sm:$0xf0] }
 0x20a   :  { %v6914_v21 = vld [vmem:[#allocation8 + $0xb10] sm:$0xf]  ;;  %v6659_v27 = vor.u32 %v8150_v19, %v6658_v17  ;;  %4250 = vmatpush.bf16.msrb.mxu3 %v7491_v24 }
 0x20b   :  { %v8214_v22 = vld [vmem:[#allocation8 + $0xb2c] sm:$0xf0] }
 0x20c   :  { %v7202_v3 = vld [vmem:[#allocation8 + $0xd50] sm:$0xf]  ;;  %v6915_v12 = vor.u32 %v8214_v22, %v6914_v21  ;;  %4213 = vmatpush.bf16.msrb.mxu0 %v6659_v27  ;;  %v3985_v27 = vpop.f32.mrf.mxu2 }
 0x20d   :  { %v8286_v25 = vld [vmem:[#allocation8 + $0xd6c] sm:$0xf0] }
 0x20e   :  { %v7458_v28 = vld [vmem:[#allocation8 + $0xf50] sm:$0xf]  ;;  %v7203_v30 = vor.u32 %v8286_v25, %v7202_v3  ;;  %4226 = vmatpush.bf16.msrb.mxu1 %v6915_v12  ;;  %v7914_v3 = vld [vmem:[#allocation8 + $0x1d4] sm:$0xf] }
 0x20f   :  { %v8350_v29 = vld [vmem:[#allocation8 + $0xf6c] sm:$0xf0]  ;;  %v5732_v25 = vld [vmem:[#allocation8 + $0x1f0] sm:$0xf0] }
 0x210   :  { %v6626_v31 = vld [vmem:[#allocation8 + $0x8d0] sm:$0xf]  ;;  %v7459_v36 = vor.u32 %v8350_v29, %v7458_v28  ;;  %4238 = vmatpush.bf16.msrb.mxu2 %v7203_v30  ;;  %v5988_v29 = vld [vmem:[#allocation8 + $0x3f0] sm:$0xf0]  ;;  %v3998_v30 = vpop.f32.mrf.mxu3 }
 0x211   :  { %v8142_v32 = vld [vmem:[#allocation8 + $0x8ec] sm:$0xf0]  ;;  %v5991_v49 = vor.u32 %v7978_v26, %v5988_v29  ;;  %v6180_v26 = vld [vmem:[#allocation8 + $0x570] sm:$0xf0] }
 0x212   :  { %v6882_v33 = vld [vmem:[#allocation8 + $0xad0] sm:$0xf]  ;;  %v6627_v40 = vor.u32 %v8142_v32, %v6626_v31  ;;  %4251 = vmatpush.bf16.msrb.mxu3 %v7459_v36  ;;  %v3986_v32 = vadd.f32 %v3985_v27, %v3973_v53  ;;  %v6436_v29 = vld [vmem:[#allocation8 + $0x770] sm:$0xf0] }
 0x213   :  { %v8206_v34 = vld [vmem:[#allocation8 + $0xaec] sm:$0xf0] }
 0x214   :  { %v7170_v37 = vld [vmem:[#allocation8 + $0xd10] sm:$0xf]  ;;  %v6883_v47 = vor.u32 %v8206_v34, %v6882_v33  ;;  %4214 = vmatpush.bf16.msrb.mxu0 %v6627_v40  ;;  %v8808_v39 = vadd.f32 %v3998_v30, %v3986_v32  ;;  %v5604_v32 = vld [vmem:[#allocation8 + $0xf0] sm:$0xf0] }
 0x215   :  { %v8278_v38 = vld [vmem:[#allocation8 + $0xd2c] sm:$0xf0] }
 0x216   :  { %v7426_v41 = vld [vmem:[#allocation8 + $0xf10] sm:$0xf]  ;;  %v7171_v54 = vor.u32 %v8278_v38, %v7170_v37  ;;  %4227 = vmatpush.bf16.msrb.mxu1 %v6883_v47  ;;  %v5735_v37 = vor.u32 %v7914_v3, %v5732_v25  ;;  %v7906_v38 = vld [vmem:[#allocation8 + $0x194] sm:$0xf] }
 0x217   :  { %v8342_v42 = vld [vmem:[#allocation8 + $0xf2c] sm:$0xf0]  ;;  %v5956_v47 = vld [vmem:[#allocation8 + $0x3b0] sm:$0xf0] }
 0x218   :  { %v6594_v50 = vld [vmem:[#allocation8 + $0x890] sm:$0xf]  ;;  %v7427_v56 = vor.u32 %v8342_v42, %v7426_v41  ;;  %4239 = vmatpush.bf16.msrb.mxu2 %v7171_v54  ;;  %v5700_v41 = vld [vmem:[#allocation8 + $0x1b0] sm:$0xf0] }
 0x219   :  { %v8134_v52 = vld [vmem:[#allocation8 + $0x8ac] sm:$0xf0]  ;;  %v7970_v42 = vld [vmem:[#allocation8 + $0x394] sm:$0xf] }
 0x21a   :  { %v6850_v46 = vld [vmem:[#allocation8 + $0xa90] sm:$0xf]  ;;  %v6595_v59 = vor.u32 %v8134_v52, %v6594_v50  ;;  %4252 = vmatpush.bf16.msrb.mxu3 %v7427_v56  ;;  %v6244_v56 = vld [vmem:[#allocation8 + $0x5f0] sm:$0xf0] }
 0x21b   :  { %v8198_v55 = vld [vmem:[#allocation8 + $0xaac] sm:$0xf0]  ;;  %v8026_v25 = vld [vmem:[#allocation8 + $0x554] sm:$0xf] }
 0x21c   :  { %v7138_v57 = vld [vmem:[#allocation8 + $0xcd0] sm:$0xf]  ;;  %v6851_v62 = vor.u32 %v8198_v55, %v6850_v46  ;;  %4215 = vmatpush.bf16.msrb.mxu0 %v6595_v59  ;;  %v8042_v55 = vld [vmem:[#allocation8 + $0x5d4] sm:$0xf]  ;;  %v6183_v30 = vor.u32 %v8026_v25, %v6180_v26 }
 0x21d   :  { %v8270_v58 = vld [vmem:[#allocation8 + $0xcec] sm:$0xf0]  ;;  %v6500_v59 = vld [vmem:[#allocation8 + $0x7f0] sm:$0xf0] }
 0x21e   :  { %v7394_v60 = vld [vmem:[#allocation8 + $0xed0] sm:$0xf]  ;;  %v7139_v1 = vor.u32 %v8270_v58, %v7138_v57  ;;  %4228 = vmatpush.bf16.msrb.mxu1 %v6851_v62  ;;  %v5703_v57 = vor.u32 %v7906_v38, %v5700_v41  ;;  %v8106_v58 = vld [vmem:[#allocation8 + $0x7d4] sm:$0xf] }
 0x21f   :  { %v8334_v61 = vld [vmem:[#allocation8 + $0xeec] sm:$0xf0]  ;;  %v7898_v62 = vld [vmem:[#allocation8 + $0x154] sm:$0xf] }
 0x220   :  { %v6562_v63 = vld [vmem:[#allocation8 + $0x850] sm:$0xf]  ;;  %v7395_v6 = vor.u32 %v8334_v61, %v7394_v60  ;;  %4240 = vmatpush.bf16.msrb.mxu2 %v7139_v1  ;;  %v5959_v60 = vor.u32 %v7970_v42, %v5956_v47  ;;  %v6148_v38 = vld [vmem:[#allocation8 + $0x530] sm:$0xf0] }
 0x221   :  { %v8126_v0 = vld [vmem:[#allocation8 + $0x86c] sm:$0xf0]  ;;  %v8082_v42 = vld [vmem:[#allocation8 + $0x714] sm:$0xf] }
 0x222   :  { %v6818_v2 = vld [vmem:[#allocation8 + $0xa50] sm:$0xf]  ;;  %v6563_v13 = vor.u32 %v8126_v0, %v6562_v63  ;;  %4253 = vmatpush.bf16.msrb.mxu3 %v7395_v6  ;;  %v5668_v63 = vld [vmem:[#allocation8 + $0x170] sm:$0xf0]  ;;  %v3987_v0 = vpop.f32.mrf.mxu2  ;;  %v4000_v6 = vpop.f32.mrf.mxu3 }
 0x223   :  { %v8190_v4 = vld [vmem:[#allocation8 + $0xa6c] sm:$0xf0]  ;;  %v6404_v47 = vld [vmem:[#allocation8 + $0x730] sm:$0xf0] }
 0x224   :  { %v7106_v8 = vld [vmem:[#allocation8 + $0xc90] sm:$0xf]  ;;  %v6819_v19 = vor.u32 %v8190_v4, %v6818_v2  ;;  %4216 = vmatpush.bf16.msrb.mxu0 %v6563_v13  ;;  %v6247_v2 = vor.u32 %v8042_v55, %v6244_v56  ;;  %v7962_v4 = vld [vmem:[#allocation8 + $0x354] sm:$0xf]  ;;  %v5671_v13 = vor.u32 %v7898_v62, %v5668_v63 }
 0x225   :  { %v8262_v9 = vld [vmem:[#allocation8 + $0xcac] sm:$0xf0]  ;;  %v7938_v55 = vld [vmem:[#allocation8 + $0x294] sm:$0xf] }
 0x226   :  { %v7362_v14 = vld [vmem:[#allocation8 + $0xe90] sm:$0xf]  ;;  %v7107_v24 = vor.u32 %v8262_v9, %v7106_v8  ;;  %4229 = vmatpush.bf16.msrb.mxu1 %v6819_v19  ;;  %v6503_v8 = vor.u32 %v8106_v58, %v6500_v59  ;;  %v8034_v9 = vld [vmem:[#allocation8 + $0x594] sm:$0xf] }
 0x227   :  { %v8326_v15 = vld [vmem:[#allocation8 + $0xeac] sm:$0xf0]  ;;  %v7890_v19 = vld [vmem:[#allocation8 + $0x114] sm:$0xf] }
 0x228   :  { %v6530_v17 = vld [vmem:[#allocation8 + $0x810] sm:$0xf]  ;;  %v7363_v28 = vor.u32 %v8326_v15, %v7362_v14  ;;  %4241 = vmatpush.bf16.msrb.mxu2 %v7107_v24  ;;  %v8098_v14 = vld [vmem:[#allocation8 + $0x794] sm:$0xf] }
 0x229   :  { %v8118_v20 = vld [vmem:[#allocation8 + $0x82c] sm:$0xf0]  ;;  %v6468_v15 = vld [vmem:[#allocation8 + $0x7b0] sm:$0xf0] }
 0x22a   :  { %v6786_v21 = vld [vmem:[#allocation8 + $0xa10] sm:$0xf]  ;;  %v6531_v33 = vor.u32 %v8118_v20, %v6530_v17  ;;  %4254 = vmatpush.bf16.msrb.mxu3 %v7363_v28  ;;  %v5927_v17 = vor.u32 %v7962_v4, %v5924_v5  ;;  %v5636_v20 = vld [vmem:[#allocation8 + $0x130] sm:$0xf0]  ;;  %v6471_v3 = vor.u32 %v8098_v14, %v6468_v15 }
 0x22b   :  { %v8182_v22 = vld [vmem:[#allocation8 + $0xa2c] sm:$0xf0]  ;;  %v5892_v24 = vld [vmem:[#allocation8 + $0x330] sm:$0xf0]  ;;  %v5639_v27 = vor.u32 %v7890_v19, %v5636_v20 }
 0x22c   :  { %v7074_v12 = vld [vmem:[#allocation8 + $0xc50] sm:$0xf]  ;;  %v6787_v36 = vor.u32 %v8182_v22, %v6786_v21  ;;  %4217 = vmatpush.bf16.msrb.mxu0 %v6531_v33  ;;  %v6215_v21 = vor.u32 %v8034_v9, %v6212_v11  ;;  %v7954_v22 = vld [vmem:[#allocation8 + $0x314] sm:$0xf] }
 0x22d   :  { %v8254_v31 = vld [vmem:[#allocation8 + $0xc6c] sm:$0xf0]  ;;  %v8090_v28 = vld [vmem:[#allocation8 + $0x754] sm:$0xf] }
 0x22e   :  { %v7330_v34 = vld [vmem:[#allocation8 + $0xe50] sm:$0xf]  ;;  %v7075_v40 = vor.u32 %v8254_v31, %v7074_v12  ;;  %4230 = vmatpush.bf16.msrb.mxu1 %v6787_v36  ;;  %v5895_v12 = vor.u32 %v7954_v22, %v5892_v24  ;;  %v7882_v31 = vld [vmem:[#allocation8 + $0xd4] sm:$0xf]  ;;  %v6439_v36 = vor.u32 %v8090_v28, %v6436_v29 }
 0x22f   :  { %v8318_v35 = vld [vmem:[#allocation8 + $0xe6c] sm:$0xf0]  ;;  %4218 = vmatmul.bf16.vlgmr.msrb.gmra.mxu0 %v8755_v7  ;;  %v7946_v33 = vld [vmem:[#allocation8 + $0x2d4] sm:$0xf]  ;;  %v5607_v41 = vor.u32 %v7882_v31, %v5604_v32 }
 0x230   :  { %v7331_v50 = vor.u32 %v8318_v35, %v7330_v34  ;;  %v7042_v52 = vld [vmem:[#allocation8 + $0xc10] sm:$0xf]  ;;  %4262 = vmatpush.bf16.msra.mxu0 %v5735_v37  ;;  %4242 = vmatpush.bf16.msrb.mxu2 %v7075_v40  ;;  %v5860_v34 = vld [vmem:[#allocation8 + $0x2f0] sm:$0xf0]  ;;  %v4011_v35 = vpop.f32.mrf.mxu0  ;;  %v4024_v40 = vpop.f32.mrf.mxu1 }
 0x231   :  { %v8246_v53 = vld [vmem:[#allocation8 + $0xc2c] sm:$0xf0]  ;;  %4231 = vmatmul.bf16.vlgmr.msrb.gmra.mxu1 %v8758_v10  ;;  %v8018_v37 = vld [vmem:[#allocation8 + $0x514] sm:$0xf] }
 0x232   :  { %v7298_v54 = vld [vmem:[#allocation8 + $0xe10] sm:$0xf]  ;;  %4275 = vmatpush.bf16.msra.mxu1 %v5991_v49  ;;  %v7043_v61 = vor.u32 %v8246_v53, %v7042_v52  ;;  %4255 = vmatpush.bf16.msrb.mxu3 %v7331_v50  ;;  %v4012_v49 = vadd.f32 %v4011_v35, %v8808_v39  ;;  %v5863_v50 = vor.u32 %v7946_v33, %v5860_v34  ;;  %v7874_v52 = vld [vmem:[#allocation8 + $0x94] sm:$0xf] }
 0x233   :  { %v8310_v46 = vld [vmem:[#allocation8 + $0xe2c] sm:$0xf0]  ;;  %v5572_v53 = vld [vmem:[#allocation8 + $0xb0] sm:$0xf0] }
 0x234   :  { %v7299_v1 = vor.u32 %v8310_v46, %v7298_v54  ;;  %4263 = vmatpush.bf16.msra.mxu0 %v5703_v57  ;;  %4243 = vmatpush.bf16.msrb.mxu2 %v7043_v61  ;;  %v4025_v54 = vadd.f32 %v4024_v40, %v4012_v49  ;;  %v6151_v46 = vor.u32 %v8018_v37, %v6148_v38  ;;  %v5828_v56 = vld [vmem:[#allocation8 + $0x2b0] sm:$0xf0] }
 0x235   :  { %v6407_v57 = vor.u32 %v8082_v42, %v6404_v47  ;;  %v8010_v58 = vld [vmem:[#allocation8 + $0x4d4] sm:$0xf]  ;;  %v5575_v39 = vor.u32 %v7874_v52, %v5572_v53  ;;  %v5831_v62 = vor.u32 %v7938_v55, %v5828_v56 }
 0x236   :  { %4276 = vmatpush.bf16.msra.mxu1 %v5959_v60  ;;  %4256 = vmatpush.bf16.msrb.mxu3 %v7299_v1  ;;  %v6116_v59 = vld [vmem:[#allocation8 + $0x4f0] sm:$0xf0] }
 0x237   :  { %4244 = vmatmul.bf16.vlgmr.msrb.gmra.mxu2 %v8762_v48  ;;  %v8074_v60 = vld [vmem:[#allocation8 + $0x6d4] sm:$0xf]  ;;  %v6119_v1 = vor.u32 %v8010_v58, %v6116_v59 }
 0x238   :  { %4288 = vmatpush.bf16.msra.mxu2 %v6247_v2  ;;  %4264 = vmatpush.bf16.msra.mxu0 %v5671_v13  ;;  %v6372_v61 = vld [vmem:[#allocation8 + $0x6f0] sm:$0xf0]  ;;  %v4013_v5 = vpop.f32.mrf.mxu0  ;;  %v4026_v11 = vpop.f32.mrf.mxu1 }
 0x239   :  { %4257 = vmatmul.bf16.vlgmr.msrb.gmra.mxu3 %v8764_v45  ;;  %v7866_v63 = vld [vmem:[#allocation8 + $0x54] sm:$0xf]  ;;  %v6375_v6 = vor.u32 %v8074_v60, %v6372_v61 }
 0x23a   :  { %4301 = vmatpush.bf16.msra.mxu3 %v6503_v8  ;;  %4277 = vmatpush.bf16.msra.mxu1 %v5927_v17  ;;  %v5540_v0 = vld [vmem:[#allocation8 + $0x70] sm:$0xf0] }
 0x23b   :  { %v7930_v2 = vld [vmem:[#allocation8 + $0x254] sm:$0xf]  ;;  %v5543_v13 = vor.u32 %v7866_v63, %v5540_v0 }
 0x23c   :  { %4289 = vmatpush.bf16.msra.mxu2 %v6215_v21  ;;  %4265 = vmatpush.bf16.msra.mxu0 %v5639_v27  ;;  %v5796_v4 = vld [vmem:[#allocation8 + $0x270] sm:$0xf0]  ;;  %v4037_v27 = vpop.f32.mrf.mxu2 }
 0x23d   :  { %v8002_v8 = vld [vmem:[#allocation8 + $0x494] sm:$0xf]  ;;  %v5799_v19 = vor.u32 %v7930_v2, %v5796_v4  ;;  %v4038_v32 = vadd.f32 %v4037_v27, %v4025_v54  ;;  %v8820_v27 = vld [vmem:[#allocation10] sm:$0xff] }
 0x23e   :  { %4302 = vmatpush.bf16.msra.mxu3 %v6471_v3  ;;  %4278 = vmatpush.bf16.msra.mxu1 %v5895_v12  ;;  %v6084_v9 = vld [vmem:[#allocation8 + $0x4b0] sm:$0xf0] }
 0x23f   :  { %v8066_v14 = vld [vmem:[#allocation8 + $0x694] sm:$0xf]  ;;  %v6087_v24 = vor.u32 %v8002_v8, %v6084_v9 }
 0x240   :  { %4290 = vmatpush.bf16.msra.mxu2 %v6183_v30  ;;  %4266 = vmatpush.bf16.msra.mxu0 %v5607_v41  ;;  %v6340_v15 = vld [vmem:[#allocation8 + $0x6b0] sm:$0xf0]  ;;  %v4050_v30 = vpop.f32.mrf.mxu3 }
 0x241   :  { %v7858_v17 = vld [vmem:[#allocation8 + $0x14] sm:$0xf]  ;;  %v6343_v28 = vor.u32 %v8066_v14, %v6340_v15  ;;  %v8815_v49 = vadd.f32 %v4050_v30, %v4038_v32 }
 0x242   :  { %4303 = vmatpush.bf16.msra.mxu3 %v6439_v36  ;;  %4279 = vmatpush.bf16.msra.mxu1 %v5863_v50  ;;  %v5508_v20 = vld [vmem:[#allocation8 + $0x30] sm:$0xf0] }
 0x243   :  { %v7922_v21 = vld [vmem:[#allocation8 + $0x214] sm:$0xf]  ;;  %v5511_v33 = vor.u32 %v7858_v17, %v5508_v20 }
 0x244   :  { %4291 = vmatpush.bf16.msra.mxu2 %v6151_v46  ;;  %4267 = vmatpush.bf16.msra.mxu0 %v5575_v39  ;;  %v5764_v22 = vld [vmem:[#allocation8 + $0x230] sm:$0xf0]  ;;  %v4039_v0 = vpop.f32.mrf.mxu2 }
 0x245   :  { %v8170_v3 = vld [vmem:[#allocation8 + $0x9d4] sm:$0xf]  ;;  %v5767_v36 = vor.u32 %v7922_v21, %v5764_v22 }
 0x246   :  { %4304 = vmatpush.bf16.msra.mxu3 %v6407_v57  ;;  %4280 = vmatpush.bf16.msra.mxu1 %v5831_v62  ;;  %v6756_v25 = vld [vmem:[#allocation8 + $0x9f0] sm:$0xf0] }
 0x247   :  { %v8234_v26 = vld [vmem:[#allocation8 + $0xbd4] sm:$0xf]  ;;  %v6759_v37 = vor.u32 %v8170_v3, %v6756_v25 }
 0x248   :  { %4292 = vmatpush.bf16.msra.mxu2 %v6119_v1  ;;  %v7012_v29 = vld [vmem:[#allocation8 + $0xbf0] sm:$0xf0]  ;;  %4268 = vmatpush.bf16.msra.mxu0 %v5543_v13 }
 0x249   :  { %v7994_v12 = vld [vmem:[#allocation8 + $0x454] sm:$0xf]  ;;  %v7015_v40 = vor.u32 %v8234_v26, %v7012_v29 }
 0x24a   :  { %4305 = vmatpush.bf16.msra.mxu3 %v6375_v6  ;;  %v6052_v31 = vld [vmem:[#allocation8 + $0x470] sm:$0xf0]  ;;  %4281 = vmatpush.bf16.msra.mxu1 %v5799_v19  ;;  %v4052_v6 = vpop.f32.mrf.mxu3 }
 0x24b   :  { %v8058_v34 = vld [vmem:[#allocation8 + $0x654] sm:$0xf]  ;;  %v6055_v41 = vor.u32 %v7994_v12, %v6052_v31 }
 0x24c   :  { %v6308_v35 = vld [vmem:[#allocation8 + $0x670] sm:$0xf0]  ;;  %4293 = vmatpush.bf16.msra.mxu2 %v6087_v24  ;;  %4269 = vmatpush.bf16.msra.mxu0 %v5511_v33 }
 0x24d   :  { %v8162_v38 = vld [vmem:[#allocation8 + $0x994] sm:$0xf]  ;;  %v6311_v52 = vor.u32 %v8058_v34, %v6308_v35 }
 0x24e   :  { %v6724_v42 = vld [vmem:[#allocation8 + $0x9b0] sm:$0xf0]  ;;  %4306 = vmatpush.bf16.msra.mxu3 %v6343_v28  ;;  %4282 = vmatpush.bf16.msra.mxu1 %v5767_v36  ;;  %v1169_v28 = vperm.slane %v8820_v27, 3 }
 0x24f   :  { %v8226_v47 = vld [vmem:[#allocation8 + $0xb94] sm:$0xf]  ;;  %v6727_v58 = vor.u32 %v8162_v38, %v6724_v42  ;;  %4270 = vmatmul.bf16.vlgmr.msra.gmra.mxu0 %v8739_v18 }
 0x250   :  { %v6980_v50 = vld [vmem:[#allocation8 + $0xbb0] sm:$0xf0]  ;;  %4314 = vmatpush.bf16.msrb.mxu0 %v6759_v37  ;;  %4294 = vmatpush.bf16.msra.mxu2 %v6055_v41  ;;  %v4063_v37 = vpop.f32.mrf.mxu0 }
 0x251   :  { %v7986_v53 = vld [vmem:[#allocation8 + $0x414] sm:$0xf]  ;;  %v6983_v60 = vor.u32 %v8226_v47, %v6980_v50  ;;  %4283 = vmatmul.bf16.vlgmr.msra.gmra.mxu1 %v8742_v23  ;;  %v4064_v42 = vadd.f32 %v4063_v37, %v1169_v28  ;;  %v4076_v47 = vpop.f32.mrf.mxu1  ;;  %v5738_v28 = vld [vmem:[#allocation8 + $0x1d8] sm:$0xf] }
 0x252   :  { %v6020_v54 = vld [vmem:[#allocation8 + $0x430] sm:$0xf0]  ;;  %4327 = vmatpush.bf16.msrb.mxu1 %v7015_v40  ;;  %4307 = vmatpush.bf16.msra.mxu3 %v6311_v52 }
 0x253   :  { %v8050_v46 = vld [vmem:[#allocation8 + $0x614] sm:$0xf]  ;;  %v6023_v61 = vor.u32 %v7986_v53, %v6020_v54 }
 0x254   :  { %v6276_v55 = vld [vmem:[#allocation8 + $0x630] sm:$0xf0]  ;;  %4315 = vmatpush.bf16.msrb.mxu0 %v6727_v58 }
 0x255   :  { %v8298_v56 = vld [vmem:[#allocation8 + $0xdd4] sm:$0xf]  ;;  %v6279_v1 = vor.u32 %v8050_v46, %v6276_v55  ;;  %4295 = vmatpush.bf16.msra.mxu2 %v6023_v61 }
 0x256   :  { %v7268_v57 = vld [vmem:[#allocation8 + $0xdf0] sm:$0xf0]  ;;  %4328 = vmatpush.bf16.msrb.mxu1 %v6983_v60 }
 0x257   :  { %v8362_v59 = vld [vmem:[#allocation8 + $0xfd4] sm:$0xf]  ;;  %v7271_v2 = vor.u32 %v8298_v56, %v7268_v57  ;;  %4308 = vmatpush.bf16.msra.mxu3 %v6279_v1  ;;  %v4077_v56 = vadd.f32 %v4076_v47, %v4064_v42  ;;  %v5706_v47 = vld [vmem:[#allocation8 + $0x198] sm:$0xf] }
 0x258   :  { %v7524_v39 = vld [vmem:[#allocation8 + $0xff0] sm:$0xf0]  ;;  %4296 = vmatmul.bf16.vlgmr.msra.gmra.mxu2 %v8746_v44 }
 0x259   :  { %v8154_v62 = vld [vmem:[#allocation8 + $0x954] sm:$0xf]  ;;  %v7527_v8 = vor.u32 %v8362_v59, %v7524_v39  ;;  %4340 = vmatpush.bf16.msrb.mxu2 %v7271_v2 }
 0x25a   :  { %v6692_v63 = vld [vmem:[#allocation8 + $0x970] sm:$0xf0]  ;;  %4309 = vmatmul.bf16.vlgmr.msra.gmra.mxu3 %v8748_v51 }
 0x25b   :  { %v8218_v4 = vld [vmem:[#allocation8 + $0xb54] sm:$0xf]  ;;  %v6695_v13 = vor.u32 %v8154_v62, %v6692_v63  ;;  %4353 = vmatpush.bf16.msrb.mxu3 %v7527_v8 }
 0x25c   :  { %v6948_v5 = vld [vmem:[#allocation8 + $0xb70] sm:$0xf0] }
 0x25d   :  { %v8290_v9 = vld [vmem:[#allocation8 + $0xd94] sm:$0xf]  ;;  %v6951_v17 = vor.u32 %v8218_v4, %v6948_v5  ;;  %4316 = vmatpush.bf16.msrb.mxu0 %v6695_v13 }
 0x25e   :  { %v7236_v11 = vld [vmem:[#allocation8 + $0xdb0] sm:$0xf0] }
 0x25f   :  { %v8354_v14 = vld [vmem:[#allocation8 + $0xf94] sm:$0xf]  ;;  %v7239_v21 = vor.u32 %v8290_v9, %v7236_v11  ;;  %4329 = vmatpush.bf16.msrb.mxu1 %v6951_v17  ;;  %v4065_v9 = vpop.f32.mrf.mxu0 }
 0x260   :  { %v7492_v15 = vld [vmem:[#allocation8 + $0xfb0] sm:$0xf0] }
 0x261   :  { %v8146_v19 = vld [vmem:[#allocation8 + $0x914] sm:$0xf]  ;;  %v7495_v3 = vor.u32 %v8354_v14, %v7492_v15  ;;  %4341 = vmatpush.bf16.msrb.mxu2 %v7239_v21  ;;  %v4078_v15 = vpop.f32.mrf.mxu1 }
 0x262   :  { %v6660_v20 = vld [vmem:[#allocation8 + $0x930] sm:$0xf0] }
 0x263   :  { %v8210_v22 = vld [vmem:[#allocation8 + $0xb14] sm:$0xf]  ;;  %v6663_v29 = vor.u32 %v8146_v19, %v6660_v20  ;;  %4354 = vmatpush.bf16.msrb.mxu3 %v7495_v3 }
 0x264   :  { %v6916_v24 = vld [vmem:[#allocation8 + $0xb30] sm:$0xf0] }
 0x265   :  { %v8282_v25 = vld [vmem:[#allocation8 + $0xd54] sm:$0xf]  ;;  %v6919_v32 = vor.u32 %v8210_v22, %v6916_v24  ;;  %4317 = vmatpush.bf16.msrb.mxu0 %v6663_v29  ;;  %v7919_v29 = vld [vmem:[#allocation8 + $0x1f4] sm:$0xf0] }
 0x266   :  { %v7204_v26 = vld [vmem:[#allocation8 + $0xd70] sm:$0xf0]  ;;  %v5739_v42 = vor.u32 %v7919_v29, %v5738_v28  ;;  %v5898_v28 = vld [vmem:[#allocation8 + $0x318] sm:$0xf] }
 0x267   :  { %v8346_v12 = vld [vmem:[#allocation8 + $0xf54] sm:$0xf]  ;;  %v7207_v34 = vor.u32 %v8282_v25, %v7204_v26  ;;  %4330 = vmatpush.bf16.msrb.mxu1 %v6919_v32  ;;  %v7959_v29 = vld [vmem:[#allocation8 + $0x334] sm:$0xf0] }
 0x268   :  { %v7460_v31 = vld [vmem:[#allocation8 + $0xf70] sm:$0xf0] }
 0x269   :  { %v8138_v30 = vld [vmem:[#allocation8 + $0x8d4] sm:$0xf]  ;;  %v7463_v38 = vor.u32 %v8346_v12, %v7460_v31  ;;  %4342 = vmatpush.bf16.msrb.mxu2 %v7207_v34  ;;  %v5994_v12 = vld [vmem:[#allocation8 + $0x3d8] sm:$0xf]  ;;  %v4089_v31 = vpop.f32.mrf.mxu2 }
 0x26a   :  { %v6628_v33 = vld [vmem:[#allocation8 + $0x8f0] sm:$0xf0] }
 0x26b   :  { %v8202_v35 = vld [vmem:[#allocation8 + $0xad4] sm:$0xf]  ;;  %v6631_v50 = vor.u32 %v8138_v30, %v6628_v33  ;;  %4355 = vmatpush.bf16.msrb.mxu3 %v7463_v38  ;;  %v7983_v30 = vld [vmem:[#allocation8 + $0x3f4] sm:$0xf0] }
 0x26c   :  { %v6884_v36 = vld [vmem:[#allocation8 + $0xaf0] sm:$0xf0] }
 0x26d   :  { %v8274_v40 = vld [vmem:[#allocation8 + $0xd14] sm:$0xf]  ;;  %v6887_v54 = vor.u32 %v8202_v35, %v6884_v36  ;;  %4318 = vmatpush.bf16.msrb.mxu0 %v6631_v50  ;;  %v4090_v35 = vadd.f32 %v4089_v31, %v4077_v56  ;;  %v4102_v36 = vpop.f32.mrf.mxu3  ;;  %v6186_v31 = vld [vmem:[#allocation8 + $0x558] sm:$0xf] }
 0x26e   :  { %v7172_v41 = vld [vmem:[#allocation8 + $0xd30] sm:$0xf0] }
 0x26f   :  { %v8338_v52 = vld [vmem:[#allocation8 + $0xf14] sm:$0xf]  ;;  %v7175_v57 = vor.u32 %v8274_v40, %v7172_v41  ;;  %4331 = vmatpush.bf16.msrb.mxu1 %v6887_v54  ;;  %v8824_v50 = vadd.f32 %v4102_v36, %v4090_v35  ;;  %v7911_v54 = vld [vmem:[#allocation8 + $0x1b4] sm:$0xf0]  ;;  %v5899_v35 = vor.u32 %v7959_v29, %v5898_v28 }
 0x270   :  { %v7428_v53 = vld [vmem:[#allocation8 + $0xf30] sm:$0xf0]  ;;  %v5610_v36 = vld [vmem:[#allocation8 + $0xd8] sm:$0xf] }
 0x271   :  { %v8130_v46 = vld [vmem:[#allocation8 + $0x894] sm:$0xf]  ;;  %v7431_v39 = vor.u32 %v8338_v52, %v7428_v53  ;;  %4343 = vmatpush.bf16.msrb.mxu2 %v7175_v57  ;;  %v5995_v52 = vor.u32 %v7983_v30, %v5994_v12  ;;  %v7863_v28 = vld [vmem:[#allocation8 + $0x34] sm:$0xf0] }
 0x272   :  { %v6596_v55 = vld [vmem:[#allocation8 + $0x8b0] sm:$0xf0]  ;;  %v5770_v29 = vld [vmem:[#allocation8 + $0x218] sm:$0xf] }
 0x273   :  { %v8194_v58 = vld [vmem:[#allocation8 + $0xa94] sm:$0xf]  ;;  %v6599_v62 = vor.u32 %v8130_v46, %v6596_v55  ;;  %4356 = vmatpush.bf16.msrb.mxu3 %v7431_v39  ;;  %v5962_v46 = vld [vmem:[#allocation8 + $0x398] sm:$0xf] }
 0x274   :  { %v6852_v59 = vld [vmem:[#allocation8 + $0xab0] sm:$0xf0]  ;;  %v7975_v55 = vld [vmem:[#allocation8 + $0x3b4] sm:$0xf0] }
 0x275   :  { %v8266_v60 = vld [vmem:[#allocation8 + $0xcd4] sm:$0xf]  ;;  %v6855_v1 = vor.u32 %v8194_v58, %v6852_v59  ;;  %4319 = vmatpush.bf16.msrb.mxu0 %v6599_v62  ;;  %v5707_v62 = vor.u32 %v7911_v54, %v5706_v47 }
 0x276   :  { %v7140_v61 = vld [vmem:[#allocation8 + $0xcf0] sm:$0xf0] }
 0x277   :  { %v8330_v63 = vld [vmem:[#allocation8 + $0xed4] sm:$0xf]  ;;  %v7143_v5 = vor.u32 %v8266_v60, %v7140_v61  ;;  %4332 = vmatpush.bf16.msrb.mxu1 %v6855_v1  ;;  %v6250_v60 = vld [vmem:[#allocation8 + $0x5d8] sm:$0xf]  ;;  %v5963_v1 = vor.u32 %v7975_v55, %v5962_v46  ;;  %v4128_v46 = vpop.f32.mrf.mxu1 }
 0x278   :  { %v7396_v0 = vld [vmem:[#allocation8 + $0xef0] sm:$0xf0]  ;;  %v8047_v61 = vld [vmem:[#allocation8 + $0x5f4] sm:$0xf0] }
 0x279   :  { %v8122_v2 = vld [vmem:[#allocation8 + $0x854] sm:$0xf]  ;;  %v7399_v11 = vor.u32 %v8330_v63, %v7396_v0  ;;  %4344 = vmatpush.bf16.msrb.mxu2 %v7143_v5  ;;  %v6506_v63 = vld [vmem:[#allocation8 + $0x7d8] sm:$0xf]  ;;  %v6251_v9 = vor.u32 %v8047_v61, %v6250_v60 }
 0x27a   :  { %v6564_v4 = vld [vmem:[#allocation8 + $0x870] sm:$0xf0]  ;;  %v8111_v0 = vld [vmem:[#allocation8 + $0x7f4] sm:$0xf0] }
 0x27b   :  { %v8186_v6 = vld [vmem:[#allocation8 + $0xa54] sm:$0xf]  ;;  %v6567_v17 = vor.u32 %v8122_v2, %v6564_v4  ;;  %4357 = vmatpush.bf16.msrb.mxu3 %v7399_v11  ;;  %v5674_v4 = vld [vmem:[#allocation8 + $0x158] sm:$0xf]  ;;  %v6507_v15 = vor.u32 %v8111_v0, %v6506_v63 }
 0x27c   :  { %v6820_v8 = vld [vmem:[#allocation8 + $0xa70] sm:$0xf0]  ;;  %v7903_v5 = vld [vmem:[#allocation8 + $0x174] sm:$0xf0] }
 0x27d   :  { %v8258_v13 = vld [vmem:[#allocation8 + $0xc94] sm:$0xf]  ;;  %v6823_v22 = vor.u32 %v8186_v6, %v6820_v8  ;;  %4320 = vmatpush.bf16.msrb.mxu0 %v6567_v17  ;;  %v4091_v6 = vpop.f32.mrf.mxu2  ;;  %v5930_v11 = vld [vmem:[#allocation8 + $0x358] sm:$0xf] }
 0x27e   :  { %v7108_v14 = vld [vmem:[#allocation8 + $0xcb0] sm:$0xf0]  ;;  %v6218_v17 = vld [vmem:[#allocation8 + $0x598] sm:$0xf] }
 0x27f   :  { %v8322_v19 = vld [vmem:[#allocation8 + $0xe94] sm:$0xf]  ;;  %v7111_v26 = vor.u32 %v8258_v13, %v7108_v14  ;;  %4333 = vmatpush.bf16.msrb.mxu1 %v6823_v22  ;;  %v7967_v13 = vld [vmem:[#allocation8 + $0x374] sm:$0xf0]  ;;  %v4104_v14 = vpop.f32.mrf.mxu3 }
 0x280   :  { %v7364_v20 = vld [vmem:[#allocation8 + $0xeb0] sm:$0xf0]  ;;  %v8103_v22 = vld [vmem:[#allocation8 + $0x7b4] sm:$0xf0] }
 0x281   :  { %v8114_v21 = vld [vmem:[#allocation8 + $0x814] sm:$0xf]  ;;  %v7367_v32 = vor.u32 %v8322_v19, %v7364_v20  ;;  %4345 = vmatpush.bf16.msrb.mxu2 %v7111_v26  ;;  %v8039_v19 = vld [vmem:[#allocation8 + $0x5b4] sm:$0xf0]  ;;  %v5675_v20 = vor.u32 %v7903_v5, %v5674_v4 }
 0x282   :  { %v6532_v24 = vld [vmem:[#allocation8 + $0x830] sm:$0xf0]  ;;  %v6219_v26 = vor.u32 %v8039_v19, %v6218_v17  ;;  %v7943_v63 = vld [vmem:[#allocation8 + $0x2b4] sm:$0xf0] }
 0x283   :  { %v8178_v3 = vld [vmem:[#allocation8 + $0xa14] sm:$0xf]  ;;  %v6535_v37 = vor.u32 %v8114_v21, %v6532_v24  ;;  %4358 = vmatpush.bf16.msrb.mxu3 %v7367_v32  ;;  %v6474_v21 = vld [vmem:[#allocation8 + $0x798] sm:$0xf]  ;;  %v5931_v24 = vor.u32 %v7967_v13, %v5930_v11 }
 0x284   :  { %v6788_v25 = vld [vmem:[#allocation8 + $0xa30] sm:$0xf0]  ;;  %v6475_v12 = vor.u32 %v8103_v22, %v6474_v21  ;;  %v8031_v32 = vld [vmem:[#allocation8 + $0x574] sm:$0xf0]  ;;  %v4130_v21 = vpop.f32.mrf.mxu1 }
 0x285   :  { %v8250_v33 = vld [vmem:[#allocation8 + $0xc54] sm:$0xf]  ;;  %v6791_v41 = vor.u32 %v8178_v3, %v6788_v25  ;;  %4321 = vmatpush.bf16.msrb.mxu0 %v6535_v37  ;;  %v5642_v3 = vld [vmem:[#allocation8 + $0x118] sm:$0xf] }
 0x286   :  { %v7076_v34 = vld [vmem:[#allocation8 + $0xc70] sm:$0xf0]  ;;  %v7895_v25 = vld [vmem:[#allocation8 + $0x134] sm:$0xf0] }
 0x287   :  { %v8314_v38 = vld [vmem:[#allocation8 + $0xe54] sm:$0xf]  ;;  %v7079_v53 = vor.u32 %v8250_v33, %v7076_v34  ;;  %4334 = vmatpush.bf16.msrb.mxu1 %v6791_v41  ;;  %v5643_v30 = vor.u32 %v7895_v25, %v5642_v3  ;;  %v6442_v33 = vld [vmem:[#allocation8 + $0x758] sm:$0xf] }
 0x288   :  { %v7332_v40 = vld [vmem:[#allocation8 + $0xe70] sm:$0xf0]  ;;  %4322 = vmatmul.bf16.vlgmr.msrb.gmra.mxu0 %v8755_v7  ;;  %v8095_v34 = vld [vmem:[#allocation8 + $0x774] sm:$0xf0] }
 0x289   :  { %v7335_v57 = vor.u32 %v8314_v38, %v7332_v40  ;;  %v8242_v56 = vld [vmem:[#allocation8 + $0xc14] sm:$0xf]  ;;  %4366 = vmatpush.bf16.msra.mxu0 %v5739_v42  ;;  %4346 = vmatpush.bf16.msrb.mxu2 %v7079_v53  ;;  %v7887_v37 = vld [vmem:[#allocation8 + $0xf4] sm:$0xf0]  ;;  %v6187_v38 = vor.u32 %v8031_v32, %v6186_v31  ;;  %v4115_v42 = vpop.f32.mrf.mxu0  ;;  %v6443_v47 = vor.u32 %v8095_v34, %v6442_v33  ;;  %v4141_v34 = vpop.f32.mrf.mxu2 }
 0x28a   :  { %v7044_v58 = vld [vmem:[#allocation8 + $0xc30] sm:$0xf0]  ;;  %4335 = vmatmul.bf16.vlgmr.msrb.gmra.mxu1 %v8758_v10  ;;  %v5866_v40 = vld [vmem:[#allocation8 + $0x2d8] sm:$0xf]  ;;  %v4116_v54 = vadd.f32 %v4115_v42, %v8824_v50  ;;  %v5611_v55 = vor.u32 %v7887_v37, %v5610_v36 }
 0x28b   :  { %v8306_v59 = vld [vmem:[#allocation8 + $0xe14] sm:$0xf]  ;;  %4379 = vmatpush.bf16.msra.mxu1 %v5995_v52  ;;  %v7047_v2 = vor.u32 %v8242_v56, %v7044_v58  ;;  %4359 = vmatpush.bf16.msrb.mxu3 %v7335_v57  ;;  %v7951_v41 = vld [vmem:[#allocation8 + $0x2f4] sm:$0xf0] }
 0x28c   :  { %v7300_v39 = vld [vmem:[#allocation8 + $0xe30] sm:$0xf0]  ;;  %v6154_v52 = vld [vmem:[#allocation8 + $0x518] sm:$0xf]  ;;  %v5867_v58 = vor.u32 %v7951_v41, %v5866_v40  ;;  %v4129_v60 = vadd.f32 %v4128_v46, %v4116_v54  ;;  %v4154_v41 = vpop.f32.mrf.mxu3 }
 0x28d   :  { %v7303_v8 = vor.u32 %v8306_v59, %v7300_v39  ;;  %4367 = vmatpush.bf16.msra.mxu0 %v5707_v62  ;;  %4347 = vmatpush.bf16.msrb.mxu2 %v7047_v2  ;;  %v8023_v53 = vld [vmem:[#allocation8 + $0x534] sm:$0xf0] }
 0x28e   :  { %v6410_v57 = vld [vmem:[#allocation8 + $0x718] sm:$0xf]  ;;  %v6155_v61 = vor.u32 %v8023_v53, %v6154_v52  ;;  %v4142_v40 = vadd.f32 %v4141_v34, %v4129_v60 }
 0x28f   :  { %4380 = vmatpush.bf16.msra.mxu1 %v5963_v1  ;;  %4360 = vmatpush.bf16.msrb.mxu3 %v7303_v8  ;;  %v8087_v56 = vld [vmem:[#allocation8 + $0x734] sm:$0xf0] }
 0x290   :  { %4348 = vmatmul.bf16.vlgmr.msrb.gmra.mxu2 %v8762_v48  ;;  %v5578_v59 = vld [vmem:[#allocation8 + $0x98] sm:$0xf]  ;;  %v6411_v0 = vor.u32 %v8087_v56, %v6410_v57 }
 0x291   :  { %4392 = vmatpush.bf16.msra.mxu2 %v6251_v9  ;;  %4368 = vmatpush.bf16.msra.mxu0 %v5675_v20  ;;  %v7879_v39 = vld [vmem:[#allocation8 + $0xb4] sm:$0xf0] }
 0x292   :  { %4361 = vmatmul.bf16.vlgmr.msrb.gmra.mxu3 %v8764_v45  ;;  %v5834_v62 = vld [vmem:[#allocation8 + $0x298] sm:$0xf]  ;;  %v5579_v50 = vor.u32 %v7879_v39, %v5578_v59 }
 0x293   :  { %4405 = vmatpush.bf16.msra.mxu3 %v6507_v15  ;;  %4381 = vmatpush.bf16.msra.mxu1 %v5931_v24  ;;  %v6122_v1 = vld [vmem:[#allocation8 + $0x4d8] sm:$0xf]  ;;  %v5835_v6 = vor.u32 %v7943_v63, %v5834_v62  ;;  %v4117_v15 = vpop.f32.mrf.mxu0 }
 0x294   :  { %v8015_v2 = vld [vmem:[#allocation8 + $0x4f4] sm:$0xf0] }
 0x295   :  { %4393 = vmatpush.bf16.msra.mxu2 %v6219_v26  ;;  %4369 = vmatpush.bf16.msra.mxu0 %v5643_v30  ;;  %v6378_v4 = vld [vmem:[#allocation8 + $0x6d8] sm:$0xf]  ;;  %v6123_v11 = vor.u32 %v8015_v2, %v6122_v1 }
 0x296   :  { %v8079_v5 = vld [vmem:[#allocation8 + $0x6f4] sm:$0xf0] }
 0x297   :  { %4406 = vmatpush.bf16.msra.mxu3 %v6475_v12  ;;  %4382 = vmatpush.bf16.msra.mxu1 %v5899_v35  ;;  %v5546_v8 = vld [vmem:[#allocation8 + $0x58] sm:$0xf]  ;;  %v6379_v17 = vor.u32 %v8079_v5, %v6378_v4 }
 0x298   :  { %v7871_v9 = vld [vmem:[#allocation8 + $0x74] sm:$0xf0] }
 0x299   :  { %4394 = vmatpush.bf16.msra.mxu2 %v6187_v38  ;;  %4370 = vmatpush.bf16.msra.mxu0 %v5611_v55  ;;  %v5802_v13 = vld [vmem:[#allocation8 + $0x258] sm:$0xf]  ;;  %v5547_v22 = vor.u32 %v7871_v9, %v5546_v8  ;;  %v8831_v55 = vadd.f32 %v4154_v41, %v4142_v40 }
 0x29a   :  { %v7935_v14 = vld [vmem:[#allocation8 + $0x274] sm:$0xf0] }
 0x29b   :  { %4407 = vmatpush.bf16.msra.mxu3 %v6443_v47  ;;  %4383 = vmatpush.bf16.msra.mxu1 %v5867_v58  ;;  %v6090_v19 = vld [vmem:[#allocation8 + $0x498] sm:$0xf]  ;;  %v5803_v26 = vor.u32 %v7935_v14, %v5802_v13  ;;  %v4143_v13 = vpop.f32.mrf.mxu2 }
 0x29c   :  { %v8007_v20 = vld [vmem:[#allocation8 + $0x4b4] sm:$0xf0] }
 0x29d   :  { %4395 = vmatpush.bf16.msra.mxu2 %v6155_v61  ;;  %4371 = vmatpush.bf16.msra.mxu0 %v5579_v50  ;;  %v6346_v24 = vld [vmem:[#allocation8 + $0x698] sm:$0xf]  ;;  %v6091_v31 = vor.u32 %v8007_v20, %v6090_v19  ;;  %v4156_v20 = vpop.f32.mrf.mxu3 }
 0x29e   :  { %v8071_v3 = vld [vmem:[#allocation8 + $0x6b4] sm:$0xf0] }
 0x29f   :  { %4408 = vmatpush.bf16.msra.mxu3 %v6411_v0  ;;  %v5514_v25 = vld [vmem:[#allocation8 + $0x18] sm:$0xf]  ;;  %4384 = vmatpush.bf16.msra.mxu1 %v5835_v6  ;;  %v6347_v35 = vor.u32 %v8071_v3, %v6346_v24 }
 0x2a0   :  { %v7927_v12 = vld [vmem:[#allocation8 + $0x234] sm:$0xf0]  ;;  %v5515_v42 = vor.u32 %v7863_v28, %v5514_v25 }
 0x2a1   :  { %4396 = vmatpush.bf16.msra.mxu2 %v6123_v11  ;;  %v6762_v32 = vld [vmem:[#allocation8 + $0x9d8] sm:$0xf]  ;;  %4372 = vmatpush.bf16.msra.mxu0 %v5547_v22  ;;  %v5771_v53 = vor.u32 %v7927_v12, %v5770_v29 }
 0x2a2   :  { %v8175_v30 = vld [vmem:[#allocation8 + $0x9f4] sm:$0xf0] }
 0x2a3   :  { %v7018_v33 = vld [vmem:[#allocation8 + $0xbd8] sm:$0xf]  ;;  %4409 = vmatpush.bf16.msra.mxu3 %v6379_v17  ;;  %4385 = vmatpush.bf16.msra.mxu1 %v5803_v26  ;;  %v6763_v54 = vor.u32 %v8175_v30, %v6762_v32 }
 0x2a4   :  { %v8239_v36 = vld [vmem:[#allocation8 + $0xbf4] sm:$0xf0] }
 0x2a5   :  { %v6058_v37 = vld [vmem:[#allocation8 + $0x458] sm:$0xf]  ;;  %4397 = vmatpush.bf16.msra.mxu2 %v6091_v31  ;;  %v7019_v57 = vor.u32 %v8239_v36, %v7018_v33  ;;  %4373 = vmatpush.bf16.msra.mxu0 %v5515_v42  ;;  %v1170_v36 = vperm.slane %v8820_v27, 4  ;;  %v4180_v27 = vpop.f32.mrf.mxu1 }
 0x2a6   :  { %v7999_v38 = vld [vmem:[#allocation8 + $0x474] sm:$0xf0] }
 0x2a7   :  { %v6314_v47 = vld [vmem:[#allocation8 + $0x658] sm:$0xf]  ;;  %v6059_v56 = vor.u32 %v7999_v38, %v6058_v37  ;;  %4410 = vmatpush.bf16.msra.mxu3 %v6347_v35  ;;  %4386 = vmatpush.bf16.msra.mxu1 %v5771_v53 }
 0x2a8   :  { %v8063_v52 = vld [vmem:[#allocation8 + $0x674] sm:$0xf0]  ;;  %4374 = vmatmul.bf16.vlgmr.msra.gmra.mxu0 %v8739_v18 }
 0x2a9   :  { %v6730_v46 = vld [vmem:[#allocation8 + $0x998] sm:$0xf]  ;;  %v6315_v61 = vor.u32 %v8063_v52, %v6314_v47  ;;  %4418 = vmatpush.bf16.msrb.mxu0 %v6763_v54  ;;  %4398 = vmatpush.bf16.msra.mxu2 %v6059_v56 }
 0x2aa   :  { %v8167_v58 = vld [vmem:[#allocation8 + $0x9b4] sm:$0xf0]  ;;  %4387 = vmatmul.bf16.vlgmr.msra.gmra.mxu1 %v8742_v23 }
 0x2ab   :  { %v6986_v59 = vld [vmem:[#allocation8 + $0xb98] sm:$0xf]  ;;  %v6731_v50 = vor.u32 %v8167_v58, %v6730_v46  ;;  %4431 = vmatpush.bf16.msrb.mxu1 %v7019_v57  ;;  %4411 = vmatpush.bf16.msra.mxu3 %v6315_v61  ;;  %v4167_v46 = vpop.f32.mrf.mxu0 }
 0x2ac   :  { %v8231_v39 = vld [vmem:[#allocation8 + $0xbb4] sm:$0xf0] }
 0x2ad   :  { %v6026_v60 = vld [vmem:[#allocation8 + $0x418] sm:$0xf]  ;;  %v6987_v6 = vor.u32 %v8231_v39, %v6986_v59  ;;  %4419 = vmatpush.bf16.msrb.mxu0 %v6731_v50  ;;  %v4168_v59 = vadd.f32 %v4167_v46, %v1170_v36  ;;  %v7915_v36 = vld [vmem:[#allocation8 + $0x1dc] sm:$0xf] }
 0x2ae   :  { %v7991_v62 = vld [vmem:[#allocation8 + $0x434] sm:$0xf0] }
 0x2af   :  { %v6282_v63 = vld [vmem:[#allocation8 + $0x618] sm:$0xf]  ;;  %v6027_v8 = vor.u32 %v7991_v62, %v6026_v60  ;;  %4432 = vmatpush.bf16.msrb.mxu1 %v6987_v6 }
 0x2b0   :  { %v8055_v0 = vld [vmem:[#allocation8 + $0x634] sm:$0xf0] }
 0x2b1   :  { %v7274_v1 = vld [vmem:[#allocation8 + $0xdd8] sm:$0xf]  ;;  %v6283_v14 = vor.u32 %v8055_v0, %v6282_v63  ;;  %4399 = vmatpush.bf16.msra.mxu2 %v6027_v8 }
 0x2b2   :  { %v8303_v2 = vld [vmem:[#allocation8 + $0xdf4] sm:$0xf0] }
 0x2b3   :  { %v7530_v4 = vld [vmem:[#allocation8 + $0xfd8] sm:$0xf]  ;;  %v7275_v15 = vor.u32 %v8303_v2, %v7274_v1  ;;  %4412 = vmatpush.bf16.msra.mxu3 %v6283_v14  ;;  %v4181_v1 = vadd.f32 %v4180_v27, %v4168_v59  ;;  %v7907_v27 = vld [vmem:[#allocation8 + $0x19c] sm:$0xf] }
 0x2b4   :  { %v8367_v5 = vld [vmem:[#allocation8 + $0xff4] sm:$0xf0]  ;;  %4400 = vmatmul.bf16.vlgmr.msra.gmra.mxu2 %v8746_v44 }
 0x2b5   :  { %v6698_v9 = vld [vmem:[#allocation8 + $0x958] sm:$0xf]  ;;  %v7531_v21 = vor.u32 %v8367_v5, %v7530_v4  ;;  %4444 = vmatpush.bf16.msrb.mxu2 %v7275_v15 }
 0x2b6   :  { %v8159_v11 = vld [vmem:[#allocation8 + $0x974] sm:$0xf0]  ;;  %4413 = vmatmul.bf16.vlgmr.msra.gmra.mxu3 %v8748_v51 }
 0x2b7   :  { %v6954_v17 = vld [vmem:[#allocation8 + $0xb58] sm:$0xf]  ;;  %v6699_v3 = vor.u32 %v8159_v11, %v6698_v9  ;;  %4457 = vmatpush.bf16.msrb.mxu3 %v7531_v21 }
 0x2b8   :  { %v8223_v19 = vld [vmem:[#allocation8 + $0xb74] sm:$0xf0] }
 0x2b9   :  { %v7242_v22 = vld [vmem:[#allocation8 + $0xd98] sm:$0xf]  ;;  %v6955_v28 = vor.u32 %v8223_v19, %v6954_v17  ;;  %4420 = vmatpush.bf16.msrb.mxu0 %v6699_v3 }
 0x2ba   :  { %v8295_v24 = vld [vmem:[#allocation8 + $0xdb4] sm:$0xf0] }
 0x2bb   :  { %v7498_v25 = vld [vmem:[#allocation8 + $0xf98] sm:$0xf]  ;;  %v7243_v31 = vor.u32 %v8295_v24, %v7242_v22  ;;  %4433 = vmatpush.bf16.msrb.mxu1 %v6955_v28  ;;  %v4169_v22 = vpop.f32.mrf.mxu0 }
 0x2bc   :  { %v8359_v26 = vld [vmem:[#allocation8 + $0xfb4] sm:$0xf0] }
 0x2bd   :  { %v6666_v29 = vld [vmem:[#allocation8 + $0x918] sm:$0xf]  ;;  %v7499_v33 = vor.u32 %v8359_v26, %v7498_v25  ;;  %4445 = vmatpush.bf16.msrb.mxu2 %v7243_v31  ;;  %v4182_v26 = vpop.f32.mrf.mxu1 }
 0x2be   :  { %v8151_v12 = vld [vmem:[#allocation8 + $0x934] sm:$0xf0] }
 0x2bf   :  { %v6922_v32 = vld [vmem:[#allocation8 + $0xb18] sm:$0xf]  ;;  %v6667_v37 = vor.u32 %v8151_v12, %v6666_v29  ;;  %4458 = vmatpush.bf16.msrb.mxu3 %v7499_v33 }
 0x2c0   :  { %v8215_v30 = vld [vmem:[#allocation8 + $0xb34] sm:$0xf0] }
 0x2c1   :  { %v7210_v34 = vld [vmem:[#allocation8 + $0xd58] sm:$0xf]  ;;  %v6923_v41 = vor.u32 %v8215_v30, %v6922_v32  ;;  %4421 = vmatpush.bf16.msrb.mxu0 %v6667_v37  ;;  %v5740_v37 = vld [vmem:[#allocation8 + $0x1f8] sm:$0xf0] }
 0x2c2   :  { %v8287_v35 = vld [vmem:[#allocation8 + $0xd74] sm:$0xf0]  ;;  %v5743_v59 = vor.u32 %v7915_v36, %v5740_v37  ;;  %v7955_v36 = vld [vmem:[#allocation8 + $0x31c] sm:$0xf] }
 0x2c3   :  { %v7466_v38 = vld [vmem:[#allocation8 + $0xf58] sm:$0xf]  ;;  %v7211_v52 = vor.u32 %v8287_v35, %v7210_v34  ;;  %4434 = vmatpush.bf16.msrb.mxu1 %v6923_v41  ;;  %v5900_v37 = vld [vmem:[#allocation8 + $0x338] sm:$0xf0] }
 0x2c4   :  { %v8351_v40 = vld [vmem:[#allocation8 + $0xf74] sm:$0xf0] }
 0x2c5   :  { %v6634_v42 = vld [vmem:[#allocation8 + $0x8d8] sm:$0xf]  ;;  %v7467_v57 = vor.u32 %v8351_v40, %v7466_v38  ;;  %4446 = vmatpush.bf16.msrb.mxu2 %v7211_v52  ;;  %v7979_v38 = vld [vmem:[#allocation8 + $0x3dc] sm:$0xf]  ;;  %v4193_v40 = vpop.f32.mrf.mxu2 }
 0x2c6   :  { %v8143_v47 = vld [vmem:[#allocation8 + $0x8f4] sm:$0xf0] }
 0x2c7   :  { %v6890_v53 = vld [vmem:[#allocation8 + $0xad8] sm:$0xf]  ;;  %v6635_v39 = vor.u32 %v8143_v47, %v6634_v42  ;;  %4459 = vmatpush.bf16.msrb.mxu3 %v7467_v57  ;;  %v5996_v42 = vld [vmem:[#allocation8 + $0x3f8] sm:$0xf0] }
 0x2c8   :  { %v8207_v54 = vld [vmem:[#allocation8 + $0xaf4] sm:$0xf0] }
 0x2c9   :  { %v7178_v56 = vld [vmem:[#allocation8 + $0xd18] sm:$0xf]  ;;  %v6891_v62 = vor.u32 %v8207_v54, %v6890_v53  ;;  %4422 = vmatpush.bf16.msrb.mxu0 %v6635_v39  ;;  %v4194_v53 = vadd.f32 %v4193_v40, %v4181_v1  ;;  %v4206_v54 = vpop.f32.mrf.mxu3  ;;  %v8027_v40 = vld [vmem:[#allocation8 + $0x55c] sm:$0xf] }
 0x2ca   :  { %v8279_v58 = vld [vmem:[#allocation8 + $0xd34] sm:$0xf0] }
 0x2cb   :  { %v7434_v61 = vld [vmem:[#allocation8 + $0xf18] sm:$0xf]  ;;  %v7179_v2 = vor.u32 %v8279_v58, %v7178_v56  ;;  %4435 = vmatpush.bf16.msrb.mxu1 %v6891_v62  ;;  %v8838_v39 = vadd.f32 %v4206_v54, %v4194_v53  ;;  %v5708_v62 = vld [vmem:[#allocation8 + $0x1b8] sm:$0xf0]  ;;  %v5903_v53 = vor.u32 %v7955_v36, %v5900_v37 }
 0x2cc   :  { %v8343_v60 = vld [vmem:[#allocation8 + $0xf34] sm:$0xf0]  ;;  %v7883_v54 = vld [vmem:[#allocation8 + $0xdc] sm:$0xf] }
 0x2cd   :  { %v6602_v63 = vld [vmem:[#allocation8 + $0x898] sm:$0xf]  ;;  %v7435_v5 = vor.u32 %v8343_v60, %v7434_v61  ;;  %4447 = vmatpush.bf16.msrb.mxu2 %v7179_v2  ;;  %v5999_v61 = vor.u32 %v7979_v38, %v5996_v42  ;;  %v5516_v36 = vld [vmem:[#allocation8 + $0x38] sm:$0xf0] }
 0x2ce   :  { %v8135_v0 = vld [vmem:[#allocation8 + $0x8b4] sm:$0xf0]  ;;  %v7923_v37 = vld [vmem:[#allocation8 + $0x21c] sm:$0xf] }
 0x2cf   :  { %v6858_v50 = vld [vmem:[#allocation8 + $0xa98] sm:$0xf]  ;;  %v6603_v9 = vor.u32 %v8135_v0, %v6602_v63  ;;  %4460 = vmatpush.bf16.msrb.mxu3 %v7435_v5  ;;  %v7971_v63 = vld [vmem:[#allocation8 + $0x39c] sm:$0xf] }
 0x2d0   :  { %v8199_v4 = vld [vmem:[#allocation8 + $0xab4] sm:$0xf0]  ;;  %v5964_v0 = vld [vmem:[#allocation8 + $0x3b8] sm:$0xf0] }
 0x2d1   :  { %v7146_v6 = vld [vmem:[#allocation8 + $0xcd8] sm:$0xf]  ;;  %v6859_v14 = vor.u32 %v8199_v4, %v6858_v50  ;;  %4423 = vmatpush.bf16.msrb.mxu0 %v6603_v9  ;;  %v5711_v9 = vor.u32 %v7907_v27, %v5708_v62 }
 0x2d2   :  { %v8271_v8 = vld [vmem:[#allocation8 + $0xcf4] sm:$0xf0] }
 0x2d3   :  { %v7402_v11 = vld [vmem:[#allocation8 + $0xed8] sm:$0xf]  ;;  %v7147_v19 = vor.u32 %v8271_v8, %v7146_v6  ;;  %4436 = vmatpush.bf16.msrb.mxu1 %v6859_v14  ;;  %v8043_v6 = vld [vmem:[#allocation8 + $0x5dc] sm:$0xf]  ;;  %v5967_v14 = vor.u32 %v7971_v63, %v5964_v0  ;;  %v4232_v63 = vpop.f32.mrf.mxu1 }
 0x2d4   :  { %v8335_v13 = vld [vmem:[#allocation8 + $0xef4] sm:$0xf0]  ;;  %v6252_v8 = vld [vmem:[#allocation8 + $0x5f8] sm:$0xf0] }
 0x2d5   :  { %v6570_v15 = vld [vmem:[#allocation8 + $0x858] sm:$0xf]  ;;  %v7403_v24 = vor.u32 %v8335_v13, %v7402_v11  ;;  %4448 = vmatpush.bf16.msrb.mxu2 %v7147_v19  ;;  %v8107_v11 = vld [vmem:[#allocation8 + $0x7dc] sm:$0xf]  ;;  %v6255_v22 = vor.u32 %v8043_v6, %v6252_v8 }
 0x2d6   :  { %v8127_v17 = vld [vmem:[#allocation8 + $0x874] sm:$0xf0]  ;;  %v6508_v13 = vld [vmem:[#allocation8 + $0x7f8] sm:$0xf0] }
 0x2d7   :  { %v6826_v20 = vld [vmem:[#allocation8 + $0xa58] sm:$0xf]  ;;  %v6571_v28 = vor.u32 %v8127_v17, %v6570_v15  ;;  %4461 = vmatpush.bf16.msrb.mxu3 %v7403_v24  ;;  %v7899_v17 = vld [vmem:[#allocation8 + $0x15c] sm:$0xf]  ;;  %v6511_v26 = vor.u32 %v8107_v11, %v6508_v13 }
 0x2d8   :  { %v8191_v21 = vld [vmem:[#allocation8 + $0xa74] sm:$0xf0]  ;;  %v5676_v19 = vld [vmem:[#allocation8 + $0x178] sm:$0xf0] }
 0x2d9   :  { %v7114_v3 = vld [vmem:[#allocation8 + $0xc98] sm:$0xf]  ;;  %v6827_v32 = vor.u32 %v8191_v21, %v6826_v20  ;;  %4424 = vmatpush.bf16.msrb.mxu0 %v6571_v28  ;;  %v4195_v20 = vpop.f32.mrf.mxu2  ;;  %v7963_v24 = vld [vmem:[#allocation8 + $0x35c] sm:$0xf] }
 0x2da   :  { %v8263_v25 = vld [vmem:[#allocation8 + $0xcb4] sm:$0xf0]  ;;  %v8035_v28 = vld [vmem:[#allocation8 + $0x59c] sm:$0xf] }
 0x2db   :  { %v7370_v29 = vld [vmem:[#allocation8 + $0xe98] sm:$0xf]  ;;  %v7115_v35 = vor.u32 %v8263_v25, %v7114_v3  ;;  %4437 = vmatpush.bf16.msrb.mxu1 %v6827_v32  ;;  %v5932_v3 = vld [vmem:[#allocation8 + $0x378] sm:$0xf0]  ;;  %v4208_v25 = vpop.f32.mrf.mxu3 }
 0x2dc   :  { %v8327_v12 = vld [vmem:[#allocation8 + $0xeb4] sm:$0xf0]  ;;  %v6476_v32 = vld [vmem:[#allocation8 + $0x7b8] sm:$0xf0] }
 0x2dd   :  { %v6538_v31 = vld [vmem:[#allocation8 + $0x818] sm:$0xf]  ;;  %v7371_v41 = vor.u32 %v8327_v12, %v7370_v29  ;;  %4449 = vmatpush.bf16.msrb.mxu2 %v7115_v35  ;;  %v6220_v29 = vld [vmem:[#allocation8 + $0x5b8] sm:$0xf0]  ;;  %v5679_v12 = vor.u32 %v7899_v17, %v5676_v19 }
 0x2de   :  { %v8119_v30 = vld [vmem:[#allocation8 + $0x834] sm:$0xf0]  ;;  %v6223_v35 = vor.u32 %v8035_v28, %v6220_v29  ;;  %v5836_v11 = vld [vmem:[#allocation8 + $0x2b8] sm:$0xf0] }
 0x2df   :  { %v6794_v33 = vld [vmem:[#allocation8 + $0xa18] sm:$0xf]  ;;  %v6539_v46 = vor.u32 %v8119_v30, %v6538_v31  ;;  %4462 = vmatpush.bf16.msrb.mxu3 %v7371_v41  ;;  %v8099_v31 = vld [vmem:[#allocation8 + $0x79c] sm:$0xf]  ;;  %v5935_v30 = vor.u32 %v7963_v24, %v5932_v3 }
 0x2e0   :  { %v8183_v34 = vld [vmem:[#allocation8 + $0xa34] sm:$0xf0]  ;;  %v6479_v38 = vor.u32 %v8099_v31, %v6476_v32  ;;  %v6188_v41 = vld [vmem:[#allocation8 + $0x578] sm:$0xf0]  ;;  %v4234_v31 = vpop.f32.mrf.mxu1 }
 0x2e1   :  { %v7082_v47 = vld [vmem:[#allocation8 + $0xc58] sm:$0xf]  ;;  %v6795_v58 = vor.u32 %v8183_v34, %v6794_v33  ;;  %4425 = vmatpush.bf16.msrb.mxu0 %v6539_v46  ;;  %v7891_v33 = vld [vmem:[#allocation8 + $0x11c] sm:$0xf] }
 0x2e2   :  { %v8255_v52 = vld [vmem:[#allocation8 + $0xc74] sm:$0xf0]  ;;  %v5644_v34 = vld [vmem:[#allocation8 + $0x138] sm:$0xf0] }
 0x2e3   :  { %v7338_v57 = vld [vmem:[#allocation8 + $0xe58] sm:$0xf]  ;;  %v7083_v60 = vor.u32 %v8255_v52, %v7082_v47  ;;  %4438 = vmatpush.bf16.msrb.mxu1 %v6795_v58  ;;  %v5647_v42 = vor.u32 %v7891_v33, %v5644_v34  ;;  %v8091_v47 = vld [vmem:[#allocation8 + $0x75c] sm:$0xf] }
 0x2e4   :  { %v8319_v56 = vld [vmem:[#allocation8 + $0xe74] sm:$0xf0]  ;;  %4426 = vmatmul.bf16.vlgmr.msrb.gmra.mxu0 %v8755_v7  ;;  %v6444_v52 = vld [vmem:[#allocation8 + $0x778] sm:$0xf0] }
 0x2e5   :  { %v7339_v2 = vor.u32 %v8319_v56, %v7338_v57  ;;  %v7050_v1 = vld [vmem:[#allocation8 + $0xc18] sm:$0xf]  ;;  %4470 = vmatpush.bf16.msra.mxu0 %v5743_v59  ;;  %4450 = vmatpush.bf16.msrb.mxu2 %v7083_v60  ;;  %v5612_v46 = vld [vmem:[#allocation8 + $0xf8] sm:$0xf0]  ;;  %v6191_v57 = vor.u32 %v8027_v40, %v6188_v41  ;;  %v4219_v59 = vpop.f32.mrf.mxu0  ;;  %v6447_v27 = vor.u32 %v8091_v47, %v6444_v52  ;;  %v4245_v52 = vpop.f32.mrf.mxu2 }
 0x2e6   :  { %v8247_v50 = vld [vmem:[#allocation8 + $0xc34] sm:$0xf0]  ;;  %4439 = vmatmul.bf16.vlgmr.msrb.gmra.mxu1 %v8758_v10  ;;  %v7947_v56 = vld [vmem:[#allocation8 + $0x2dc] sm:$0xf]  ;;  %v4220_v62 = vadd.f32 %v4219_v59, %v8838_v39  ;;  %v5615_v0 = vor.u32 %v7883_v54, %v5612_v46 }
 0x2e7   :  { %v7306_v4 = vld [vmem:[#allocation8 + $0xe18] sm:$0xf]  ;;  %4483 = vmatpush.bf16.msra.mxu1 %v5999_v61  ;;  %v7051_v15 = vor.u32 %v8247_v50, %v7050_v1  ;;  %4463 = vmatpush.bf16.msrb.mxu3 %v7339_v2  ;;  %v5868_v58 = vld [vmem:[#allocation8 + $0x2f8] sm:$0xf0] }
 0x2e8   :  { %v8311_v5 = vld [vmem:[#allocation8 + $0xe34] sm:$0xf0]  ;;  %v8019_v61 = vld [vmem:[#allocation8 + $0x51c] sm:$0xf]  ;;  %v5871_v50 = vor.u32 %v7947_v56, %v5868_v58  ;;  %v4233_v6 = vadd.f32 %v4232_v63, %v4220_v62  ;;  %v4258_v58 = vpop.f32.mrf.mxu3 }
 0x2e9   :  { %v7307_v21 = vor.u32 %v8311_v5, %v7306_v4  ;;  %4471 = vmatpush.bf16.msra.mxu0 %v5711_v9  ;;  %4451 = vmatpush.bf16.msrb.mxu2 %v7051_v15  ;;  %v6156_v60 = vld [vmem:[#allocation8 + $0x538] sm:$0xf0] }
 0x2ea   :  { %v8083_v2 = vld [vmem:[#allocation8 + $0x71c] sm:$0xf]  ;;  %v6159_v8 = vor.u32 %v8019_v61, %v6156_v60  ;;  %v4246_v56 = vadd.f32 %v4245_v52, %v4233_v6 }
 0x2eb   :  { %4484 = vmatpush.bf16.msra.mxu1 %v5967_v14  ;;  %4464 = vmatpush.bf16.msrb.mxu3 %v7307_v21  ;;  %v6412_v1 = vld [vmem:[#allocation8 + $0x738] sm:$0xf0] }
 0x2ec   :  { %4452 = vmatmul.bf16.vlgmr.msrb.gmra.mxu2 %v8762_v48  ;;  %v7875_v4 = vld [vmem:[#allocation8 + $0x9c] sm:$0xf]  ;;  %v6415_v13 = vor.u32 %v8083_v2, %v6412_v1 }
 0x2ed   :  { %4496 = vmatpush.bf16.msra.mxu2 %v6255_v22  ;;  %4472 = vmatpush.bf16.msra.mxu0 %v5679_v12  ;;  %v5580_v5 = vld [vmem:[#allocation8 + $0xb8] sm:$0xf0] }
 0x2ee   :  { %4465 = vmatmul.bf16.vlgmr.msrb.gmra.mxu3 %v8764_v45  ;;  %v7939_v9 = vld [vmem:[#allocation8 + $0x29c] sm:$0xf]  ;;  %v5583_v39 = vor.u32 %v7875_v4, %v5580_v5 }
 0x2ef   :  { %4509 = vmatpush.bf16.msra.mxu3 %v6511_v26  ;;  %4485 = vmatpush.bf16.msra.mxu1 %v5935_v30  ;;  %v8011_v14 = vld [vmem:[#allocation8 + $0x4dc] sm:$0xf]  ;;  %v5839_v20 = vor.u32 %v7939_v9, %v5836_v11  ;;  %v4221_v26 = vpop.f32.mrf.mxu0 }
 0x2f0   :  { %v6124_v15 = vld [vmem:[#allocation8 + $0x4f8] sm:$0xf0] }
 0x2f1   :  { %4497 = vmatpush.bf16.msra.mxu2 %v6223_v35  ;;  %4473 = vmatpush.bf16.msra.mxu0 %v5647_v42  ;;  %v8075_v17 = vld [vmem:[#allocation8 + $0x6dc] sm:$0xf]  ;;  %v6127_v24 = vor.u32 %v8011_v14, %v6124_v15 }
 0x2f2   :  { %v6380_v19 = vld [vmem:[#allocation8 + $0x6f8] sm:$0xf0] }
 0x2f3   :  { %4510 = vmatpush.bf16.msra.mxu3 %v6479_v38  ;;  %4486 = vmatpush.bf16.msra.mxu1 %v5903_v53  ;;  %v7867_v21 = vld [vmem:[#allocation8 + $0x5c] sm:$0xf]  ;;  %v6383_v28 = vor.u32 %v8075_v17, %v6380_v19 }
 0x2f4   :  { %v5548_v22 = vld [vmem:[#allocation8 + $0x78] sm:$0xf0] }
 0x2f5   :  { %4498 = vmatpush.bf16.msra.mxu2 %v6191_v57  ;;  %4474 = vmatpush.bf16.msra.mxu0 %v5615_v0  ;;  %v7931_v3 = vld [vmem:[#allocation8 + $0x25c] sm:$0xf]  ;;  %v5551_v32 = vor.u32 %v7867_v21, %v5548_v22  ;;  %v8845_v0 = vadd.f32 %v4258_v58, %v4246_v56 }
 0x2f6   :  { %v5804_v25 = vld [vmem:[#allocation8 + $0x278] sm:$0xf0] }
 0x2f7   :  { %4511 = vmatpush.bf16.msra.mxu3 %v6447_v27  ;;  %4487 = vmatpush.bf16.msra.mxu1 %v5871_v50  ;;  %v8003_v29 = vld [vmem:[#allocation8 + $0x49c] sm:$0xf]  ;;  %v5807_v35 = vor.u32 %v7931_v3, %v5804_v25  ;;  %v4247_v3 = vpop.f32.mrf.mxu2 }
 0x2f8   :  { %v6092_v12 = vld [vmem:[#allocation8 + $0x4b8] sm:$0xf0] }
 0x2f9   :  { %4499 = vmatpush.bf16.msra.mxu2 %v6159_v8  ;;  %4475 = vmatpush.bf16.msra.mxu0 %v5583_v39  ;;  %v8067_v30 = vld [vmem:[#allocation8 + $0x69c] sm:$0xf]  ;;  %v6095_v40 = vor.u32 %v8003_v29, %v6092_v12  ;;  %v4260_v12 = vpop.f32.mrf.mxu3 }
 0x2fa   :  { %v6348_v33 = vld [vmem:[#allocation8 + $0x6b8] sm:$0xf0] }
 0x2fb   :  { %4512 = vmatpush.bf16.msra.mxu3 %v6415_v13  ;;  %v7859_v34 = vld [vmem:[#allocation8 + $0x1c] sm:$0xf]  ;;  %4488 = vmatpush.bf16.msra.mxu1 %v5839_v20  ;;  %v6351_v53 = vor.u32 %v8067_v30, %v6348_v33 }
 0x2fc   :  { %v5772_v38 = vld [vmem:[#allocation8 + $0x238] sm:$0xf0]  ;;  %v5519_v59 = vor.u32 %v7859_v34, %v5516_v36 }
 0x2fd   :  { %4500 = vmatpush.bf16.msra.mxu2 %v6127_v24  ;;  %v8171_v41 = vld [vmem:[#allocation8 + $0x9dc] sm:$0xf]  ;;  %4476 = vmatpush.bf16.msra.mxu0 %v5551_v32  ;;  %v5775_v60 = vor.u32 %v7923_v37, %v5772_v38 }
 0x2fe   :  { %v6764_v42 = vld [vmem:[#allocation8 + $0x9f8] sm:$0xf0] }
 0x2ff   :  { %v8235_v47 = vld [vmem:[#allocation8 + $0xbdc] sm:$0xf]  ;;  %4513 = vmatpush.bf16.msra.mxu3 %v6383_v28  ;;  %4489 = vmatpush.bf16.msra.mxu1 %v5807_v35  ;;  %v6767_v62 = vor.u32 %v8171_v41, %v6764_v42 }
 0x300   :  { %v7020_v54 = vld [vmem:[#allocation8 + $0xbf8] sm:$0xf0] }
 0x301   :  { %v7995_v46 = vld [vmem:[#allocation8 + $0x45c] sm:$0xf]  ;;  %4501 = vmatpush.bf16.msra.mxu2 %v6095_v40  ;;  %v7023_v2 = vor.u32 %v8235_v47, %v7020_v54  ;;  %4477 = vmatpush.bf16.msra.mxu0 %v5519_v59 }
 0x302   :  { %v6060_v57 = vld [vmem:[#allocation8 + $0x478] sm:$0xf0] }
 0x303   :  { %v8059_v27 = vld [vmem:[#allocation8 + $0x65c] sm:$0xf]  ;;  %v6063_v1 = vor.u32 %v7995_v46, %v6060_v57  ;;  %4514 = vmatpush.bf16.msra.mxu3 %v6351_v53  ;;  %4490 = vmatpush.bf16.msra.mxu1 %v5775_v60 }
 0x304   :  { %v6316_v61 = vld [vmem:[#allocation8 + $0x678] sm:$0xf0]  ;;  %4478 = vmatmul.bf16.vlgmr.msra.gmra.mxu0 %v8739_v18 }
 0x305   :  { %v8163_v63 = vld [vmem:[#allocation8 + $0x99c] sm:$0xf]  ;;  %v6319_v8 = vor.u32 %v8059_v27, %v6316_v61  ;;  %4522 = vmatpush.bf16.msrb.mxu0 %v6767_v62  ;;  %4502 = vmatpush.bf16.msra.mxu2 %v6063_v1  ;;  %v8851_v61 = vpop.f32.mrf.mxu0 }
 0x306   :  { %v6732_v50 = vld [vmem:[#allocation8 + $0x9b8] sm:$0xf0]  ;;  %4491 = vmatmul.bf16.vlgmr.msra.gmra.mxu1 %v8742_v23 }
 0x307   :  { %v8227_v4 = vld [vmem:[#allocation8 + $0xb9c] sm:$0xf]  ;;  %v6735_v39 = vor.u32 %v8163_v63, %v6732_v50  ;;  %4535 = vmatpush.bf16.msrb.mxu1 %v7023_v2  ;;  %4515 = vmatpush.bf16.msra.mxu3 %v6319_v8  ;;  %v8853_v63 = vpop.f32.mrf.mxu1 }
 0x308   :  { %v6988_v5 = vld [vmem:[#allocation8 + $0xbb8] sm:$0xf0] }
 0x309   :  { %v7987_v6 = vld [vmem:[#allocation8 + $0x41c] sm:$0xf]  ;;  %v6991_v20 = vor.u32 %v8227_v4, %v6988_v5  ;;  %4523 = vmatpush.bf16.msrb.mxu0 %v6735_v39 }
 0x30a   :  { %v6028_v9 = vld [vmem:[#allocation8 + $0x438] sm:$0xf0] }
 0x30b   :  { %v8051_v11 = vld [vmem:[#allocation8 + $0x61c] sm:$0xf]  ;;  %v6031_v21 = vor.u32 %v7987_v6, %v6028_v9  ;;  %4536 = vmatpush.bf16.msrb.mxu1 %v6991_v20 }
 0x30c   :  { %v6284_v13 = vld [vmem:[#allocation8 + $0x638] sm:$0xf0] }
 0x30d   :  { %v8299_v14 = vld [vmem:[#allocation8 + $0xddc] sm:$0xf]  ;;  %v6287_v25 = vor.u32 %v8051_v11, %v6284_v13  ;;  %4503 = vmatpush.bf16.msra.mxu2 %v6031_v21 }
 0x30e   :  { %v7276_v15 = vld [vmem:[#allocation8 + $0xdf8] sm:$0xf0] }
 0x30f   :  { %v8363_v17 = vld [vmem:[#allocation8 + $0xfdc] sm:$0xf]  ;;  %v7279_v26 = vor.u32 %v8299_v14, %v7276_v15  ;;  %4516 = vmatpush.bf16.msra.mxu3 %v6287_v25  ;;  %v4273_v25 = vpop.f32.mrf.mxu0  ;;  %v4286_v12 = vpop.f32.mrf.mxu1 }
 0x310   :  { %v7532_v19 = vld [vmem:[#allocation8 + $0xff8] sm:$0xf0]  ;;  %4504 = vmatmul.bf16.vlgmr.msra.gmra.mxu2 %v8746_v44  ;;  %v8395_v25 = vld [vmem:[#allocation11 + $0xd8] sm:$0xff] }
 0x311   :  { %v8155_v22 = vld [vmem:[#allocation8 + $0x95c] sm:$0xf]  ;;  %v7535_v31 = vor.u32 %v8363_v17, %v7532_v19  ;;  %4548 = vmatpush.bf16.msrb.mxu2 %v7279_v26 }
 0x312   :  { %v6700_v24 = vld [vmem:[#allocation8 + $0x978] sm:$0xf0]  ;;  %4517 = vmatmul.bf16.vlgmr.msra.gmra.mxu3 %v8748_v51 }
 0x313   :  { %v8219_v28 = vld [vmem:[#allocation8 + $0xb5c] sm:$0xf]  ;;  %v6703_v33 = vor.u32 %v8155_v22, %v6700_v24  ;;  %4561 = vmatpush.bf16.msrb.mxu3 %v7535_v31 }
 0x314   :  { %v6956_v29 = vld [vmem:[#allocation8 + $0xb78] sm:$0xf0] }
 0x315   :  { %v8291_v32 = vld [vmem:[#allocation8 + $0xd9c] sm:$0xf]  ;;  %v6959_v36 = vor.u32 %v8219_v28, %v6956_v29  ;;  %4524 = vmatpush.bf16.msrb.mxu0 %v6703_v33 }
 0x316   :  { %v7244_v30 = vld [vmem:[#allocation8 + $0xdb8] sm:$0xf0] }
 0x317   :  { %v8355_v34 = vld [vmem:[#allocation8 + $0xf9c] sm:$0xf]  ;;  %v7247_v18 = vor.u32 %v8291_v32, %v7244_v30  ;;  %4537 = vmatpush.bf16.msrb.mxu1 %v6959_v36 }
 0x318   :  { %v7500_v35 = vld [vmem:[#allocation8 + $0xfb8] sm:$0xf0] }
 0x319   :  { %v8147_v37 = vld [vmem:[#allocation8 + $0x91c] sm:$0xf]  ;;  %v7503_v42 = vor.u32 %v8355_v34, %v7500_v35  ;;  %4549 = vmatpush.bf16.msrb.mxu2 %v7247_v18  ;;  %v8855_v18 = vpop.f32.mrf.mxu2 }
 0x31a   :  { %v6668_v38 = vld [vmem:[#allocation8 + $0x938] sm:$0xf0] }
 0x31b   :  { %v8211_v40 = vld [vmem:[#allocation8 + $0xb1c] sm:$0xf]  ;;  %v6671_v52 = vor.u32 %v8147_v37, %v6668_v38  ;;  %4562 = vmatpush.bf16.msrb.mxu3 %v7503_v42 }
 0x31c   :  { %v6924_v41 = vld [vmem:[#allocation8 + $0xb38] sm:$0xf0] }
 0x31d   :  { %v8283_v23 = vld [vmem:[#allocation8 + $0xd5c] sm:$0xf]  ;;  %v6927_v46 = vor.u32 %v8211_v40, %v6924_v41  ;;  %4525 = vmatpush.bf16.msrb.mxu0 %v6671_v52 }
 0x31e   :  { %v7212_v47 = vld [vmem:[#allocation8 + $0xd78] sm:$0xf0] }
 0x31f   :  { %v8347_v53 = vld [vmem:[#allocation8 + $0xf5c] sm:$0xf]  ;;  %v7215_v58 = vor.u32 %v8283_v23, %v7212_v47  ;;  %4538 = vmatpush.bf16.msrb.mxu1 %v6927_v46  ;;  %v8857_v23 = vpop.f32.mrf.mxu3  ;;  %v8375_v46 = vld [vmem:[#allocation11 + $0x38] sm:$0xff] }
 0x320   :  { %v7468_v54 = vld [vmem:[#allocation8 + $0xf78] sm:$0xf0] }
 0x321   :  { %v8139_v57 = vld [vmem:[#allocation8 + $0x8dc] sm:$0xf]  ;;  %v7471_v60 = vor.u32 %v8347_v53, %v7468_v54  ;;  %4550 = vmatpush.bf16.msrb.mxu2 %v7215_v58 }
 0x322   :  { %v6636_v56 = vld [vmem:[#allocation8 + $0x8f8] sm:$0xf0] }
 0x323   :  { %v8203_v59 = vld [vmem:[#allocation8 + $0xadc] sm:$0xf]  ;;  %v6639_v2 = vor.u32 %v8139_v57, %v6636_v56  ;;  %4563 = vmatpush.bf16.msrb.mxu3 %v7471_v60  ;;  %v8383_v57 = vld [vmem:[#allocation11 + $0x78] sm:$0xff] }
 0x324   :  { %v6892_v27 = vld [vmem:[#allocation8 + $0xaf8] sm:$0xf0] }
 0x325   :  { %v8275_v62 = vld [vmem:[#allocation8 + $0xd1c] sm:$0xf]  ;;  %v6895_v50 = vor.u32 %v8203_v59, %v6892_v27  ;;  %4526 = vmatpush.bf16.msrb.mxu0 %v6639_v2 }
 0x326   :  { %v7180_v44 = vld [vmem:[#allocation8 + $0xd38] sm:$0xf0] }
 0x327   :  { %v8339_v1 = vld [vmem:[#allocation8 + $0xf1c] sm:$0xf]  ;;  %v7183_v8 = vor.u32 %v8275_v62, %v7180_v44  ;;  %4539 = vmatpush.bf16.msrb.mxu1 %v6895_v50 }
 0x328   :  { %v7436_v51 = vld [vmem:[#allocation8 + $0xf38] sm:$0xf0] }
 0x329   :  { %v8131_v4 = vld [vmem:[#allocation8 + $0x89c] sm:$0xf]  ;;  %v7439_v11 = vor.u32 %v8339_v1, %v7436_v51  ;;  %4551 = vmatpush.bf16.msrb.mxu2 %v7183_v8  ;;  %v4299_v51 = vpop.f32.mrf.mxu2  ;;  %v8399_v8 = vld [vmem:[#allocation11 + $0xf8] sm:$0xff] }
 0x32a   :  { %v6604_v5 = vld [vmem:[#allocation8 + $0x8b8] sm:$0xf0] }
 0x32b   :  { %v8195_v6 = vld [vmem:[#allocation8 + $0xa9c] sm:$0xf]  ;;  %v6607_v15 = vor.u32 %v8131_v4, %v6604_v5  ;;  %4564 = vmatpush.bf16.msrb.mxu3 %v7439_v11  ;;  %v8391_v4 = vld [vmem:[#allocation11 + $0xb8] sm:$0xff]  ;;  %v4312_v5 = vpop.f32.mrf.mxu3 }
 0x32c   :  { %v6860_v9 = vld [vmem:[#allocation8 + $0xab8] sm:$0xf0] }
 0x32d   :  { %v8267_v13 = vld [vmem:[#allocation8 + $0xcdc] sm:$0xf]  ;;  %v6863_v19 = vor.u32 %v8195_v6, %v6860_v9  ;;  %4527 = vmatpush.bf16.msrb.mxu0 %v6607_v15  ;;  %v8373_v6 = vld [vmem:[#allocation11 + $0x28] sm:$0xff]  ;;  %v8863_v15 = vpop.f32.mrf.mxu0 }
 0x32e   :  { %v7148_v14 = vld [vmem:[#allocation8 + $0xcf8] sm:$0xf0]  ;;  %v8381_v9 = vld [vmem:[#allocation11 + $0x68] sm:$0xff] }
 0x32f   :  { %v8331_v39 = vld [vmem:[#allocation8 + $0xedc] sm:$0xf]  ;;  %v7151_v22 = vor.u32 %v8267_v13, %v7148_v14  ;;  %4540 = vmatpush.bf16.msrb.mxu1 %v6863_v19  ;;  %v8380_v14 = vld [vmem:[#allocation11 + $0x60] sm:$0xff]  ;;  %v8371_v19 = vld [vmem:[#allocation11 + $0x18] sm:$0xff] }
 0x330   :  { %v7404_v17 = vld [vmem:[#allocation8 + $0xef8] sm:$0xf0] }
 0x331   :  { %v8123_v20 = vld [vmem:[#allocation8 + $0x85c] sm:$0xf]  ;;  %v7407_v26 = vor.u32 %v8331_v39, %v7404_v17  ;;  %4552 = vmatpush.bf16.msrb.mxu2 %v7151_v22  ;;  %v8397_v39 = vld [vmem:[#allocation11 + $0xe8] sm:$0xff]  ;;  %v8865_v17 = vpop.f32.mrf.mxu1 }
 0x332   :  { %v6572_v21 = vld [vmem:[#allocation8 + $0x878] sm:$0xf0] }
 0x333   :  { %v8187_v24 = vld [vmem:[#allocation8 + $0xa5c] sm:$0xf]  ;;  %v6575_v31 = vor.u32 %v8123_v20, %v6572_v21  ;;  %4565 = vmatpush.bf16.msrb.mxu3 %v7407_v26  ;;  %v8379_v20 = vld [vmem:[#allocation11 + $0x58] sm:$0xff]  ;;  %v8396_v21 = vld [vmem:[#allocation11 + $0xe0] sm:$0xff] }
 0x334   :  { %v6828_v3 = vld [vmem:[#allocation8 + $0xa78] sm:$0xf0] }
 0x335   :  { %v8259_v28 = vld [vmem:[#allocation8 + $0xc9c] sm:$0xf]  ;;  %v6831_v33 = vor.u32 %v8187_v24, %v6828_v3  ;;  %4528 = vmatpush.bf16.msrb.mxu0 %v6575_v31  ;;  %v8387_v24 = vld [vmem:[#allocation11 + $0x98] sm:$0xff]  ;;  %v4325_v3 = vpop.f32.mrf.mxu0  ;;  %v8867_v31 = vpop.f32.mrf.mxu2 }
 0x336   :  { %v7116_v29 = vld [vmem:[#allocation8 + $0xcb8] sm:$0xf0]  ;;  %v8408_v3 = vld [vmem:[#allocation11 + $0x140] sm:$0xff] }
 0x337   :  { %v8323_v32 = vld [vmem:[#allocation8 + $0xe9c] sm:$0xf]  ;;  %v7119_v36 = vor.u32 %v8259_v28, %v7116_v29  ;;  %4541 = vmatpush.bf16.msrb.mxu1 %v6831_v33  ;;  %v8369_v28 = vld [vmem:[#allocation11 + $0x8] sm:$0xff]  ;;  %v8368_v33 = vld [vmem:[#allocation11] sm:$0xff] }
 0x338   :  { %v7372_v30 = vld [vmem:[#allocation8 + $0xeb8] sm:$0xf0]  ;;  %v8377_v29 = vld [vmem:[#allocation11 + $0x48] sm:$0xff] }
 0x339   :  { %v8115_v34 = vld [vmem:[#allocation8 + $0x81c] sm:$0xf]  ;;  %v7375_v40 = vor.u32 %v8323_v32, %v7372_v30  ;;  %4553 = vmatpush.bf16.msrb.mxu2 %v7119_v36  ;;  %v4338_v26 = vpop.f32.mrf.mxu1  ;;  %v8869_v30 = vpop.f32.mrf.mxu3 }
 0x33a   :  { %v6540_v35 = vld [vmem:[#allocation8 + $0x838] sm:$0xf0]  ;;  %v8417_v26 = vld [vmem:[#allocation11 + $0x188] sm:$0xff] }
 0x33b   :  { %v8179_v37 = vld [vmem:[#allocation8 + $0xa1c] sm:$0xf]  ;;  %v6543_v47 = vor.u32 %v8115_v34, %v6540_v35  ;;  %4566 = vmatpush.bf16.msrb.mxu3 %v7375_v40  ;;  %v4574_v34 = vmax.f32 %v8795_v16, 0.0  ;;  %v8872_v35 = vld [vmem:[#allocation10] sm:$0xff]  ;;  %v4575_v40 = vmax.f32 %v8801_v43, 0.0 }
 0x33c   :  { %v6796_v38 = vld [vmem:[#allocation8 + $0xa38] sm:$0xf0]  ;;  %v1171_v36 = vperm.slane %v8872_v35, 5 }
 0x33d   :  { %v8251_v41 = vld [vmem:[#allocation8 + $0xc5c] sm:$0xf]  ;;  %v6799_v54 = vor.u32 %v8179_v37, %v6796_v38  ;;  %4529 = vmatpush.bf16.msrb.mxu0 %v6543_v47  ;;  %v8376_v37 = vld [vmem:[#allocation11 + $0x40] sm:$0xff]  ;;  %v8407_v38 = vld [vmem:[#allocation11 + $0x138] sm:$0xff]  ;;  %v4351_v43 = vpop.f32.mrf.mxu2  ;;  %v4375_v5 = vpop.f32.mrf.mxu0 }
 0x33e   :  { %v7084_v42 = vld [vmem:[#allocation8 + $0xc78] sm:$0xf0]  ;;  %v8393_v47 = vld [vmem:[#allocation11 + $0xc8] sm:$0xff] }
 0x33f   :  { %v8315_v52 = vld [vmem:[#allocation8 + $0xe5c] sm:$0xf]  ;;  %v7087_v56 = vor.u32 %v8251_v41, %v7084_v42  ;;  %4542 = vmatpush.bf16.msrb.mxu1 %v6799_v54  ;;  %v8415_v41 = vld [vmem:[#allocation11 + $0x178] sm:$0xff]  ;;  %v8385_v42 = vld [vmem:[#allocation11 + $0x88] sm:$0xff]  ;;  %v4583_v54 = vpack.c.bf16 %v4575_v40, %v4575_v40 }
 0x340   :  { %v7340_v53 = vld [vmem:[#allocation8 + $0xe78] sm:$0xf0]  ;;  %4530 = vmatmul.bf16.vlgmr.msrb.gmra.mxu0 %v8755_v7  ;;  %v8372_v7 = vld [vmem:[#allocation11 + $0x20] sm:$0xff] }
 0x341   :  { %v7343_v58 = vor.u32 %v8315_v52, %v7340_v53  ;;  %v8243_v59 = vld [vmem:[#allocation8 + $0xc1c] sm:$0xf]  ;;  %5106 = vmatpush.bf16.msra.mxu0 %v8375_v46  ;;  %4554 = vmatpush.bf16.msrb.mxu2 %v7087_v56  ;;  %v4582_v52 = vpack.c.bf16 %v4574_v34, %v4574_v34  ;;  %v4272_v53 = vadd.f32 %v8851_v61, %v1171_v36  ;;  %v4576_v56 = vmax.f32 %v8815_v49, 0.0 }
 0x342   :  { %v7052_v27 = vld [vmem:[#allocation8 + $0xc38] sm:$0xf0]  ;;  %4543 = vmatmul.bf16.vlgmr.msrb.gmra.mxu1 %v8758_v10  ;;  %v8389_v10 = vld [vmem:[#allocation11 + $0xa8] sm:$0xff] }
 0x343   :  { %v8307_v60 = vld [vmem:[#allocation8 + $0xe1c] sm:$0xf]  ;;  %5119 = vmatpush.bf16.msra.mxu1 %v8383_v57  ;;  %v7055_v1 = vor.u32 %v8243_v59, %v7052_v27  ;;  %4567 = vmatpush.bf16.msrb.mxu3 %v7343_v58  ;;  %v8384_v57 = vld [vmem:[#allocation11 + $0x80] sm:$0xff]  ;;  %v8423_v59 = vld [vmem:[#allocation11 + $0x1b8] sm:$0xff]  ;;  %v4577_v27 = vmax.f32 %v8831_v55, 0.0  ;;  %v4285_v61 = vadd.f32 %v8853_v63, %v4272_v53 }
 0x344   :  { %v7308_v62 = vld [vmem:[#allocation8 + $0xe38] sm:$0xf0]  ;;  %v8392_v58 = vld [vmem:[#allocation11 + $0xc0] sm:$0xff]  ;;  %v8431_v53 = vld [vmem:[#allocation11 + $0x1f8] sm:$0xff] }
 0x345   :  { %v8374_v44 = vld [vmem:[#allocation11 + $0x30] sm:$0xff]  ;;  %v7311_v50 = vor.u32 %v8307_v60, %v7308_v62  ;;  %4555 = vmatpush.bf16.msrb.mxu2 %v7055_v1  ;;  %v4364_v60 = vpop.f32.mrf.mxu3  ;;  %v8405_v62 = vld [vmem:[#allocation11 + $0x128] sm:$0xff]  ;;  %v4298_v1 = vadd.f32 %v8855_v18, %v4285_v61  ;;  %v4585_v51 = vpack.c.bf16 %v4577_v27, %v4577_v27  ;;  %v8412_v55 = vld [vmem:[#allocation11 + $0x160] sm:$0xff] }
 0x346   :  { %v8382_v2 = vld [vmem:[#allocation11 + $0x70] sm:$0xff]  ;;  %5107 = vmatpush.bf16.msra.mxu0 %v8374_v44  ;;  %v8413_v44 = vld [vmem:[#allocation11 + $0x168] sm:$0xff]  ;;  %v8403_v18 = vld [vmem:[#allocation11 + $0x118] sm:$0xff] }
 0x347   :  { %5120 = vmatpush.bf16.msra.mxu1 %v8382_v2  ;;  %4568 = vmatpush.bf16.msrb.mxu3 %v7311_v50  ;;  %v8390_v11 = vld [vmem:[#allocation11 + $0xb0] sm:$0xff]  ;;  %v4584_v2 = vpack.c.bf16 %v4576_v56, %v4576_v56  ;;  %v8404_v50 = vld [vmem:[#allocation11 + $0x120] sm:$0xff]  ;;  %v4311_v63 = vadd.f32 %v8857_v23, %v4298_v1 }
 0x348   :  { %v8398_v13 = vld [vmem:[#allocation11 + $0xf0] sm:$0xff]  ;;  %4556 = vmatmul.bf16.vlgmr.msrb.gmra.mxu2 %v8762_v48  ;;  %v8388_v48 = vld [vmem:[#allocation11 + $0xa0] sm:$0xff] }
 0x349   :  { %5132 = vmatpush.bf16.msra.mxu2 %v8391_v4  ;;  %v8378_v22 = vld [vmem:[#allocation11 + $0x50] sm:$0xff]  ;;  %v8421_v4 = vld [vmem:[#allocation11 + $0x1a8] sm:$0xff]  ;;  %v8428_v60 = vld [vmem:[#allocation11 + $0x1e0] sm:$0xff] }
 0x34a   :  { %5108 = vmatpush.bf16.msra.mxu0 %v8373_v6  ;;  %4569 = vmatmul.bf16.vlgmr.msrb.gmra.mxu3 %v8764_v45  ;;  %v8370_v45 = vld [vmem:[#allocation11 + $0x10] sm:$0xff]  ;;  %v4388_v6 = vpop.f32.mrf.mxu1 }
 0x34b   :  { %5145 = vmatpush.bf16.msra.mxu3 %v8399_v8  ;;  %5121 = vmatpush.bf16.msra.mxu1 %v8381_v9  ;;  %v8386_v12 = vld [vmem:[#allocation11 + $0x90] sm:$0xff]  ;;  %v4324_v8 = vadd.f32 %v8863_v15, %v4311_v63  ;;  %v8411_v9 = vld [vmem:[#allocation11 + $0x158] sm:$0xff]  ;;  %v8401_v15 = vld [vmem:[#allocation11 + $0x108] sm:$0xff] }
 0x34c   :  { %v8394_v32 = vld [vmem:[#allocation11 + $0xd0] sm:$0xff]  ;;  %v8424_v63 = vld [vmem:[#allocation11 + $0x1c0] sm:$0xff] }
 0x34d   :  { %5133 = vmatpush.bf16.msra.mxu2 %v8390_v11  ;;  %v8406_v16 = vld [vmem:[#allocation11 + $0x130] sm:$0xff]  ;;  %v8420_v11 = vld [vmem:[#allocation11 + $0x1a0] sm:$0xff] }
 0x34e   :  { %5109 = vmatpush.bf16.msra.mxu0 %v8372_v7  ;;  %v8414_v46 = vld [vmem:[#allocation11 + $0x170] sm:$0xff] }
 0x34f   :  { %5146 = vmatpush.bf16.msra.mxu3 %v8398_v13  ;;  %5122 = vmatpush.bf16.msra.mxu1 %v8380_v14  ;;  %v8422_v49 = vld [vmem:[#allocation11 + $0x1b0] sm:$0xff]  ;;  %v4337_v13 = vadd.f32 %v8865_v17, %v4324_v8  ;;  %v4414_v17 = vpop.f32.mrf.mxu3 }
 0x350   :  { %v8402_v7 = vld [vmem:[#allocation11 + $0x110] sm:$0xff] }
 0x351   :  { %5134 = vmatpush.bf16.msra.mxu2 %v8389_v10  ;;  %v8410_v14 = vld [vmem:[#allocation11 + $0x150] sm:$0xff]  ;;  %v4350_v23 = vadd.f32 %v8867_v31, %v4337_v13  ;;  %v8419_v10 = vld [vmem:[#allocation11 + $0x198] sm:$0xff]  ;;  %v1172_v31 = vperm.slane %v8872_v35, 6 }
 0x352   :  { %5110 = vmatpush.bf16.msra.mxu0 %v8371_v19  ;;  %v4390_v19 = vpop.f32.mrf.mxu1  ;;  %v8430_v56 = vld [vmem:[#allocation11 + $0x1f0] sm:$0xff] }
 0x353   :  { %5147 = vmatpush.bf16.msra.mxu3 %v8397_v39  ;;  %5123 = vmatpush.bf16.msra.mxu1 %v8379_v20  ;;  %v4377_v39 = vpop.f32.mrf.mxu0  ;;  %v8409_v20 = vld [vmem:[#allocation11 + $0x148] sm:$0xff] }
 0x355   :  { %5135 = vmatpush.bf16.msra.mxu2 %v8388_v48  ;;  %v4363_v48 = vadd.f32 %v8869_v30, %v4350_v23 }
 0x356   :  { %5111 = vmatpush.bf16.msra.mxu0 %v8370_v45  ;;  %v4401_v45 = vpop.f32.mrf.mxu2 }
 0x357   :  { %5148 = vmatpush.bf16.msra.mxu3 %v8396_v21  ;;  %5124 = vmatpush.bf16.msra.mxu1 %v8378_v22  ;;  %v8418_v21 = vld [vmem:[#allocation11 + $0x190] sm:$0xff]  ;;  %v8400_v22 = vld [vmem:[#allocation11 + $0x100] sm:$0xff]  ;;  %v4416_v30 = vpop.f32.mrf.mxu3 }
 0x359   :  { %5136 = vmatpush.bf16.msra.mxu2 %v8387_v24  ;;  %v4578_v24 = vmax.f32 %v8845_v0, 0.0 }
 0x35a   :  { %5112 = vmatpush.bf16.msra.mxu0 %v8369_v28 }
 0x35b   :  { %5149 = vmatpush.bf16.msra.mxu3 %v8395_v25  ;;  %5125 = vmatpush.bf16.msra.mxu1 %v8377_v29  ;;  %v4579_v25 = vmax.f32 %v4363_v48, 0.0  ;;  %v4586_v28 = vpack.c.bf16 %v4578_v24, %v4578_v24 }
 0x35d   :  { %5137 = vmatpush.bf16.msra.mxu2 %v8386_v12  ;;  %v4587_v29 = vpack.c.bf16 %v4579_v25, %v4579_v25  ;;  %v8416_v12 = vld [vmem:[#allocation11 + $0x180] sm:$0xff] }
 0x35e   :  { %5113 = vmatpush.bf16.msra.mxu0 %v8368_v33  ;;  %v4376_v33 = vadd.f32 %v4375_v5, %v1172_v31 }
 0x35f   :  { %5150 = vmatpush.bf16.msra.mxu3 %v8394_v32  ;;  %5126 = vmatpush.bf16.msra.mxu1 %v8376_v37  ;;  %v4403_v32 = vpop.f32.mrf.mxu2 }
 0x360   :  { %v4389_v0 = vadd.f32 %v4388_v6, %v4376_v33 }
 0x361   :  { %5138 = vmatpush.bf16.msra.mxu2 %v8385_v42  ;;  %5114 = vmatmul.bf16.vlgmr.msra.gmra.mxu0 %v4582_v52  ;;  %v4427_v34 = vpop.f32.mrf.mxu0 }
 0x362   :  { %5158 = vmatpush.bf16.msrb.mxu0 %v8407_v38  ;;  %5127 = vmatmul.bf16.vlgmr.msra.gmra.mxu1 %v4583_v54  ;;  %v4402_v36 = vadd.f32 %v4401_v45, %v4389_v0 }
 0x363   :  { %5171 = vmatpush.bf16.msrb.mxu1 %v8415_v41  ;;  %5151 = vmatpush.bf16.msra.mxu3 %v8393_v47  ;;  %v4440_v37 = vpop.f32.mrf.mxu1 }
 0x364   :  { %v4415_v38 = vadd.f32 %v4414_v17, %v4402_v36 }
 0x365   :  { %5139 = vmatpush.bf16.msra.mxu2 %v8384_v57 }
 0x366   :  { %5159 = vmatpush.bf16.msrb.mxu0 %v8406_v16  ;;  %v4428_v40 = vadd.f32 %v4427_v34, %v4415_v38 }
 0x367   :  { %5172 = vmatpush.bf16.msrb.mxu1 %v8414_v46  ;;  %5152 = vmatpush.bf16.msra.mxu3 %v8392_v58 }
 0x368   :  { %5140 = vmatmul.bf16.vlgmr.msra.gmra.mxu2 %v4584_v2  ;;  %v4441_v47 = vadd.f32 %v4440_v37, %v4428_v40  ;;  %v8426_v2 = vld [vmem:[#allocation11 + $0x1d0] sm:$0xff] }
 0x369   :  { %5184 = vmatpush.bf16.msrb.mxu2 %v8423_v59  ;;  %v4429_v41 = vpop.f32.mrf.mxu0  ;;  %v8429_v59 = vld [vmem:[#allocation11 + $0x1e8] sm:$0xff] }
 0x36a   :  { %5160 = vmatpush.bf16.msrb.mxu0 %v8405_v62  ;;  %5153 = vmatmul.bf16.vlgmr.msra.gmra.mxu3 %v4585_v51  ;;  %v8427_v62 = vld [vmem:[#allocation11 + $0x1d8] sm:$0xff]  ;;  %v8425_v51 = vld [vmem:[#allocation11 + $0x1c8] sm:$0xff] }
 0x36b   :  { %5173 = vmatpush.bf16.msrb.mxu1 %v8413_v44  ;;  %v4442_v42 = vpop.f32.mrf.mxu1  ;;  %5197 = vmatpush.bf16.msrb.mxu3 %v8431_v53 }
 0x36d   :  { %5185 = vmatpush.bf16.msrb.mxu2 %v8422_v49 }
 0x36e   :  { %5161 = vmatpush.bf16.msrb.mxu0 %v8404_v50 }
 0x36f   :  { %5174 = vmatpush.bf16.msrb.mxu1 %v8412_v55  ;;  %v4453_v52 = vpop.f32.mrf.mxu2  ;;  %5198 = vmatpush.bf16.msrb.mxu3 %v8430_v56 }
 0x370   :  { %v4454_v16 = vadd.f32 %v4453_v52, %v4441_v47 }
 0x371   :  { %5186 = vmatpush.bf16.msrb.mxu2 %v8421_v4  ;;  %v4466_v54 = vpop.f32.mrf.mxu3  ;;  %v1173_v4 = vperm.slane %v8872_v35, 7 }
 0x372   :  { %5162 = vmatpush.bf16.msrb.mxu0 %v8403_v18  ;;  %v4467_v46 = vadd.f32 %v4466_v54, %v4454_v16 }
 0x373   :  { %5175 = vmatpush.bf16.msrb.mxu1 %v8411_v9  ;;  %5199 = vmatpush.bf16.msrb.mxu3 %v8429_v59 }
 0x374   :  { %v4580_v57 = vmax.f32 %v4467_v46, 0.0 }
 0x375   :  { %5187 = vmatpush.bf16.msrb.mxu2 %v8420_v11 }
 0x376   :  { %5163 = vmatpush.bf16.msrb.mxu0 %v8402_v7  ;;  %v4588_v43 = vpack.c.bf16 %v4580_v57, %v4580_v57 }
 0x377   :  { %5176 = vmatpush.bf16.msrb.mxu1 %v8410_v14  ;;  %v4455_v58 = vpop.f32.mrf.mxu2  ;;  %5200 = vmatpush.bf16.msrb.mxu3 %v8428_v60 }
 0x379   :  { %5188 = vmatpush.bf16.msrb.mxu2 %v8419_v10  ;;  %v4468_v27 = vpop.f32.mrf.mxu3 }
 0x37a   :  { %5164 = vmatpush.bf16.msrb.mxu0 %v8401_v15 }
 0x37b   :  { %5177 = vmatpush.bf16.msrb.mxu1 %v8409_v20  ;;  %5201 = vmatpush.bf16.msrb.mxu3 %v8427_v62 }
 0x37d   :  { %5189 = vmatpush.bf16.msrb.mxu2 %v8418_v21 }
 0x37e   :  { %5165 = vmatpush.bf16.msrb.mxu0 %v8400_v22  ;;  %v8444_v22 = vld [vmem:[#allocation13] ss:$0 sm:$0xff] }
 0x37f   :  { %5178 = vmatpush.bf16.msrb.mxu1 %v8408_v3  ;;  %5202 = vmatpush.bf16.msrb.mxu3 %v8426_v2 }
 0x381   :  { %5190 = vmatpush.bf16.msrb.mxu2 %v8417_v26  ;;  %5166 = vmatmul.bf16.vlgmr.msrb.gmra.mxu0 %v4586_v28  ;;  %v4479_v61 = vpop.f32.mrf.mxu0 }
 0x382   :  { %5179 = vmatmul.bf16.vlgmr.msrb.gmra.mxu1 %v4587_v29  ;;  %v4480_v6 = vadd.f32 %v4479_v61, %v1173_v4 }
 0x383   :  { %v4492_v44 = vpop.f32.mrf.mxu1  ;;  %5203 = vmatpush.bf16.msrb.mxu3 %v8425_v51 }
 0x384   :  { %v4493_v18 = vadd.f32 %v4492_v44, %v4480_v6 }
 0x385   :  { %5191 = vmatpush.bf16.msrb.mxu2 %v8416_v12 }
 0x387   :  { %5204 = vmatpush.bf16.msrb.mxu3 %v8424_v63 }
 0x388   :  { %5192 = vmatmul.bf16.vlgmr.msrb.gmra.mxu2 %v4588_v43 }
 0x389   :  { %v4481_v1 = vpop.f32.mrf.mxu0 }
 0x38b   :  { %v4494_v49 = vpop.f32.mrf.mxu1 }
 0x393   :  { %v4505_v50 = vpop.f32.mrf.mxu2 }
 0x394   :  { %v4506_v11 = vadd.f32 %v4505_v50, %v4493_v18 }
 0x395   :  { %v4518_v55 = vpop.f32.mrf.mxu3 }
 0x396   :  { %v4519_v7 = vadd.f32 %v4518_v55, %v4506_v11 }
 0x39b   :  { %v4507_v5 = vpop.f32.mrf.mxu2 }
 0x39d   :  { %v4520_v8 = vpop.f32.mrf.mxu3 }
 0x3bd   :  { %v4531_v9 = vpop.f32.mrf.mxu0 }
 0x3be   :  { %v4532_v14 = vadd.f32 %v4531_v9, %v4519_v7 }
 0x3bf   :  { %v4544_v13 = vpop.f32.mrf.mxu1 }
 0x3c0   :  { %v4545_v39 = vadd.f32 %v4544_v13, %v4532_v14 }
 0x3c5   :  { %v4533_v23 = vpop.f32.mrf.mxu0 }
 0x3c7   :  { %v4546_v10 = vpop.f32.mrf.mxu1 }
 0x3cb   :  { %v4557_v19 = vpop.f32.mrf.mxu2 }
 0x3cc   :  { %v4558_v15 = vadd.f32 %v4557_v19, %v4545_v39 }
 0x3cd   :  { %v4570_v20 = vpop.f32.mrf.mxu3 }
 0x3ce   :  { %v4571_v48 = vadd.f32 %v4570_v20, %v4558_v15 }
 0x3d0   :  { %v4581_v21 = vmax.f32 %v4571_v48, 0.0 }
 0x3d2   :  { %v4589_v45 = vpack.c.bf16 %v4581_v21, %v4581_v21 }
 0x3d3   :  { %v4559_v17 = vpop.f32.mrf.mxu2 }
 0x3d4   :  { %5205 = vmatmul.bf16.vlgmr.msrb.gmra.mxu3 %v4589_v45 }
 0x3d5   :  { %v4572_v35 = vpop.f32.mrf.mxu3 }
 0x3de   :  { %v5115_v24 = vpop.f32.mrf.mxu0 }
 0x3df   :  { %v5116_v3 = vadd.f32 %v8444_v22, %v5115_v24  ;;  %v5128_v25 = vpop.f32.mrf.mxu1 }
 0x3e1   :  { %v5129_v26 = vadd.f32 %v5128_v25, %v5116_v3 }
 0x3e6   :  { %v5117_v28 = vpop.f32.mrf.mxu0 }
 0x3e7   :  { %v5130_v29 = vpop.f32.mrf.mxu1 }
 0x3eb   :  { %v5141_v12 = vpop.f32.mrf.mxu2 }
 0x3ec   :  { %v5142_v31 = vadd.f32 %v5141_v12, %v5129_v26 }
 0x3ed   :  { %v5154_v32 = vpop.f32.mrf.mxu3 }
 0x3ee   :  { %v5155_v30 = vadd.f32 %v5154_v32, %v5142_v31 }
 0x3f3   :  { %v5143_v33 = vpop.f32.mrf.mxu2 }
 0x3f5   :  { %v5156_v0 = vpop.f32.mrf.mxu3 }
 0x3fe   :  { %v5167_v34 = vpop.f32.mrf.mxu0 }
 0x3ff   :  { %v5168_v36 = vadd.f32 %v5167_v34, %v5155_v30  ;;  %v5180_v37 = vpop.f32.mrf.mxu1 }
 0x401   :  { %v5181_v38 = vadd.f32 %v5180_v37, %v5168_v36 }
 0x406   :  { %v5169_v40 = vpop.f32.mrf.mxu0 }
 0x407   :  { %v5182_v41 = vpop.f32.mrf.mxu1 }
 0x40b   :  { %v5193_v42 = vpop.f32.mrf.mxu2 }
 0x40c   :  { %v5194_v52 = vadd.f32 %v5193_v42, %v5181_v38 }
 0x413   :  { %v5195_v47 = vpop.f32.mrf.mxu2 }
 0x457   :  { %v5206_v53 = vpop.f32.mrf.mxu3 }
 0x458   :  { %v5207_v16 = vadd.f32 %v5206_v53, %v5194_v52 }
 0x45a   :  { %8445 = vtanh.f32 %v5207_v16 }
 0x45f   :  { %v5208_v54 = vpop.f32.mrf.mxu3 }
 0x460   :  { %v8446_v46 = vpop.eup %8445 }
 0x461   :  { %5211 = vst [vmem:[#allocation14] sm:$0xff] %v8446_v46 }
 0x462   :  { %5222 = dma.vmem_to_hbm [thread:$0]  %s5218_s6, 128, %s5220_s14, [#allocation4]  }
 0x463   :  { %8649 = dma.done.wait [#allocation4], 128  }
 0x464   :  { %8650 = vsyncadd [#allocation4], 4294967168 }
 0x465   :  { %5227 = vsyncpa [#allocation3], 1 }
 0x466   :  { %5228 = vsyncpa [#allocation6], 1 }
 0x467   :  { %5229 = vsyncpa [#allocation9], 1 }
 0x468   :  { %5230 = vsyncpa [#allocation12], 1 }
 0x469   :  { %5231 = vsyncpa [#allocation4], 1 }

</bundles_post_ra>
